<compile_context>
chip_gen: v7x
topology: tpu7x:2x2x1
jax: 0.10.0
libtpu: 0.0.40
codegen_flags: <defaults>
</compile_context>

<pallas_src>
import math

import numpy as np
import jax
import jax.numpy as jnp
from jax import lax
from jax.experimental import pallas as pl
from jax.experimental.pallas import tpu as pltpu


# ----------------------------------------------------------------------------
# Fused kernel
# ----------------------------------------------------------------------------
def _full_spec(shape):
    nd = len(shape)
    return pl.BlockSpec(shape, lambda i, _nd=nd: (0,) * _nd)


def _make_kernel(B, C0, H1, W1):
    H2, W2 = H1 // 2, W1 // 2
    H3, W3 = H2 // 2, W2 // 2
    Hp1 = H1 + 2
    Hp2, Hp3 = H2 + 2, H3 + 2            # fast (y) padded extents
    Wp2, Wp3 = W2 + 2, W3 + 2            # slow (x) padded extents
    S2, S3 = Wp2 * Hp2, Wp3 * Hp3        # per-sample rows of per-tap buffers
    G2, G3 = Hp2 + 1, Hp3 + 1            # guard rows so every tap slice is in range
    N2, N3 = B * S2, B * S3              # conv2 / conv3 output rows
    R1 = B * Hp1 - 2                     # conv1 (batch-merged) output rows
    C1, C2, C3, HID = 32, 64, 64, 64
    CW1 = (W1 - 1) * C1                  # pool-1 column-max lane width
    K1 = H3 * W3                         # spatial positions feeding fc1
    # row offsets inside the merged bf16 weight slab
    OW2 = 0
    OW3 = OW2 + 9 * C1
    OF1 = OW3 + 9 * C2
    OF2 = OF1 + K1 * C3
    # row offsets inside the merged selection-matrix slab
    OS2 = B * H2
    OS3 = OS2 + B * K1
    # lane offsets inside the f32 constants row 1
    OB2, OB3, OFB1, OFB2, OW3V, OFB3 = 0, 64, 128, 192, 256, 320
    f32, bf16 = jnp.float32, jnp.bfloat16

    def kernel(x_ref, t1_ref, wb_ref, sel_ref, cst_ref, o_ref,
               z1_ref, a2_ref, z2_ref, a3_ref):
        # ---------- conv1: banded matmuls, whole batch at once --------------
        z1 = jnp.dot(x_ref[0:R1, :], t1_ref[0], preferred_element_type=f32)
        z1 = z1 + jnp.dot(x_ref[1:R1 + 1, :], t1_ref[1], preferred_element_type=f32)
        z1 = z1 + jnp.dot(x_ref[2:R1 + 2, :], t1_ref[2], preferred_element_type=f32)
        z1_ref[...] = z1.astype(bf16)                       # (R1, W1*32)

        # ---------- pool1: row-max, col-max, row-select, bias+tanh ----------
        rm = jnp.maximum(z1_ref[0:R1 - 1, :], z1_ref[1:R1, :])
        cm = jnp.maximum(rm[:, 0:CW1], rm[:, C1:CW1 + C1])  # (R1-1, CW1)
        s1 = jnp.dot(sel_ref[0:B * H2, 0:R1 - 1], cm, preferred_element_type=f32)
        act1 = jnp.tanh(s1 + cst_ref[0:1, 0:CW1]).astype(bf16)   # (B*H2, CW1)

        # scatter pooled act into per-tap layout rows=(b, x_pad, y_pad), lanes=C1
        a2_ref[...] = jnp.zeros_like(a2_ref)
        for b in range(B):
            for x2 in range(W2):
                d = G2 + b * S2 + (x2 + 1) * Hp2 + 1
                a2_ref[d:d + H2, :] = act1[b * H2:(b + 1) * H2,
                                           2 * x2 * C1:(2 * x2 + 1) * C1]

        # ---------- conv2: 9 per-tap matmuls with raw weights ---------------
        z2 = None
        for dy in range(3):
            for dx in range(3):
                t = dy * 3 + dx
                s = G2 + (dx - 1) * Hp2 + (dy - 1)
                p = jnp.dot(a2_ref[s:s + N2, :],
                            wb_ref[OW2 + t * C1:OW2 + (t + 1) * C1, :],
                            preferred_element_type=f32)
                z2 = p if z2 is None else z2 + p
        z2_ref[...] = z2.astype(bf16)                       # (N2, C2)

        # ---------- pool2 + bias + tanh + gather -----------------------------
        rm2 = jnp.maximum(z2_ref[0:N2 - 1, :], z2_ref[1:N2, :])
        cm2 = jnp.maximum(rm2[0:N2 - Hp2 - 1, :], rm2[Hp2:N2 - 1, :])
        s2 = jnp.dot(sel_ref[OS2:OS2 + B * K1, 0:N2 - Hp2 - 1], cm2,
                     preferred_element_type=f32)
        act2 = jnp.tanh(s2 + cst_ref[1:2, OB2:OB2 + C2]).astype(bf16)  # (B*K1, C2)

        a3_ref[...] = jnp.zeros_like(a3_ref)
        for b in range(B):
            for x3 in range(W3):
                d = G3 + b * S3 + (x3 + 1) * Hp3 + 1
                srow = b * K1 + x3 * H3
                a3_ref[d:d + H3, :] = act2[srow:srow + H3, :]

        # ---------- conv3: 9 per-tap matmuls ---------------------------------
        z3 = None
        for dy in range(3):
            for dx in range(3):
                t = dy * 3 + dx
                s = G3 + (dx - 1) * Hp3 + (dy - 1)
                p = jnp.dot(a3_ref[s:s + N3, :],
                            wb_ref[OW3 + t * C2:OW3 + (t + 1) * C2, :],
                            preferred_element_type=f32)
                z3 = p if z3 is None else z3 + p            # (N3, C3)

        # gather the valid conv3 rows (order (k, b)), bias + tanh
        a4 = jnp.dot(sel_ref[OS3:OS3 + B * K1, 0:N3], z3.astype(bf16),
                     preferred_element_type=f32)
        a4 = jnp.tanh(a4 + cst_ref[1:2, OB3:OB3 + C3]).astype(bf16)   # (K1*B, C3)

        # ---------- MLP: fc1 (accumulated over spatial pos) -> fc2 -> fc3 ----
        h = None
        for k in range(K1):
            p = jnp.dot(a4[k * B:(k + 1) * B, :],
                        wb_ref[OF1 + k * C3:OF1 + (k + 1) * C3, :],
                        preferred_element_type=f32)
            h = p if h is None else h + p                    # (B, HID)
        h1 = jnp.tanh(h + cst_ref[1:2, OFB1:OFB1 + HID])
        h2 = jnp.tanh(jnp.dot(h1.astype(bf16), wb_ref[OF2:OF2 + HID, :],
                              preferred_element_type=f32)
                      + cst_ref[1:2, OFB2:OFB2 + HID])
        # final 64->1 projection as VPU multiply + lane reduction
        out = jnp.sum(h2 * cst_ref[1:2, OW3V:OW3V + HID], axis=1, keepdims=True) \
            + cst_ref[1:2, OFB3:OFB3 + 1]
        o_ref[...] = out.astype(f32)

    return kernel


def state_function_2d_forward(states_nchw, ops):
    """states_nchw: (B, C, H, W) float; ops: output of prepare_operands."""
    B, C0, H1, W1 = states_nchw.shape
    assert H1 % 4 == 0 and W1 % 4 == 0, "spatial dims must be divisible by 4"
    H2, W2 = H1 // 2, W1 // 2
    H3, W3 = H2 // 2, W2 // 2

    # Input formatting: NCHW -> NHWC, spatial 'same' padding, then rows =
    # (b, padded y), lanes = (padded x, channel); bf16 (matmul operand anyway).
    x = jnp.transpose(states_nchw, (0, 2, 3, 1)).astype(jnp.float32)
    x = jnp.pad(x, ((0, 0), (1, 1), (1, 1), (0, 0)))
    x = x.reshape(B * (H1 + 2), (W1 + 2) * C0).astype(jnp.bfloat16)

    inputs = [x, ops["t1"], ops["wb"], ops["sel"], ops["cst"]]

    scratch = [
        pltpu.VMEM((B * (H1 + 2) - 2, W1 * 32), jnp.bfloat16),                    # conv1 pre-act
        pltpu.VMEM((2 * (H2 + 3) + B * (H2 + 2) * (W2 + 2), 32), jnp.bfloat16),   # a2 (per-tap)
        pltpu.VMEM((B * (H2 + 2) * (W2 + 2), 64), jnp.bfloat16),                  # conv2 pre-act
        pltpu.VMEM((2 * (H3 + 3) + B * (H3 + 2) * (W3 + 2), 64), jnp.bfloat16),   # a3 (per-tap)
    ]

    r1 = B * (H1 + 2) - 2
    n2 = B * (H2 + 2) * (W2 + 2)
    n3 = B * (H3 + 2) * (W3 + 2)
    flops = 2 * (3 * r1 * (W1 + 2) * C0 * (W1 * 32)
                 + 9 * n2 * 32 * 64
                 + 9 * n3 * 64 * 64
                 + B * H2 * (r1 - 1) * (W1 - 1) * 32
                 + B * H3 * W3 * (n2 - H2 - 3) * 64
                 + B * H3 * W3 * n3 * 64
                 + H3 * W3 * B * 64 * 64 + B * 64 * 64)
    transc = B * H2 * (W1 - 1) * 32 + 2 * B * H3 * W3 * 64 + 2 * B * 64
    bytes_acc = sum(int(np.prod(a.shape)) * a.dtype.itemsize for a in inputs) + B * 4

    return pl.pallas_call(
        _make_kernel(B, C0, H1, W1),
        grid=(1,),
        in_specs=[_full_spec(a.shape) for a in inputs],
        out_specs=_full_spec((B, 1)),
        out_shape=jax.ShapeDtypeStruct((B, 1), jnp.float32),
        scratch_shapes=scratch,
        compiler_params=pltpu.CompilerParams(
            dimension_semantics=("arbitrary",)),
        cost_estimate=pl.CostEstimate(flops=int(flops),
                                      transcendentals=int(transc),
                                      bytes_accessed=int(bytes_acc)),
    )(*inputs)


# ----------------------------------------------------------------------------
# Host-side (init-time) operand preparation
# ----------------------------------------------------------------------------
def _toeplitz_bands(w_mat, cin, cout, w_out):
    """(9*cin, cout) conv weights (rows ordered dy,dx,ci) -> 3 banded matrices
    ((w_out+2)*cin, w_out*cout), one per vertical tap dy (used for conv1 only)."""
    w = np.asarray(w_mat, np.float32).reshape(3, 3, cin, cout)
    t = np.zeros((3, (w_out + 2) * cin, w_out * cout), np.float32)
    for dy in range(3):
        for x in range(w_out):
            for dx in range(3):
                xp = x + dx
                t[dy, xp * cin:(xp + 1) * cin, x * cout:(x + 1) * cout] = w[dy, dx]
    return t


def prepare_operands(params, state_shape, batch):
    c0, h1, w1 = state_shape
    assert h1 % 4 == 0 and w1 % 4 == 0
    B = batch
    h2, w2 = h1 // 2, w1 // 2
    h3, w3 = h2 // 2, w2 // 2
    hp1 = h1 + 2
    hp2, hp3 = h2 + 2, h3 + 2
    wp2, wp3 = w2 + 2, w3 + 2
    s2rows, s3rows = wp2 * hp2, wp3 * hp3
    n2, n3 = B * s2rows, B * s3rows
    r1 = B * hp1 - 2
    k1 = h3 * w3

    p = {k: np.asarray(v, np.float32) for k, v in params.items()}

    # conv1 banded matrices (3, (w1+2)*c0, w1*32)
    t1 = _toeplitz_bands(p["conv1_w"], c0, 32, w1)

    # merged bf16 weight slab: conv2 taps | conv3 taps | fc1 (permuted) | fc2
    w2c = p["conv2_w"].reshape(3, 3, 32, 64)
    w3c = p["conv3_w"].reshape(3, 3, 64, 64)
    blocks = [w2c[dy, dx] for dy in range(3) for dx in range(3)]
    blocks += [w3c[dy, dx] for dy in range(3) for dx in range(3)]
    # fc1 rows regrouped so block k = x3*h3 + y3 holds the weights of all 64
    # channels at spatial position (y3, x3) (PyTorch NCHW flatten order).
    w1r = np.zeros_like(p["fc1_w"])
    for x3 in range(w3):
        for y3 in range(h3):
            k = x3 * h3 + y3
            src = np.arange(64) * k1 + y3 * w3 + x3
            w1r[k * 64:(k + 1) * 64, :] = p["fc1_w"][src, :]
    blocks.append(w1r)
    blocks.append(p["fc2_w"])
    wb = np.concatenate(blocks, axis=0)

    # merged 0/1 selection slab: pool1 rows | pool2 rows | conv3 valid rows
    sel_w = max(r1 - 1, n2 - hp2 - 1, n3)
    sel = np.zeros((B * h2 + 2 * B * k1, sel_w), np.float32)
    for b in range(B):                                      # pool1 row select
        for y2 in range(h2):
            sel[b * h2 + y2, b * hp1 + 2 * y2] = 1.0
    o2 = B * h2
    for b in range(B):                                      # pool2 row select
        for x3 in range(w3):
            for y3 in range(h3):
                sel[o2 + b * k1 + x3 * h3 + y3,
                    b * s2rows + (2 * x3 + 1) * hp2 + (2 * y3 + 1)] = 1.0
    o3 = o2 + B * k1
    for b in range(B):                                      # conv3 valid rows
        for x3 in range(w3):
            for y3 in range(h3):
                k = x3 * h3 + y3
                sel[o3 + k * B + b,
                    b * s3rows + (x3 + 1) * hp3 + (y3 + 1)] = 1.0

    # packed f32 constants: row0 = tiled conv1 bias; row1 = b2|b3|fb1|fb2|w3|fb3
    cw = (w1 - 1) * 32
    assert cw >= 321
    cst = np.zeros((2, cw), np.float32)
    cst[0, :] = np.tile(p["conv1_b"].reshape(-1), w1 - 1)
    cst[1, 0:64] = p["conv2_b"].reshape(-1)
    cst[1, 64:128] = p["conv3_b"].reshape(-1)
    cst[1, 128:192] = p["fc1_b"].reshape(-1)
    cst[1, 192:256] = p["fc2_b"].reshape(-1)
    cst[1, 256:320] = p["fc3_w"].reshape(-1)
    cst[1, 320] = p["fc3_b"].reshape(())

    return {
        "t1": jnp.asarray(t1, jnp.bfloat16),
        "wb": jnp.asarray(wb, jnp.bfloat16),
        "sel": jnp.asarray(sel, jnp.bfloat16),
        "cst": jnp.asarray(cst, jnp.float32),
    }


# ----------------------------------------------------------------------------
# Parameters (deterministic Xavier-uniform weights, bias = 0.01, like init_weights)
# ----------------------------------------------------------------------------
def _xavier(key, shape, fan_in, fan_out):
    lim = math.sqrt(6.0 / (fan_in + fan_out))
    return jax.random.uniform(key, shape, jnp.float32, -lim, lim)


def init_params(key, state_shape, hidden_units=(64, 64)):
    c, h, w = state_shape
    ks = jax.random.split(key, 6)
    flat_dim = 64 * h * w // 16
    return {
        # conv weights as (9*Cin, Cout) matrices, rows ordered (dy, dx, ci)
        "conv1_w": _xavier(ks[0], (9 * c, 32), fan_in=c * 9, fan_out=32 * 9),
        "conv1_b": jnp.full((1, 32), 0.01, jnp.float32),
        "conv2_w": _xavier(ks[1], (9 * 32, 64), fan_in=32 * 9, fan_out=64 * 9),
        "conv2_b": jnp.full((1, 64), 0.01, jnp.float32),
        "conv3_w": _xavier(ks[2], (9 * 64, 64), fan_in=64 * 9, fan_out=64 * 9),
        "conv3_b": jnp.full((1, 64), 0.01, jnp.float32),
        "fc1_w": _xavier(ks[3], (flat_dim, hidden_units[0]), flat_dim, hidden_units[0]),
        "fc1_b": jnp.full((1, hidden_units[0]), 0.01, jnp.float32),
        "fc2_w": _xavier(ks[4], (hidden_units[0], hidden_units[1]),
                         hidden_units[0], hidden_units[1]),
        "fc2_b": jnp.full((1, hidden_units[1]), 0.01, jnp.float32),
        "fc3_w": _xavier(ks[5], (hidden_units[1], 1), hidden_units[1], 1),
        "fc3_b": jnp.full((1, 1), 0.01, jnp.float32),
    }


# ----------------------------------------------------------------------------
# Pure-JAX reference (f32) for correctness checking
# ----------------------------------------------------------------------------
def _ref_forward(states_nchw, params):
    x = jnp.transpose(states_nchw, (0, 2, 3, 1)).astype(jnp.float32)

    def conv(x, w_mat, bias):
        cin = x.shape[-1]
        cout = w_mat.shape[1]
        w = w_mat.reshape(3, 3, cin, cout)  # HWIO, matching (dy, dx, ci) order
        y = lax.conv_general_dilated(x, w, (1, 1), "SAME",
                                     dimension_numbers=("NHWC", "HWIO", "NHWC"))
        return jnp.tanh(y + bias.reshape(1, 1, 1, -1))

    def pool(x):
        return lax.reduce_window(x, -jnp.inf, lax.max,
                                 (1, 2, 2, 1), (1, 2, 2, 1), "VALID")

    x = pool(conv(x, params["conv1_w"], params["conv1_b"]))
    x = pool(conv(x, params["conv2_w"], params["conv2_b"]))
    x = conv(x, params["conv3_w"], params["conv3_b"])
    b = x.shape[0]
    x = jnp.transpose(x, (0, 3, 1, 2)).reshape(b, -1)   # PyTorch NCHW flatten
    h = jnp.tanh(x @ params["fc1_w"] + params["fc1_b"])
    h = jnp.tanh(h @ params["fc2_w"] + params["fc2_b"])
    return h @ params["fc3_w"] + params["fc3_b"]


if __name__ == "__main__":
    state_shape = (4, 16, 16)          # (C, H, W), as in the PyTorch module
    batch = 2

    key = jax.random.PRNGKey(0)
    k_params, k_x = jax.random.split(key)
    params = init_params(k_params, state_shape)
    states = jax.random.normal(k_x, (batch,) + state_shape, dtype=jnp.float32)

    ops = prepare_operands(params, state_shape, batch)
    out = jax.block_until_ready(state_function_2d_forward(states, ops))
    assert out.shape == (batch, 1), out.shape

    ref = jax.block_until_ready(_ref_forward(states, params))
    # bf16 MXU operands / bf16 pooled activations => small deviations vs f32 ref.
    err = float(jnp.max(jnp.abs(out - ref)))
    assert err < 1e-1, (err, out, ref)

    print("KERNEL_OK")
</pallas_src>

<mosaic_0001>
module attributes {stable_mosaic.version = 11 : i64} {
  func.func @kernel(%arg0: i32, %arg1: memref<36x72xbf16, #tpu.memory_space<vmem>>, %arg2: memref<3x72x512xbf16, #tpu.memory_space<vmem>>, %arg3: memref<1952x64xbf16, #tpu.memory_space<vmem>>, %arg4: memref<80x189xbf16, #tpu.memory_space<vmem>>, %arg5: memref<2x480xf32, #tpu.memory_space<vmem>>, %arg6: memref<2x1xf32, #tpu.memory_space<vmem>>, %arg7: memref<34x512xbf16, #tpu.memory_space<vmem>>, %arg8: memref<222x32xbf16, #tpu.memory_space<vmem>>, %arg9: memref<200x64xbf16, #tpu.memory_space<vmem>>, %arg10: memref<86x64xbf16, #tpu.memory_space<vmem>>) attributes {dimension_semantics = [#tpu.dimension_semantics<arbitrary>], iteration_bounds = array<i64: 1>, scalar_prefetch = 0 : i64, scratch_operands = 4 : i64, tpu.core_type = #tpu.core_type<tc>, window_params = [{pipeline_mode = #tpu.pipeline_mode<synchronous>, transform_indices = @transform_0, window_bounds = array<i64: 36, 72>}, {pipeline_mode = #tpu.pipeline_mode<synchronous>, transform_indices = @transform_1, window_bounds = array<i64: 3, 72, 512>}, {pipeline_mode = #tpu.pipeline_mode<synchronous>, transform_indices = @transform_2, window_bounds = array<i64: 1952, 64>}, {pipeline_mode = #tpu.pipeline_mode<synchronous>, transform_indices = @transform_3, window_bounds = array<i64: 80, 189>}, {pipeline_mode = #tpu.pipeline_mode<synchronous>, transform_indices = @transform_4, window_bounds = array<i64: 2, 480>}, {pipeline_mode = #tpu.pipeline_mode<synchronous>, transform_indices = @transform_5, window_bounds = array<i64: 2, 1>}]} {
    %c0 = arith.constant 0 : index
    %c0_0 = arith.constant 0 : index
    %0 = vector.load %arg1[%c0, %c0_0] : memref<36x72xbf16, #tpu.memory_space<vmem>>, vector<34x72xbf16>
    %c0_1 = arith.constant 0 : index
    %c0_2 = arith.constant 0 : index
    %c0_3 = arith.constant 0 : index
    %1 = vector.load %arg2[%c0_1, %c0_2, %c0_3] : memref<3x72x512xbf16, #tpu.memory_space<vmem>>, vector<1x72x512xbf16>
    %2 = vector.shape_cast %1 : vector<1x72x512xbf16> to vector<72x512xbf16>
    %cst = arith.constant dense<0.000000e+00> : vector<34x512xf32>
    %3 = tpu.matmul %0, %2, %cst {dimension_numbers = #tpu.dot_dimension_numbers<[1], [0], [0], [1], [0, 0, 1, 1], [], []>} : vector<34x72xbf16>, vector<72x512xbf16>, vector<34x512xf32> -> vector<34x512xf32>
    %c1 = arith.constant 1 : index
    %c0_4 = arith.constant 0 : index
    %4 = vector.load %arg1[%c1, %c0_4] : memref<36x72xbf16, #tpu.memory_space<vmem>>, vector<34x72xbf16>
    %c1_5 = arith.constant 1 : index
    %c0_6 = arith.constant 0 : index
    %c0_7 = arith.constant 0 : index
    %5 = vector.load %arg2[%c1_5, %c0_6, %c0_7] : memref<3x72x512xbf16, #tpu.memory_space<vmem>>, vector<1x72x512xbf16>
    %6 = vector.shape_cast %5 : vector<1x72x512xbf16> to vector<72x512xbf16>
    %cst_8 = arith.constant dense<0.000000e+00> : vector<34x512xf32>
    %7 = tpu.matmul %4, %6, %cst_8 {dimension_numbers = #tpu.dot_dimension_numbers<[1], [0], [0], [1], [0, 0, 1, 1], [], []>} : vector<34x72xbf16>, vector<72x512xbf16>, vector<34x512xf32> -> vector<34x512xf32>
    %8 = arith.addf %3, %7 : vector<34x512xf32>
    %c2 = arith.constant 2 : index
    %c0_9 = arith.constant 0 : index
    %9 = vector.load %arg1[%c2, %c0_9] : memref<36x72xbf16, #tpu.memory_space<vmem>>, vector<34x72xbf16>
    %c2_10 = arith.constant 2 : index
    %c0_11 = arith.constant 0 : index
    %c0_12 = arith.constant 0 : index
    %10 = vector.load %arg2[%c2_10, %c0_11, %c0_12] : memref<3x72x512xbf16, #tpu.memory_space<vmem>>, vector<1x72x512xbf16>
    %11 = vector.shape_cast %10 : vector<1x72x512xbf16> to vector<72x512xbf16>
    %cst_13 = arith.constant dense<0.000000e+00> : vector<34x512xf32>
    %12 = tpu.matmul %9, %11, %cst_13 {dimension_numbers = #tpu.dot_dimension_numbers<[1], [0], [0], [1], [0, 0, 1, 1], [], []>} : vector<34x72xbf16>, vector<72x512xbf16>, vector<34x512xf32> -> vector<34x512xf32>
    %13 = arith.addf %8, %12 : vector<34x512xf32>
    %14 = arith.truncf %13 : vector<34x512xf32> to vector<34x512xbf16>
    %c0_14 = arith.constant 0 : index
    %c0_15 = arith.constant 0 : index
    %15 = vector.load %arg7[%c0_14, %c0_15] : memref<34x512xbf16, #tpu.memory_space<vmem>>, vector<34x512xbf16>
    tpu.vector_store %arg7[%c0_14, %c0_15], %14 {strides = array<i32>} : memref<34x512xbf16, #tpu.memory_space<vmem>>, vector<34x512xbf16>,
    %c0_16 = arith.constant 0 : index
    %c0_17 = arith.constant 0 : index
    %16 = vector.load %arg7[%c0_16, %c0_17] : memref<34x512xbf16, #tpu.memory_space<vmem>>, vector<33x512xbf16>
    %c1_18 = arith.constant 1 : index
    %c0_19 = arith.constant 0 : index
    %17 = vector.load %arg7[%c1_18, %c0_19] : memref<34x512xbf16, #tpu.memory_space<vmem>>, vector<33x512xbf16>
    %18 = arith.maximumf %16, %17 : vector<33x512xbf16>
    %19 = vector.extract_strided_slice %18 {offsets = [0, 0], sizes = [33, 480], strides = [1, 1]} : vector<33x512xbf16> to vector<33x480xbf16>
    %20 = vector.extract_strided_slice %18 {offsets = [0, 32], sizes = [33, 480], strides = [1, 1]} : vector<33x512xbf16> to vector<33x480xbf16>
    %21 = arith.maximumf %19, %20 : vector<33x480xbf16>
    %c0_20 = arith.constant 0 : index
    %c0_21 = arith.constant 0 : index
    %22 = vector.load %arg4[%c0_20, %c0_21] : memref<80x189xbf16, #tpu.memory_space<vmem>>, vector<16x33xbf16>
    %cst_22 = arith.constant dense<0.000000e+00> : vector<16x480xf32>
    %23 = tpu.matmul %22, %21, %cst_22 {dimension_numbers = #tpu.dot_dimension_numbers<[1], [0], [0], [1], [0, 0, 1, 1], [], []>} : vector<16x33xbf16>, vector<33x480xbf16>, vector<16x480xf32> -> vector<16x480xf32>
    %c0_23 = arith.constant 0 : index
    %c0_24 = arith.constant 0 : index
    %24 = vector.load %arg5[%c0_23, %c0_24] : memref<2x480xf32, #tpu.memory_space<vmem>>, vector<1x480xf32>
    %25 = vector.broadcast %24 : vector<1x480xf32> to vector<16x480xf32>
    %26 = arith.addf %23, %25 : vector<16x480xf32>
    %27 = math.tanh %26 : vector<16x480xf32>
    %28 = arith.truncf %27 : vector<16x480xf32> to vector<16x480xbf16>
    %cst_25 = arith.constant 0.000000e+00 : bf16
    %29 = vector.broadcast %cst_25 : bf16 to vector<222x32xbf16>
    %c0_26 = arith.constant 0 : index
    %c0_27 = arith.constant 0 : index
    %30 = vector.load %arg8[%c0_26, %c0_27] : memref<222x32xbf16, #tpu.memory_space<vmem>>, vector<222x32xbf16>
    tpu.vector_store %arg8[%c0_26, %c0_27], %29 {strides = array<i32>} : memref<222x32xbf16, #tpu.memory_space<vmem>>, vector<222x32xbf16>,
    %31 = vector.extract_strided_slice %28 {offsets = [0, 0], sizes = [8, 32], strides = [1, 1]} : vector<16x480xbf16> to vector<8x32xbf16>
    %c22 = arith.constant 22 : index
    %c0_28 = arith.constant 0 : index
    %32 = vector.load %arg8[%c22, %c0_28] : memref<222x32xbf16, #tpu.memory_space<vmem>>, vector<8x32xbf16>
    tpu.vector_store %arg8[%c22, %c0_28], %31 {strides = array<i32>} : memref<222x32xbf16, #tpu.memory_space<vmem>>, vector<8x32xbf16>,
    %33 = vector.extract_strided_slice %28 {offsets = [0, 64], sizes = [8, 32], strides = [1, 1]} : vector<16x480xbf16> to vector<8x32xbf16>
    %c32 = arith.constant 32 : index
    %c0_29 = arith.constant 0 : index
    %34 = vector.load %arg8[%c32, %c0_29] : memref<222x32xbf16, #tpu.memory_space<vmem>>, vector<8x32xbf16>
    tpu.vector_store %arg8[%c32, %c0_29], %33 {strides = array<i32>} : memref<222x32xbf16, #tpu.memory_space<vmem>>, vector<8x32xbf16>,
    %35 = vector.extract_strided_slice %28 {offsets = [0, 128], sizes = [8, 32], strides = [1, 1]} : vector<16x480xbf16> to vector<8x32xbf16>
    %c42 = arith.constant 42 : index
    %c0_30 = arith.constant 0 : index
    %36 = vector.load %arg8[%c42, %c0_30] : memref<222x32xbf16, #tpu.memory_space<vmem>>, vector<8x32xbf16>
    tpu.vector_store %arg8[%c42, %c0_30], %35 {strides = array<i32>} : memref<222x32xbf16, #tpu.memory_space<vmem>>, vector<8x32xbf16>,
    %37 = vector.extract_strided_slice %28 {offsets = [0, 192], sizes = [8, 32], strides = [1, 1]} : vector<16x480xbf16> to vector<8x32xbf16>
    %c52 = arith.constant 52 : index
    %c0_31 = arith.constant 0 : index
    %38 = vector.load %arg8[%c52, %c0_31] : memref<222x32xbf16, #tpu.memory_space<vmem>>, vector<8x32xbf16>
    tpu.vector_store %arg8[%c52, %c0_31], %37 {strides = array<i32>} : memref<222x32xbf16, #tpu.memory_space<vmem>>, vector<8x32xbf16>,
    %39 = vector.extract_strided_slice %28 {offsets = [0, 256], sizes = [8, 32], strides = [1, 1]} : vector<16x480xbf16> to vector<8x32xbf16>
    %c62 = arith.constant 62 : index
    %c0_32 = arith.constant 0 : index
    %40 = vector.load %arg8[%c62, %c0_32] : memref<222x32xbf16, #tpu.memory_space<vmem>>, vector<8x32xbf16>
    tpu.vector_store %arg8[%c62, %c0_32], %39 {strides = array<i32>} : memref<222x32xbf16, #tpu.memory_space<vmem>>, vector<8x32xbf16>,
    %41 = vector.extract_strided_slice %28 {offsets = [0, 320], sizes = [8, 32], strides = [1, 1]} : vector<16x480xbf16> to vector<8x32xbf16>
    %c72 = arith.constant 72 : index
    %c0_33 = arith.constant 0 : index
    %42 = vector.load %arg8[%c72, %c0_33] : memref<222x32xbf16, #tpu.memory_space<vmem>>, vector<8x32xbf16>
    tpu.vector_store %arg8[%c72, %c0_33], %41 {strides = array<i32>} : memref<222x32xbf16, #tpu.memory_space<vmem>>, vector<8x32xbf16>,
    %43 = vector.extract_strided_slice %28 {offsets = [0, 384], sizes = [8, 32], strides = [1, 1]} : vector<16x480xbf16> to vector<8x32xbf16>
    %c82 = arith.constant 82 : index
    %c0_34 = arith.constant 0 : index
    %44 = vector.load %arg8[%c82, %c0_34] : memref<222x32xbf16, #tpu.memory_space<vmem>>, vector<8x32xbf16>
    tpu.vector_store %arg8[%c82, %c0_34], %43 {strides = array<i32>} : memref<222x32xbf16, #tpu.memory_space<vmem>>, vector<8x32xbf16>,
    %45 = vector.extract_strided_slice %28 {offsets = [0, 448], sizes = [8, 32], strides = [1, 1]} : vector<16x480xbf16> to vector<8x32xbf16>
    %c92 = arith.constant 92 : index
    %c0_35 = arith.constant 0 : index
    %46 = vector.load %arg8[%c92, %c0_35] : memref<222x32xbf16, #tpu.memory_space<vmem>>, vector<8x32xbf16>
    tpu.vector_store %arg8[%c92, %c0_35], %45 {strides = array<i32>} : memref<222x32xbf16, #tpu.memory_space<vmem>>, vector<8x32xbf16>,
    %47 = vector.extract_strided_slice %28 {offsets = [8, 0], sizes = [8, 32], strides = [1, 1]} : vector<16x480xbf16> to vector<8x32xbf16>
    %c122 = arith.constant 122 : index
    %c0_36 = arith.constant 0 : index
    %48 = vector.load %arg8[%c122, %c0_36] : memref<222x32xbf16, #tpu.memory_space<vmem>>, vector<8x32xbf16>
    tpu.vector_store %arg8[%c122, %c0_36], %47 {strides = array<i32>} : memref<222x32xbf16, #tpu.memory_space<vmem>>, vector<8x32xbf16>,
    %49 = vector.extract_strided_slice %28 {offsets = [8, 64], sizes = [8, 32], strides = [1, 1]} : vector<16x480xbf16> to vector<8x32xbf16>
    %c132 = arith.constant 132 : index
    %c0_37 = arith.constant 0 : index
    %50 = vector.load %arg8[%c132, %c0_37] : memref<222x32xbf16, #tpu.memory_space<vmem>>, vector<8x32xbf16>
    tpu.vector_store %arg8[%c132, %c0_37], %49 {strides = array<i32>} : memref<222x32xbf16, #tpu.memory_space<vmem>>, vector<8x32xbf16>,
    %51 = vector.extract_strided_slice %28 {offsets = [8, 128], sizes = [8, 32], strides = [1, 1]} : vector<16x480xbf16> to vector<8x32xbf16>
    %c142 = arith.constant 142 : index
    %c0_38 = arith.constant 0 : index
    %52 = vector.load %arg8[%c142, %c0_38] : memref<222x32xbf16, #tpu.memory_space<vmem>>, vector<8x32xbf16>
    tpu.vector_store %arg8[%c142, %c0_38], %51 {strides = array<i32>} : memref<222x32xbf16, #tpu.memory_space<vmem>>, vector<8x32xbf16>,
    %53 = vector.extract_strided_slice %28 {offsets = [8, 192], sizes = [8, 32], strides = [1, 1]} : vector<16x480xbf16> to vector<8x32xbf16>
    %c152 = arith.constant 152 : index
    %c0_39 = arith.constant 0 : index
    %54 = vector.load %arg8[%c152, %c0_39] : memref<222x32xbf16, #tpu.memory_space<vmem>>, vector<8x32xbf16>
    tpu.vector_store %arg8[%c152, %c0_39], %53 {strides = array<i32>} : memref<222x32xbf16, #tpu.memory_space<vmem>>, vector<8x32xbf16>,
    %55 = vector.extract_strided_slice %28 {offsets = [8, 256], sizes = [8, 32], strides = [1, 1]} : vector<16x480xbf16> to vector<8x32xbf16>
    %c162 = arith.constant 162 : index
    %c0_40 = arith.constant 0 : index
    %56 = vector.load %arg8[%c162, %c0_40] : memref<222x32xbf16, #tpu.memory_space<vmem>>, vector<8x32xbf16>
    tpu.vector_store %arg8[%c162, %c0_40], %55 {strides = array<i32>} : memref<222x32xbf16, #tpu.memory_space<vmem>>, vector<8x32xbf16>,
    %57 = vector.extract_strided_slice %28 {offsets = [8, 320], sizes = [8, 32], strides = [1, 1]} : vector<16x480xbf16> to vector<8x32xbf16>
    %c172 = arith.constant 172 : index
    %c0_41 = arith.constant 0 : index
    %58 = vector.load %arg8[%c172, %c0_41] : memref<222x32xbf16, #tpu.memory_space<vmem>>, vector<8x32xbf16>
    tpu.vector_store %arg8[%c172, %c0_41], %57 {strides = array<i32>} : memref<222x32xbf16, #tpu.memory_space<vmem>>, vector<8x32xbf16>,
    %59 = vector.extract_strided_slice %28 {offsets = [8, 384], sizes = [8, 32], strides = [1, 1]} : vector<16x480xbf16> to vector<8x32xbf16>
    %c182 = arith.constant 182 : index
    %c0_42 = arith.constant 0 : index
    %60 = vector.load %arg8[%c182, %c0_42] : memref<222x32xbf16, #tpu.memory_space<vmem>>, vector<8x32xbf16>
    tpu.vector_store %arg8[%c182, %c0_42], %59 {strides = array<i32>} : memref<222x32xbf16, #tpu.memory_space<vmem>>, vector<8x32xbf16>,
    %61 = vector.extract_strided_slice %28 {offsets = [8, 448], sizes = [8, 32], strides = [1, 1]} : vector<16x480xbf16> to vector<8x32xbf16>
    %c192 = arith.constant 192 : index
    %c0_43 = arith.constant 0 : index
    %62 = vector.load %arg8[%c192, %c0_43] : memref<222x32xbf16, #tpu.memory_space<vmem>>, vector<8x32xbf16>
    tpu.vector_store %arg8[%c192, %c0_43], %61 {strides = array<i32>} : memref<222x32xbf16, #tpu.memory_space<vmem>>, vector<8x32xbf16>,
    %c0_44 = arith.constant 0 : index
    %c0_45 = arith.constant 0 : index
    %63 = vector.load %arg8[%c0_44, %c0_45] : memref<222x32xbf16, #tpu.memory_space<vmem>>, vector<200x32xbf16>
    %c0_46 = arith.constant 0 : index
    %c0_47 = arith.constant 0 : index
    %64 = vector.load %arg3[%c0_46, %c0_47] : memref<1952x64xbf16, #tpu.memory_space<vmem>>, vector<32x64xbf16>
    %cst_48 = arith.constant dense<0.000000e+00> : vector<200x64xf32>
    %65 = tpu.matmul %63, %64, %cst_48 {dimension_numbers = #tpu.dot_dimension_numbers<[1], [0], [0], [1], [0, 0, 1, 1], [], []>} : vector<200x32xbf16>, vector<32x64xbf16>, vector<200x64xf32> -> vector<200x64xf32>
    %c10 = arith.constant 10 : index
    %c0_49 = arith.constant 0 : index
    %66 = vector.load %arg8[%c10, %c0_49] : memref<222x32xbf16, #tpu.memory_space<vmem>>, vector<200x32xbf16>
    %c32_50 = arith.constant 32 : index
    %c0_51 = arith.constant 0 : index
    %67 = vector.load %arg3[%c32_50, %c0_51] : memref<1952x64xbf16, #tpu.memory_space<vmem>>, vector<32x64xbf16>
    %cst_52 = arith.constant dense<0.000000e+00> : vector<200x64xf32>
    %68 = tpu.matmul %66, %67, %cst_52 {dimension_numbers = #tpu.dot_dimension_numbers<[1], [0], [0], [1], [0, 0, 1, 1], [], []>} : vector<200x32xbf16>, vector<32x64xbf16>, vector<200x64xf32> -> vector<200x64xf32>
    %69 = arith.addf %65, %68 : vector<200x64xf32>
    %c20 = arith.constant 20 : index
    %c0_53 = arith.constant 0 : index
    %70 = vector.load %arg8[%c20, %c0_53] : memref<222x32xbf16, #tpu.memory_space<vmem>>, vector<200x32xbf16>
    %c64 = arith.constant 64 : index
    %c0_54 = arith.constant 0 : index
    %71 = vector.load %arg3[%c64, %c0_54] : memref<1952x64xbf16, #tpu.memory_space<vmem>>, vector<32x64xbf16>
    %cst_55 = arith.constant dense<0.000000e+00> : vector<200x64xf32>
    %72 = tpu.matmul %70, %71, %cst_55 {dimension_numbers = #tpu.dot_dimension_numbers<[1], [0], [0], [1], [0, 0, 1, 1], [], []>} : vector<200x32xbf16>, vector<32x64xbf16>, vector<200x64xf32> -> vector<200x64xf32>
    %73 = arith.addf %69, %72 : vector<200x64xf32>
    %c1_56 = arith.constant 1 : index
    %c0_57 = arith.constant 0 : index
    %74 = vector.load %arg8[%c1_56, %c0_57] : memref<222x32xbf16, #tpu.memory_space<vmem>>, vector<200x32xbf16>
    %c96 = arith.constant 96 : index
    %c0_58 = arith.constant 0 : index
    %75 = vector.load %arg3[%c96, %c0_58] : memref<1952x64xbf16, #tpu.memory_space<vmem>>, vector<32x64xbf16>
    %cst_59 = arith.constant dense<0.000000e+00> : vector<200x64xf32>
    %76 = tpu.matmul %74, %75, %cst_59 {dimension_numbers = #tpu.dot_dimension_numbers<[1], [0], [0], [1], [0, 0, 1, 1], [], []>} : vector<200x32xbf16>, vector<32x64xbf16>, vector<200x64xf32> -> vector<200x64xf32>
    %77 = arith.addf %73, %76 : vector<200x64xf32>
    %c11 = arith.constant 11 : index
    %c0_60 = arith.constant 0 : index
    %78 = vector.load %arg8[%c11, %c0_60] : memref<222x32xbf16, #tpu.memory_space<vmem>>, vector<200x32xbf16>
    %c128 = arith.constant 128 : index
    %c0_61 = arith.constant 0 : index
    %79 = vector.load %arg3[%c128, %c0_61] : memref<1952x64xbf16, #tpu.memory_space<vmem>>, vector<32x64xbf16>
    %cst_62 = arith.constant dense<0.000000e+00> : vector<200x64xf32>
    %80 = tpu.matmul %78, %79, %cst_62 {dimension_numbers = #tpu.dot_dimension_numbers<[1], [0], [0], [1], [0, 0, 1, 1], [], []>} : vector<200x32xbf16>, vector<32x64xbf16>, vector<200x64xf32> -> vector<200x64xf32>
    %81 = arith.addf %77, %80 : vector<200x64xf32>
    %c21 = arith.constant 21 : index
    %c0_63 = arith.constant 0 : index
    %82 = vector.load %arg8[%c21, %c0_63] : memref<222x32xbf16, #tpu.memory_space<vmem>>, vector<200x32xbf16>
    %c160 = arith.constant 160 : index
    %c0_64 = arith.constant 0 : index
    %83 = vector.load %arg3[%c160, %c0_64] : memref<1952x64xbf16, #tpu.memory_space<vmem>>, vector<32x64xbf16>
    %cst_65 = arith.constant dense<0.000000e+00> : vector<200x64xf32>
    %84 = tpu.matmul %82, %83, %cst_65 {dimension_numbers = #tpu.dot_dimension_numbers<[1], [0], [0], [1], [0, 0, 1, 1], [], []>} : vector<200x32xbf16>, vector<32x64xbf16>, vector<200x64xf32> -> vector<200x64xf32>
    %85 = arith.addf %81, %84 : vector<200x64xf32>
    %c2_66 = arith.constant 2 : index
    %c0_67 = arith.constant 0 : index
    %86 = vector.load %arg8[%c2_66, %c0_67] : memref<222x32xbf16, #tpu.memory_space<vmem>>, vector<200x32xbf16>
    %c192_68 = arith.constant 192 : index
    %c0_69 = arith.constant 0 : index
    %87 = vector.load %arg3[%c192_68, %c0_69] : memref<1952x64xbf16, #tpu.memory_space<vmem>>, vector<32x64xbf16>
    %cst_70 = arith.constant dense<0.000000e+00> : vector<200x64xf32>
    %88 = tpu.matmul %86, %87, %cst_70 {dimension_numbers = #tpu.dot_dimension_numbers<[1], [0], [0], [1], [0, 0, 1, 1], [], []>} : vector<200x32xbf16>, vector<32x64xbf16>, vector<200x64xf32> -> vector<200x64xf32>
    %89 = arith.addf %85, %88 : vector<200x64xf32>
    %c12 = arith.constant 12 : index
    %c0_71 = arith.constant 0 : index
    %90 = vector.load %arg8[%c12, %c0_71] : memref<222x32xbf16, #tpu.memory_space<vmem>>, vector<200x32xbf16>
    %c224 = arith.constant 224 : index
    %c0_72 = arith.constant 0 : index
    %91 = vector.load %arg3[%c224, %c0_72] : memref<1952x64xbf16, #tpu.memory_space<vmem>>, vector<32x64xbf16>
    %cst_73 = arith.constant dense<0.000000e+00> : vector<200x64xf32>
    %92 = tpu.matmul %90, %91, %cst_73 {dimension_numbers = #tpu.dot_dimension_numbers<[1], [0], [0], [1], [0, 0, 1, 1], [], []>} : vector<200x32xbf16>, vector<32x64xbf16>, vector<200x64xf32> -> vector<200x64xf32>
    %93 = arith.addf %89, %92 : vector<200x64xf32>
    %c22_74 = arith.constant 22 : index
    %c0_75 = arith.constant 0 : index
    %94 = vector.load %arg8[%c22_74, %c0_75] : memref<222x32xbf16, #tpu.memory_space<vmem>>, vector<200x32xbf16>
    %c256 = arith.constant 256 : index
    %c0_76 = arith.constant 0 : index
    %95 = vector.load %arg3[%c256, %c0_76] : memref<1952x64xbf16, #tpu.memory_space<vmem>>, vector<32x64xbf16>
    %cst_77 = arith.constant dense<0.000000e+00> : vector<200x64xf32>
    %96 = tpu.matmul %94, %95, %cst_77 {dimension_numbers = #tpu.dot_dimension_numbers<[1], [0], [0], [1], [0, 0, 1, 1], [], []>} : vector<200x32xbf16>, vector<32x64xbf16>, vector<200x64xf32> -> vector<200x64xf32>
    %97 = arith.addf %93, %96 : vector<200x64xf32>
    %98 = arith.truncf %97 : vector<200x64xf32> to vector<200x64xbf16>
    %c0_78 = arith.constant 0 : index
    %c0_79 = arith.constant 0 : index
    %99 = vector.load %arg9[%c0_78, %c0_79] : memref<200x64xbf16, #tpu.memory_space<vmem>>, vector<200x64xbf16>
    tpu.vector_store %arg9[%c0_78, %c0_79], %98 {strides = array<i32>} : memref<200x64xbf16, #tpu.memory_space<vmem>>, vector<200x64xbf16>,
    %c0_80 = arith.constant 0 : index
    %c0_81 = arith.constant 0 : index
    %100 = vector.load %arg9[%c0_80, %c0_81] : memref<200x64xbf16, #tpu.memory_space<vmem>>, vector<199x64xbf16>
    %c1_82 = arith.constant 1 : index
    %c0_83 = arith.constant 0 : index
    %101 = vector.load %arg9[%c1_82, %c0_83] : memref<200x64xbf16, #tpu.memory_space<vmem>>, vector<199x64xbf16>
    %102 = arith.maximumf %100, %101 : vector<199x64xbf16>
    %103 = vector.extract_strided_slice %102 {offsets = [0, 0], sizes = [189, 64], strides = [1, 1]} : vector<199x64xbf16> to vector<189x64xbf16>
    %104 = vector.extract_strided_slice %102 {offsets = [10, 0], sizes = [189, 64], strides = [1, 1]} : vector<199x64xbf16> to vector<189x64xbf16>
    %105 = arith.maximumf %103, %104 : vector<189x64xbf16>
    %c16 = arith.constant 16 : index
    %c0_84 = arith.constant 0 : index
    %106 = vector.load %arg4[%c16, %c0_84] : memref<80x189xbf16, #tpu.memory_space<vmem>>, vector<32x189xbf16>
    %cst_85 = arith.constant dense<0.000000e+00> : vector<32x64xf32>
    %107 = tpu.matmul %106, %105, %cst_85 {dimension_numbers = #tpu.dot_dimension_numbers<[1], [0], [0], [1], [0, 0, 1, 1], [], []>} : vector<32x189xbf16>, vector<189x64xbf16>, vector<32x64xf32> -> vector<32x64xf32>
    %c1_86 = arith.constant 1 : index
    %c0_87 = arith.constant 0 : index
    %108 = vector.load %arg5[%c1_86, %c0_87] : memref<2x480xf32, #tpu.memory_space<vmem>>, vector<1x64xf32>
    %109 = vector.broadcast %108 : vector<1x64xf32> to vector<32x64xf32>
    %110 = arith.addf %107, %109 : vector<32x64xf32>
    %111 = math.tanh %110 : vector<32x64xf32>
    %112 = arith.truncf %111 : vector<32x64xf32> to vector<32x64xbf16>
    %cst_88 = arith.constant 0.000000e+00 : bf16
    %113 = vector.broadcast %cst_88 : bf16 to vector<86x64xbf16>
    %c0_89 = arith.constant 0 : index
    %c0_90 = arith.constant 0 : index
    %114 = vector.load %arg10[%c0_89, %c0_90] : memref<86x64xbf16, #tpu.memory_space<vmem>>, vector<86x64xbf16>
    tpu.vector_store %arg10[%c0_89, %c0_90], %113 {strides = array<i32>} : memref<86x64xbf16, #tpu.memory_space<vmem>>, vector<86x64xbf16>,
    %115 = vector.extract_strided_slice %112 {offsets = [0, 0], sizes = [4, 64], strides = [1, 1]} : vector<32x64xbf16> to vector<4x64xbf16>
    %c14 = arith.constant 14 : index
    %c0_91 = arith.constant 0 : index
    %116 = vector.load %arg10[%c14, %c0_91] : memref<86x64xbf16, #tpu.memory_space<vmem>>, vector<4x64xbf16>
    tpu.vector_store %arg10[%c14, %c0_91], %115 {strides = array<i32>} : memref<86x64xbf16, #tpu.memory_space<vmem>>, vector<4x64xbf16>,
    %117 = vector.extract_strided_slice %112 {offsets = [4, 0], sizes = [4, 64], strides = [1, 1]} : vector<32x64xbf16> to vector<4x64xbf16>
    %c20_92 = arith.constant 20 : index
    %c0_93 = arith.constant 0 : index
    %118 = vector.load %arg10[%c20_92, %c0_93] : memref<86x64xbf16, #tpu.memory_space<vmem>>, vector<4x64xbf16>
    tpu.vector_store %arg10[%c20_92, %c0_93], %117 {strides = array<i32>} : memref<86x64xbf16, #tpu.memory_space<vmem>>, vector<4x64xbf16>,
    %119 = vector.extract_strided_slice %112 {offsets = [8, 0], sizes = [4, 64], strides = [1, 1]} : vector<32x64xbf16> to vector<4x64xbf16>
    %c26 = arith.constant 26 : index
    %c0_94 = arith.constant 0 : index
    %120 = vector.load %arg10[%c26, %c0_94] : memref<86x64xbf16, #tpu.memory_space<vmem>>, vector<4x64xbf16>
    tpu.vector_store %arg10[%c26, %c0_94], %119 {strides = array<i32>} : memref<86x64xbf16, #tpu.memory_space<vmem>>, vector<4x64xbf16>,
    %121 = vector.extract_strided_slice %112 {offsets = [12, 0], sizes = [4, 64], strides = [1, 1]} : vector<32x64xbf16> to vector<4x64xbf16>
    %c32_95 = arith.constant 32 : index
    %c0_96 = arith.constant 0 : index
    %122 = vector.load %arg10[%c32_95, %c0_96] : memref<86x64xbf16, #tpu.memory_space<vmem>>, vector<4x64xbf16>
    tpu.vector_store %arg10[%c32_95, %c0_96], %121 {strides = array<i32>} : memref<86x64xbf16, #tpu.memory_space<vmem>>, vector<4x64xbf16>,
    %123 = vector.extract_strided_slice %112 {offsets = [16, 0], sizes = [4, 64], strides = [1, 1]} : vector<32x64xbf16> to vector<4x64xbf16>
    %c50 = arith.constant 50 : index
    %c0_97 = arith.constant 0 : index
    %124 = vector.load %arg10[%c50, %c0_97] : memref<86x64xbf16, #tpu.memory_space<vmem>>, vector<4x64xbf16>
    tpu.vector_store %arg10[%c50, %c0_97], %123 {strides = array<i32>} : memref<86x64xbf16, #tpu.memory_space<vmem>>, vector<4x64xbf16>,
    %125 = vector.extract_strided_slice %112 {offsets = [20, 0], sizes = [4, 64], strides = [1, 1]} : vector<32x64xbf16> to vector<4x64xbf16>
    %c56 = arith.constant 56 : index
    %c0_98 = arith.constant 0 : index
    %126 = vector.load %arg10[%c56, %c0_98] : memref<86x64xbf16, #tpu.memory_space<vmem>>, vector<4x64xbf16>
    tpu.vector_store %arg10[%c56, %c0_98], %125 {strides = array<i32>} : memref<86x64xbf16, #tpu.memory_space<vmem>>, vector<4x64xbf16>,
    %127 = vector.extract_strided_slice %112 {offsets = [24, 0], sizes = [4, 64], strides = [1, 1]} : vector<32x64xbf16> to vector<4x64xbf16>
    %c62_99 = arith.constant 62 : index
    %c0_100 = arith.constant 0 : index
    %128 = vector.load %arg10[%c62_99, %c0_100] : memref<86x64xbf16, #tpu.memory_space<vmem>>, vector<4x64xbf16>
    tpu.vector_store %arg10[%c62_99, %c0_100], %127 {strides = array<i32>} : memref<86x64xbf16, #tpu.memory_space<vmem>>, vector<4x64xbf16>,
    %129 = vector.extract_strided_slice %112 {offsets = [28, 0], sizes = [4, 64], strides = [1, 1]} : vector<32x64xbf16> to vector<4x64xbf16>
    %c68 = arith.constant 68 : index
    %c0_101 = arith.constant 0 : index
    %130 = vector.load %arg10[%c68, %c0_101] : memref<86x64xbf16, #tpu.memory_space<vmem>>, vector<4x64xbf16>
    tpu.vector_store %arg10[%c68, %c0_101], %129 {strides = array<i32>} : memref<86x64xbf16, #tpu.memory_space<vmem>>, vector<4x64xbf16>,
    %c0_102 = arith.constant 0 : index
    %c0_103 = arith.constant 0 : index
    %131 = vector.load %arg10[%c0_102, %c0_103] : memref<86x64xbf16, #tpu.memory_space<vmem>>, vector<72x64xbf16>
    %c288 = arith.constant 288 : index
    %c0_104 = arith.constant 0 : index
    %132 = vector.load %arg3[%c288, %c0_104] : memref<1952x64xbf16, #tpu.memory_space<vmem>>, vector<64x64xbf16>
    %cst_105 = arith.constant dense<0.000000e+00> : vector<72x64xf32>
    %133 = tpu.matmul %131, %132, %cst_105 {dimension_numbers = #tpu.dot_dimension_numbers<[1], [0], [0], [1], [0, 0, 1, 1], [], []>} : vector<72x64xbf16>, vector<64x64xbf16>, vector<72x64xf32> -> vector<72x64xf32>
    %c6 = arith.constant 6 : index
    %c0_106 = arith.constant 0 : index
    %134 = vector.load %arg10[%c6, %c0_106] : memref<86x64xbf16, #tpu.memory_space<vmem>>, vector<72x64xbf16>
    %c352 = arith.constant 352 : index
    %c0_107 = arith.constant 0 : index
    %135 = vector.load %arg3[%c352, %c0_107] : memref<1952x64xbf16, #tpu.memory_space<vmem>>, vector<64x64xbf16>
    %cst_108 = arith.constant dense<0.000000e+00> : vector<72x64xf32>
    %136 = tpu.matmul %134, %135, %cst_108 {dimension_numbers = #tpu.dot_dimension_numbers<[1], [0], [0], [1], [0, 0, 1, 1], [], []>} : vector<72x64xbf16>, vector<64x64xbf16>, vector<72x64xf32> -> vector<72x64xf32>
    %137 = arith.addf %133, %136 : vector<72x64xf32>
    %c12_109 = arith.constant 12 : index
    %c0_110 = arith.constant 0 : index
    %138 = vector.load %arg10[%c12_109, %c0_110] : memref<86x64xbf16, #tpu.memory_space<vmem>>, vector<72x64xbf16>
    %c416 = arith.constant 416 : index
    %c0_111 = arith.constant 0 : index
    %139 = vector.load %arg3[%c416, %c0_111] : memref<1952x64xbf16, #tpu.memory_space<vmem>>, vector<64x64xbf16>
    %cst_112 = arith.constant dense<0.000000e+00> : vector<72x64xf32>
    %140 = tpu.matmul %138, %139, %cst_112 {dimension_numbers = #tpu.dot_dimension_numbers<[1], [0], [0], [1], [0, 0, 1, 1], [], []>} : vector<72x64xbf16>, vector<64x64xbf16>, vector<72x64xf32> -> vector<72x64xf32>
    %141 = arith.addf %137, %140 : vector<72x64xf32>
    %c1_113 = arith.constant 1 : index
    %c0_114 = arith.constant 0 : index
    %142 = vector.load %arg10[%c1_113, %c0_114] : memref<86x64xbf16, #tpu.memory_space<vmem>>, vector<72x64xbf16>
    %c480 = arith.constant 480 : index
    %c0_115 = arith.constant 0 : index
    %143 = vector.load %arg3[%c480, %c0_115] : memref<1952x64xbf16, #tpu.memory_space<vmem>>, vector<64x64xbf16>
    %cst_116 = arith.constant dense<0.000000e+00> : vector<72x64xf32>
    %144 = tpu.matmul %142, %143, %cst_116 {dimension_numbers = #tpu.dot_dimension_numbers<[1], [0], [0], [1], [0, 0, 1, 1], [], []>} : vector<72x64xbf16>, vector<64x64xbf16>, vector<72x64xf32> -> vector<72x64xf32>
    %145 = arith.addf %141, %144 : vector<72x64xf32>
    %c7 = arith.constant 7 : index
    %c0_117 = arith.constant 0 : index
    %146 = vector.load %arg10[%c7, %c0_117] : memref<86x64xbf16, #tpu.memory_space<vmem>>, vector<72x64xbf16>
    %c544 = arith.constant 544 : index
    %c0_118 = arith.constant 0 : index
    %147 = vector.load %arg3[%c544, %c0_118] : memref<1952x64xbf16, #tpu.memory_space<vmem>>, vector<64x64xbf16>
    %cst_119 = arith.constant dense<0.000000e+00> : vector<72x64xf32>
    %148 = tpu.matmul %146, %147, %cst_119 {dimension_numbers = #tpu.dot_dimension_numbers<[1], [0], [0], [1], [0, 0, 1, 1], [], []>} : vector<72x64xbf16>, vector<64x64xbf16>, vector<72x64xf32> -> vector<72x64xf32>
    %149 = arith.addf %145, %148 : vector<72x64xf32>
    %c13 = arith.constant 13 : index
    %c0_120 = arith.constant 0 : index
    %150 = vector.load %arg10[%c13, %c0_120] : memref<86x64xbf16, #tpu.memory_space<vmem>>, vector<72x64xbf16>
    %c608 = arith.constant 608 : index
    %c0_121 = arith.constant 0 : index
    %151 = vector.load %arg3[%c608, %c0_121] : memref<1952x64xbf16, #tpu.memory_space<vmem>>, vector<64x64xbf16>
    %cst_122 = arith.constant dense<0.000000e+00> : vector<72x64xf32>
    %152 = tpu.matmul %150, %151, %cst_122 {dimension_numbers = #tpu.dot_dimension_numbers<[1], [0], [0], [1], [0, 0, 1, 1], [], []>} : vector<72x64xbf16>, vector<64x64xbf16>, vector<72x64xf32> -> vector<72x64xf32>
    %153 = arith.addf %149, %152 : vector<72x64xf32>
    %c2_123 = arith.constant 2 : index
    %c0_124 = arith.constant 0 : index
    %154 = vector.load %arg10[%c2_123, %c0_124] : memref<86x64xbf16, #tpu.memory_space<vmem>>, vector<72x64xbf16>
    %c672 = arith.constant 672 : index
    %c0_125 = arith.constant 0 : index
    %155 = vector.load %arg3[%c672, %c0_125] : memref<1952x64xbf16, #tpu.memory_space<vmem>>, vector<64x64xbf16>
    %cst_126 = arith.constant dense<0.000000e+00> : vector<72x64xf32>
    %156 = tpu.matmul %154, %155, %cst_126 {dimension_numbers = #tpu.dot_dimension_numbers<[1], [0], [0], [1], [0, 0, 1, 1], [], []>} : vector<72x64xbf16>, vector<64x64xbf16>, vector<72x64xf32> -> vector<72x64xf32>
    %157 = arith.addf %153, %156 : vector<72x64xf32>
    %c8 = arith.constant 8 : index
    %c0_127 = arith.constant 0 : index
    %158 = vector.load %arg10[%c8, %c0_127] : memref<86x64xbf16, #tpu.memory_space<vmem>>, vector<72x64xbf16>
    %c736 = arith.constant 736 : index
    %c0_128 = arith.constant 0 : index
    %159 = vector.load %arg3[%c736, %c0_128] : memref<1952x64xbf16, #tpu.memory_space<vmem>>, vector<64x64xbf16>
    %cst_129 = arith.constant dense<0.000000e+00> : vector<72x64xf32>
    %160 = tpu.matmul %158, %159, %cst_129 {dimension_numbers = #tpu.dot_dimension_numbers<[1], [0], [0], [1], [0, 0, 1, 1], [], []>} : vector<72x64xbf16>, vector<64x64xbf16>, vector<72x64xf32> -> vector<72x64xf32>
    %161 = arith.addf %157, %160 : vector<72x64xf32>
    %c14_130 = arith.constant 14 : index
    %c0_131 = arith.constant 0 : index
    %162 = vector.load %arg10[%c14_130, %c0_131] : memref<86x64xbf16, #tpu.memory_space<vmem>>, vector<72x64xbf16>
    %c800 = arith.constant 800 : index
    %c0_132 = arith.constant 0 : index
    %163 = vector.load %arg3[%c800, %c0_132] : memref<1952x64xbf16, #tpu.memory_space<vmem>>, vector<64x64xbf16>
    %cst_133 = arith.constant dense<0.000000e+00> : vector<72x64xf32>
    %164 = tpu.matmul %162, %163, %cst_133 {dimension_numbers = #tpu.dot_dimension_numbers<[1], [0], [0], [1], [0, 0, 1, 1], [], []>} : vector<72x64xbf16>, vector<64x64xbf16>, vector<72x64xf32> -> vector<72x64xf32>
    %165 = arith.addf %161, %164 : vector<72x64xf32>
    %c48 = arith.constant 48 : index
    %c0_134 = arith.constant 0 : index
    %166 = vector.load %arg4[%c48, %c0_134] : memref<80x189xbf16, #tpu.memory_space<vmem>>, vector<32x72xbf16>
    %167 = arith.truncf %165 : vector<72x64xf32> to vector<72x64xbf16>
    %cst_135 = arith.constant dense<0.000000e+00> : vector<32x64xf32>
    %168 = tpu.matmul %166, %167, %cst_135 {dimension_numbers = #tpu.dot_dimension_numbers<[1], [0], [0], [1], [0, 0, 1, 1], [], []>} : vector<32x72xbf16>, vector<72x64xbf16>, vector<32x64xf32> -> vector<32x64xf32>
    %c1_136 = arith.constant 1 : index
    %c64_137 = arith.constant 64 : index
    %169 = vector.load %arg5[%c1_136, %c64_137] : memref<2x480xf32, #tpu.memory_space<vmem>>, vector<1x64xf32>
    %170 = vector.broadcast %169 : vector<1x64xf32> to vector<32x64xf32>
    %171 = arith.addf %168, %170 : vector<32x64xf32>
    %172 = math.tanh %171 : vector<32x64xf32>
    %173 = arith.truncf %172 : vector<32x64xf32> to vector<32x64xbf16>
    %174 = vector.extract_strided_slice %173 {offsets = [0, 0], sizes = [2, 64], strides = [1, 1]} : vector<32x64xbf16> to vector<2x64xbf16>
    %c864 = arith.constant 864 : index
    %c0_138 = arith.constant 0 : index
    %175 = vector.load %arg3[%c864, %c0_138] : memref<1952x64xbf16, #tpu.memory_space<vmem>>, vector<64x64xbf16>
    %cst_139 = arith.constant dense<0.000000e+00> : vector<2x64xf32>
    %176 = tpu.matmul %174, %175, %cst_139 {dimension_numbers = #tpu.dot_dimension_numbers<[1], [0], [0], [1], [0, 0, 1, 1], [], []>} : vector<2x64xbf16>, vector<64x64xbf16>, vector<2x64xf32> -> vector<2x64xf32>
    %177 = vector.extract_strided_slice %173 {offsets = [2, 0], sizes = [2, 64], strides = [1, 1]} : vector<32x64xbf16> to vector<2x64xbf16>
    %c928 = arith.constant 928 : index
    %c0_140 = arith.constant 0 : index
    %178 = vector.load %arg3[%c928, %c0_140] : memref<1952x64xbf16, #tpu.memory_space<vmem>>, vector<64x64xbf16>
    %cst_141 = arith.constant dense<0.000000e+00> : vector<2x64xf32>
    %179 = tpu.matmul %177, %178, %cst_141 {dimension_numbers = #tpu.dot_dimension_numbers<[1], [0], [0], [1], [0, 0, 1, 1], [], []>} : vector<2x64xbf16>, vector<64x64xbf16>, vector<2x64xf32> -> vector<2x64xf32>
    %180 = arith.addf %176, %179 : vector<2x64xf32>
    %181 = vector.extract_strided_slice %173 {offsets = [4, 0], sizes = [2, 64], strides = [1, 1]} : vector<32x64xbf16> to vector<2x64xbf16>
    %c992 = arith.constant 992 : index
    %c0_142 = arith.constant 0 : index
    %182 = vector.load %arg3[%c992, %c0_142] : memref<1952x64xbf16, #tpu.memory_space<vmem>>, vector<64x64xbf16>
    %cst_143 = arith.constant dense<0.000000e+00> : vector<2x64xf32>
    %183 = tpu.matmul %181, %182, %cst_143 {dimension_numbers = #tpu.dot_dimension_numbers<[1], [0], [0], [1], [0, 0, 1, 1], [], []>} : vector<2x64xbf16>, vector<64x64xbf16>, vector<2x64xf32> -> vector<2x64xf32>
    %184 = arith.addf %180, %183 : vector<2x64xf32>
    %185 = vector.extract_strided_slice %173 {offsets = [6, 0], sizes = [2, 64], strides = [1, 1]} : vector<32x64xbf16> to vector<2x64xbf16>
    %c1056 = arith.constant 1056 : index
    %c0_144 = arith.constant 0 : index
    %186 = vector.load %arg3[%c1056, %c0_144] : memref<1952x64xbf16, #tpu.memory_space<vmem>>, vector<64x64xbf16>
    %cst_145 = arith.constant dense<0.000000e+00> : vector<2x64xf32>
    %187 = tpu.matmul %185, %186, %cst_145 {dimension_numbers = #tpu.dot_dimension_numbers<[1], [0], [0], [1], [0, 0, 1, 1], [], []>} : vector<2x64xbf16>, vector<64x64xbf16>, vector<2x64xf32> -> vector<2x64xf32>
    %188 = arith.addf %184, %187 : vector<2x64xf32>
    %189 = vector.extract_strided_slice %173 {offsets = [8, 0], sizes = [2, 64], strides = [1, 1]} : vector<32x64xbf16> to vector<2x64xbf16>
    %c1120 = arith.constant 1120 : index
    %c0_146 = arith.constant 0 : index
    %190 = vector.load %arg3[%c1120, %c0_146] : memref<1952x64xbf16, #tpu.memory_space<vmem>>, vector<64x64xbf16>
    %cst_147 = arith.constant dense<0.000000e+00> : vector<2x64xf32>
    %191 = tpu.matmul %189, %190, %cst_147 {dimension_numbers = #tpu.dot_dimension_numbers<[1], [0], [0], [1], [0, 0, 1, 1], [], []>} : vector<2x64xbf16>, vector<64x64xbf16>, vector<2x64xf32> -> vector<2x64xf32>
    %192 = arith.addf %188, %191 : vector<2x64xf32>
    %193 = vector.extract_strided_slice %173 {offsets = [10, 0], sizes = [2, 64], strides = [1, 1]} : vector<32x64xbf16> to vector<2x64xbf16>
    %c1184 = arith.constant 1184 : index
    %c0_148 = arith.constant 0 : index
    %194 = vector.load %arg3[%c1184, %c0_148] : memref<1952x64xbf16, #tpu.memory_space<vmem>>, vector<64x64xbf16>
    %cst_149 = arith.constant dense<0.000000e+00> : vector<2x64xf32>
    %195 = tpu.matmul %193, %194, %cst_149 {dimension_numbers = #tpu.dot_dimension_numbers<[1], [0], [0], [1], [0, 0, 1, 1], [], []>} : vector<2x64xbf16>, vector<64x64xbf16>, vector<2x64xf32> -> vector<2x64xf32>
    %196 = arith.addf %192, %195 : vector<2x64xf32>
    %197 = vector.extract_strided_slice %173 {offsets = [12, 0], sizes = [2, 64], strides = [1, 1]} : vector<32x64xbf16> to vector<2x64xbf16>
    %c1248 = arith.constant 1248 : index
    %c0_150 = arith.constant 0 : index
    %198 = vector.load %arg3[%c1248, %c0_150] : memref<1952x64xbf16, #tpu.memory_space<vmem>>, vector<64x64xbf16>
    %cst_151 = arith.constant dense<0.000000e+00> : vector<2x64xf32>
    %199 = tpu.matmul %197, %198, %cst_151 {dimension_numbers = #tpu.dot_dimension_numbers<[1], [0], [0], [1], [0, 0, 1, 1], [], []>} : vector<2x64xbf16>, vector<64x64xbf16>, vector<2x64xf32> -> vector<2x64xf32>
    %200 = arith.addf %196, %199 : vector<2x64xf32>
    %201 = vector.extract_strided_slice %173 {offsets = [14, 0], sizes = [2, 64], strides = [1, 1]} : vector<32x64xbf16> to vector<2x64xbf16>
    %c1312 = arith.constant 1312 : index
    %c0_152 = arith.constant 0 : index
    %202 = vector.load %arg3[%c1312, %c0_152] : memref<1952x64xbf16, #tpu.memory_space<vmem>>, vector<64x64xbf16>
    %cst_153 = arith.constant dense<0.000000e+00> : vector<2x64xf32>
    %203 = tpu.matmul %201, %202, %cst_153 {dimension_numbers = #tpu.dot_dimension_numbers<[1], [0], [0], [1], [0, 0, 1, 1], [], []>} : vector<2x64xbf16>, vector<64x64xbf16>, vector<2x64xf32> -> vector<2x64xf32>
    %204 = arith.addf %200, %203 : vector<2x64xf32>
    %205 = vector.extract_strided_slice %173 {offsets = [16, 0], sizes = [2, 64], strides = [1, 1]} : vector<32x64xbf16> to vector<2x64xbf16>
    %c1376 = arith.constant 1376 : index
    %c0_154 = arith.constant 0 : index
    %206 = vector.load %arg3[%c1376, %c0_154] : memref<1952x64xbf16, #tpu.memory_space<vmem>>, vector<64x64xbf16>
    %cst_155 = arith.constant dense<0.000000e+00> : vector<2x64xf32>
    %207 = tpu.matmul %205, %206, %cst_155 {dimension_numbers = #tpu.dot_dimension_numbers<[1], [0], [0], [1], [0, 0, 1, 1], [], []>} : vector<2x64xbf16>, vector<64x64xbf16>, vector<2x64xf32> -> vector<2x64xf32>
    %208 = arith.addf %204, %207 : vector<2x64xf32>
    %209 = vector.extract_strided_slice %173 {offsets = [18, 0], sizes = [2, 64], strides = [1, 1]} : vector<32x64xbf16> to vector<2x64xbf16>
    %c1440 = arith.constant 1440 : index
    %c0_156 = arith.constant 0 : index
    %210 = vector.load %arg3[%c1440, %c0_156] : memref<1952x64xbf16, #tpu.memory_space<vmem>>, vector<64x64xbf16>
    %cst_157 = arith.constant dense<0.000000e+00> : vector<2x64xf32>
    %211 = tpu.matmul %209, %210, %cst_157 {dimension_numbers = #tpu.dot_dimension_numbers<[1], [0], [0], [1], [0, 0, 1, 1], [], []>} : vector<2x64xbf16>, vector<64x64xbf16>, vector<2x64xf32> -> vector<2x64xf32>
    %212 = arith.addf %208, %211 : vector<2x64xf32>
    %213 = vector.extract_strided_slice %173 {offsets = [20, 0], sizes = [2, 64], strides = [1, 1]} : vector<32x64xbf16> to vector<2x64xbf16>
    %c1504 = arith.constant 1504 : index
    %c0_158 = arith.constant 0 : index
    %214 = vector.load %arg3[%c1504, %c0_158] : memref<1952x64xbf16, #tpu.memory_space<vmem>>, vector<64x64xbf16>
    %cst_159 = arith.constant dense<0.000000e+00> : vector<2x64xf32>
    %215 = tpu.matmul %213, %214, %cst_159 {dimension_numbers = #tpu.dot_dimension_numbers<[1], [0], [0], [1], [0, 0, 1, 1], [], []>} : vector<2x64xbf16>, vector<64x64xbf16>, vector<2x64xf32> -> vector<2x64xf32>
    %216 = arith.addf %212, %215 : vector<2x64xf32>
    %217 = vector.extract_strided_slice %173 {offsets = [22, 0], sizes = [2, 64], strides = [1, 1]} : vector<32x64xbf16> to vector<2x64xbf16>
    %c1568 = arith.constant 1568 : index
    %c0_160 = arith.constant 0 : index
    %218 = vector.load %arg3[%c1568, %c0_160] : memref<1952x64xbf16, #tpu.memory_space<vmem>>, vector<64x64xbf16>
    %cst_161 = arith.constant dense<0.000000e+00> : vector<2x64xf32>
    %219 = tpu.matmul %217, %218, %cst_161 {dimension_numbers = #tpu.dot_dimension_numbers<[1], [0], [0], [1], [0, 0, 1, 1], [], []>} : vector<2x64xbf16>, vector<64x64xbf16>, vector<2x64xf32> -> vector<2x64xf32>
    %220 = arith.addf %216, %219 : vector<2x64xf32>
    %221 = vector.extract_strided_slice %173 {offsets = [24, 0], sizes = [2, 64], strides = [1, 1]} : vector<32x64xbf16> to vector<2x64xbf16>
    %c1632 = arith.constant 1632 : index
    %c0_162 = arith.constant 0 : index
    %222 = vector.load %arg3[%c1632, %c0_162] : memref<1952x64xbf16, #tpu.memory_space<vmem>>, vector<64x64xbf16>
    %cst_163 = arith.constant dense<0.000000e+00> : vector<2x64xf32>
    %223 = tpu.matmul %221, %222, %cst_163 {dimension_numbers = #tpu.dot_dimension_numbers<[1], [0], [0], [1], [0, 0, 1, 1], [], []>} : vector<2x64xbf16>, vector<64x64xbf16>, vector<2x64xf32> -> vector<2x64xf32>
    %224 = arith.addf %220, %223 : vector<2x64xf32>
    %225 = vector.extract_strided_slice %173 {offsets = [26, 0], sizes = [2, 64], strides = [1, 1]} : vector<32x64xbf16> to vector<2x64xbf16>
    %c1696 = arith.constant 1696 : index
    %c0_164 = arith.constant 0 : index
    %226 = vector.load %arg3[%c1696, %c0_164] : memref<1952x64xbf16, #tpu.memory_space<vmem>>, vector<64x64xbf16>
    %cst_165 = arith.constant dense<0.000000e+00> : vector<2x64xf32>
    %227 = tpu.matmul %225, %226, %cst_165 {dimension_numbers = #tpu.dot_dimension_numbers<[1], [0], [0], [1], [0, 0, 1, 1], [], []>} : vector<2x64xbf16>, vector<64x64xbf16>, vector<2x64xf32> -> vector<2x64xf32>
    %228 = arith.addf %224, %227 : vector<2x64xf32>
    %229 = vector.extract_strided_slice %173 {offsets = [28, 0], sizes = [2, 64], strides = [1, 1]} : vector<32x64xbf16> to vector<2x64xbf16>
    %c1760 = arith.constant 1760 : index
    %c0_166 = arith.constant 0 : index
    %230 = vector.load %arg3[%c1760, %c0_166] : memref<1952x64xbf16, #tpu.memory_space<vmem>>, vector<64x64xbf16>
    %cst_167 = arith.constant dense<0.000000e+00> : vector<2x64xf32>
    %231 = tpu.matmul %229, %230, %cst_167 {dimension_numbers = #tpu.dot_dimension_numbers<[1], [0], [0], [1], [0, 0, 1, 1], [], []>} : vector<2x64xbf16>, vector<64x64xbf16>, vector<2x64xf32> -> vector<2x64xf32>
    %232 = arith.addf %228, %231 : vector<2x64xf32>
    %233 = vector.extract_strided_slice %173 {offsets = [30, 0], sizes = [2, 64], strides = [1, 1]} : vector<32x64xbf16> to vector<2x64xbf16>
    %c1824 = arith.constant 1824 : index
    %c0_168 = arith.constant 0 : index
    %234 = vector.load %arg3[%c1824, %c0_168] : memref<1952x64xbf16, #tpu.memory_space<vmem>>, vector<64x64xbf16>
    %cst_169 = arith.constant dense<0.000000e+00> : vector<2x64xf32>
    %235 = tpu.matmul %233, %234, %cst_169 {dimension_numbers = #tpu.dot_dimension_numbers<[1], [0], [0], [1], [0, 0, 1, 1], [], []>} : vector<2x64xbf16>, vector<64x64xbf16>, vector<2x64xf32> -> vector<2x64xf32>
    %236 = arith.addf %232, %235 : vector<2x64xf32>
    %c1_170 = arith.constant 1 : index
    %c128_171 = arith.constant 128 : index
    %237 = vector.load %arg5[%c1_170, %c128_171] : memref<2x480xf32, #tpu.memory_space<vmem>>, vector<1x64xf32>
    %238 = vector.broadcast %237 : vector<1x64xf32> to vector<2x64xf32>
    %239 = arith.addf %236, %238 : vector<2x64xf32>
    %240 = math.tanh %239 : vector<2x64xf32>
    %241 = arith.truncf %240 : vector<2x64xf32> to vector<2x64xbf16>
    %c1888 = arith.constant 1888 : index
    %c0_172 = arith.constant 0 : index
    %242 = vector.load %arg3[%c1888, %c0_172] : memref<1952x64xbf16, #tpu.memory_space<vmem>>, vector<64x64xbf16>
    %cst_173 = arith.constant dense<0.000000e+00> : vector<2x64xf32>
    %243 = tpu.matmul %241, %242, %cst_173 {dimension_numbers = #tpu.dot_dimension_numbers<[1], [0], [0], [1], [0, 0, 1, 1], [], []>} : vector<2x64xbf16>, vector<64x64xbf16>, vector<2x64xf32> -> vector<2x64xf32>
    %c1_174 = arith.constant 1 : index
    %c192_175 = arith.constant 192 : index
    %244 = vector.load %arg5[%c1_174, %c192_175] : memref<2x480xf32, #tpu.memory_space<vmem>>, vector<1x64xf32>
    %245 = vector.broadcast %244 : vector<1x64xf32> to vector<2x64xf32>
    %246 = arith.addf %243, %245 : vector<2x64xf32>
    %247 = math.tanh %246 : vector<2x64xf32>
    %c1_176 = arith.constant 1 : index
    %c256_177 = arith.constant 256 : index
    %248 = vector.load %arg5[%c1_176, %c256_177] : memref<2x480xf32, #tpu.memory_space<vmem>>, vector<1x64xf32>
    %249 = vector.broadcast %248 : vector<1x64xf32> to vector<2x64xf32>
    %250 = arith.mulf %247, %249 : vector<2x64xf32>
    %cst_178 = arith.constant dense<0.000000e+00> : vector<2xf32>
    %251 = vector.multi_reduction <add>, %250, %cst_178 [1] : vector<2x64xf32> to vector<2xf32>
    %252 = vector.shape_cast %251 : vector<2xf32> to vector<2x1xf32>
    %c1_179 = arith.constant 1 : index
    %c320 = arith.constant 320 : index
    %253 = vector.load %arg5[%c1_179, %c320] : memref<2x480xf32, #tpu.memory_space<vmem>>, vector<1x1xf32>
    %254 = vector.broadcast %253 : vector<1x1xf32> to vector<2x1xf32>
    %255 = arith.addf %252, %254 : vector<2x1xf32>
    %c0_180 = arith.constant 0 : index
    %c0_181 = arith.constant 0 : index
    %256 = vector.load %arg6[%c0_180, %c0_181] : memref<2x1xf32, #tpu.memory_space<vmem>>, vector<2x1xf32>
    tpu.vector_store %arg6[%c0_180, %c0_181], %255 {strides = array<i32>} : memref<2x1xf32, #tpu.memory_space<vmem>>, vector<2x1xf32>,
    return
  }
  func.func @transform_0(%arg0: i32) -> (i32, i32) {
    %c0_i32 = arith.constant 0 : i32
    %c0_i32_0 = arith.constant 0 : i32
    %c0_i32_1 = arith.constant 0 : i32
    return %c0_i32, %c0_i32_0 : i32, i32
  }
  func.func @transform_1(%arg0: i32) -> (i32, i32, i32) {
    %c0_i32 = arith.constant 0 : i32
    %c0_i32_0 = arith.constant 0 : i32
    %c0_i32_1 = arith.constant 0 : i32
    %c0_i32_2 = arith.constant 0 : i32
    return %c0_i32, %c0_i32_0, %c0_i32_1 : i32, i32, i32
  }
  func.func @transform_2(%arg0: i32) -> (i32, i32) {
    %c0_i32 = arith.constant 0 : i32
    %c0_i32_0 = arith.constant 0 : i32
    %c0_i32_1 = arith.constant 0 : i32
    return %c0_i32, %c0_i32_0 : i32, i32
  }
  func.func @transform_3(%arg0: i32) -> (i32, i32) {
    %c0_i32 = arith.constant 0 : i32
    %c0_i32_0 = arith.constant 0 : i32
    %c0_i32_1 = arith.constant 0 : i32
    return %c0_i32, %c0_i32_0 : i32, i32
  }
  func.func @transform_4(%arg0: i32) -> (i32, i32) {
    %c0_i32 = arith.constant 0 : i32
    %c0_i32_0 = arith.constant 0 : i32
    %c0_i32_1 = arith.constant 0 : i32
    return %c0_i32, %c0_i32_0 : i32, i32
  }
  func.func @transform_5(%arg0: i32) -> (i32, i32) {
    %c0_i32 = arith.constant 0 : i32
    %c0_i32_0 = arith.constant 0 : i32
    %c0_i32_1 = arith.constant 0 : i32
    return %c0_i32, %c0_i32_0 : i32, i32
  }
}

</mosaic_0001>

<bundles_post_ra>
// kernel: tpu_custom_call.1
= control target key start
LH: loop header
LB: loop body
LE: loop exit
PB: predicated region body
PF: predicated region fallthrough
CT: control target
= control target key end

     0   :  { %v13421_v1 = vmov 0   ;;  %vm201_vm0 = vcmask 1043456   ;;  %vm77_vm1 = vsmask.f32 7424  ;;  %vm191_vm2 = vcmask 588800   ;;  %s10650_s25 = smov 64   ;;  %s13415_s1 = inlined_call_operand.vmem [shape: bf16[3,72,512], index: 1, kind: input, shape index: {}]   ;;  %s13416_s0 = inlined_call_operand.vmem [shape: bf16[36,72], index: 0, kind: input, shape index: {}]   ;;  %s13417_s3 = inlined_call_operand.vmem [shape: bf16[80,189], index: 3, kind: input, shape index: {}]   ;;  %s13418_s2 = inlined_call_operand.vmem [shape: bf16[1952,64], index: 2, kind: input, shape index: {}]   ;;  %s13419_s4 = inlined_call_operand.vmem [shape: f32[2,480], index: 4, kind: input, shape index: {}]   ;;  %s13420_s5 = inlined_call_operand.vmem [shape: f32[2,1], index: 5, kind: output, shape index: {}]  }
   0x1   :  { %v10323_v0 = vld [vmem:[%s13415_s1 + $0x94] ss:$16 sps:$4 sm:$0xff]   ;;  %246 = vmatprep.mubr.bf16.mxu1 %v13421_v1  ;;  %480 = vmatprep.mubr.bf16.mxu0 %v13421_v1  ;;  %v10327_v3 = vld [vmem:[%s13415_s1 + $0x90] ss:$16 sps:$4 sm:$0xff]   ;;  %v10752_v23 = vld [vmem:[%s13416_s0 + $0x8] sm:$0xff]   ;;  %vm593_vm3 = vcmask 1046528  }
   0x2   :  { %v10325_v2 = vld [vmem:[%s13415_s1 + $0x4] ss:$16 sps:$4 sm:$0xff]   ;;  %214 = vmatprep.subr.bf16.mxu1 %v10323_v0  ;;  %v10328_v4 = vld [vmem:[%s13415_s1] ss:$16 sps:$4 sm:$0xff]   ;;  %v86_v29 = vshll.u32 %v10752_v23, 16  ;;  %v90_v41 = vshrl.u32 %v10752_v23, 16 }
   0x3   :  { %448 = vmatprep.subr.bf16.mxu0 %v10325_v2  ;;  %v10329_v5 = vld [vmem:[%s13415_s1 + $0xb4] ss:$16 sps:$4 sm:$0xff]   ;;  %215 = vmatpush1.bf16.msra.mxu1 %v10327_v3  ;;  %v10333_v7 = vld [vmem:[%s13415_s1 + $0xb0] ss:$16 sps:$4 sm:$0xff]   ;;  %v10355_v31 = vld [vmem:[%s13415_s1 + $0x9c] ss:$16 sps:$4 sm:$0xff]  }
   0x4   :  { %449 = vmatpush1.bf16.msra.mxu0 %v10328_v4  ;;  %v10331_v6 = vld [vmem:[%s13415_s1 + $0x24] ss:$16 sps:$4 sm:$0xff]   ;;  %216 = vmatprep.subr.bf16.mxu1 %v10329_v5  ;;  %v10334_v8 = vld [vmem:[%s13415_s1 + $0x20] ss:$16 sps:$4 sm:$0xff]   ;;  %v88_v33 = vrot.slane %v86_v29, 1  ;;  %v7810_v56 = vld [vmem:[%s13415_s1 + $0x118] sm:$0xff] }
   0x5   :  { %450 = vmatprep.subr.bf16.mxu0 %v10331_v6  ;;  %v10335_v9 = vld [vmem:[%s13415_s1 + $0xd4] ss:$16 sps:$4 sm:$0xff]   ;;  %v10339_v11 = vld [vmem:[%s13415_s1 + $0xd0] ss:$16 sps:$4 sm:$0xff]   ;;  %v10353_v38 = vld [vmem:[%s13415_s1 + $0x98] ss:$16 sps:$4 sm:$0xff]   ;;  %v7833_v61 = vcombine.high %v7810_v56, %v7810_v56  ;;  %v7832_v63 = vcombine.low %v7810_v56, %v7810_v56 }
   0x6   :  { %v10337_v10 = vld [vmem:[%s13415_s1 + $0x44] ss:$16 sps:$4 sm:$0xff]   ;;  %v10340_v12 = vld [vmem:[%s13415_s1 + $0x40] ss:$16 sps:$4 sm:$0xff]   ;;  %v10362_v43 = vld [vmem:[%s13415_s1 + $0xbc] ss:$16 sps:$4 sm:$0xff]   ;;  %v92_v46 = vor.u32 %v90_v41, %v88_v33 }
   0x7   :  { %217 = vmatpush1.bf16.msra.mxu1 %v10333_v7  ;;  %v10341_v13 = vld [vmem:[%s13415_s1 + $0xf4] ss:$16 sps:$4 sm:$0xff]   ;;  %v10345_v15 = vld [vmem:[%s13415_s1 + $0xf0] ss:$16 sps:$4 sm:$0xff]   ;;  %v10360_v45 = vld [vmem:[%s13415_s1 + $0xb8] ss:$16 sps:$4 sm:$0xff]  }
   0x8   :  { %451 = vmatpush1.bf16.msra.mxu0 %v10334_v8  ;;  %218 = vmatprep.subr.bf16.mxu1 %v10335_v9  ;;  %v10343_v14 = vld [vmem:[%s13415_s1 + $0x64] ss:$16 sps:$4 sm:$0xff]   ;;  %v10346_v16 = vld [vmem:[%s13415_s1 + $0x60] ss:$16 sps:$4 sm:$0xff]   ;;  %v10368_v49 = vld [vmem:[%s13415_s1 + $0xdc] ss:$16 sps:$4 sm:$0xff]  }
   0x9   :  { %452 = vmatprep.subr.bf16.mxu0 %v10337_v10  ;;  %v7809_v17 = vld [vmem:[%s13415_s1 + $0x110] sm:$0xff]  ;;  %v42_v18 = vld [vmem:[%s13415_s1 + $0x80] sm:$0xff]  ;;  %v10366_v51 = vld [vmem:[%s13415_s1 + $0xd8] ss:$16 sps:$4 sm:$0xff]   ;;  %v209_v6 = vsel %vm201_vm0, %v7832_v63, 0  ;;  %v595_v10 = vrot.slane %v10752_v23, 1 }
   0xa   :  { %v7830_v19 = vcombine.low %v7809_v17, %v7809_v17  ;;  %v21_v20 = vld [vmem:[%s13416_s0] sm:$0xf]  ;;  %v10744_v21 = vld [vmem:[%s13416_s0 + $0x4] sm:$0xf]  ;;  %v7831_v24 = vcombine.high %v7809_v17, %v7809_v17  ;;  %v7860_v25 = vcombine.high %v42_v18, %v42_v18  ;;  %v7859_v26 = vcombine.low %v42_v18, %v42_v18  ;;  %v10374_v54 = vld [vmem:[%s13415_s1 + $0xfc] ss:$16 sps:$4 sm:$0xff]  }
   0xb   :  { %219 = vmatpush1.bf16.msra.mxu1 %v10339_v11  ;;  %v10747_v22 = vcombine.low %v21_v20, %v10744_v21  ;;  %v10358_v34 = vld [vmem:[%s13415_s1 + $0x124] ss:$16 sps:$4 sm:$0xff]   ;;  %v10770_v36 = vld [vmem:[%s13416_s0 + $0x10] ss:$0 sps:$4 sm:$0x33]   ;;  %v43_v20 = vld [vmem:[%s13415_s1 + $0x88] sm:$0xff] }
   0xc   :  { %453 = vmatpush1.bf16.msra.mxu0 %v10340_v12  ;;  %220 = vmatprep.subr.bf16.mxu1 %v10341_v13  ;;  %v203_v30 = vsel %vm201_vm0, %v7830_v19, 0  ;;  %v437_v35 = vsel %vm201_vm0, %v7859_v26, 0  ;;  %v10356_v40 = vld [vmem:[%s13415_s1 + $0x120] ss:$16 sps:$4 sm:$0xff]   ;;  %v94_v42 = vshll.u32 %v10770_v36, 16  ;;  %v98_v58 = vshrl.u32 %v10770_v36, 16 }
   0xd   :  { %454 = vmatprep.subr.bf16.mxu0 %v10343_v14  ;;  %v79_v27 = vshrl.u32 %v10747_v22, 16  ;;  %v81_v28 = vshll.u32 %v10747_v22, 16  ;;  %v10365_v44 = vld [vmem:[%s13415_s1 + $0x144] ss:$16 sps:$4 sm:$0xff]   ;;  %v10363_v48 = vld [vmem:[%s13415_s1 + $0x140] ss:$16 sps:$4 sm:$0xff]  }
   0xe   :  { %v96_v47 = vrot.slane %v94_v42, 1  ;;  %v10371_v50 = vld [vmem:[%s13415_s1 + $0x164] ss:$16 sps:$4 sm:$0xff]   ;;  %v10369_v53 = vld [vmem:[%s13415_s1 + $0x160] ss:$16 sps:$4 sm:$0xff]   ;;  %vm1097_vm7 = vcmask 785408  }
   0xf   :  { %221 = vmatpush1.bf16.msra.mxu1 %v10345_v15  ;;  %v83_v32 = vrot.slane %v81_v28, 1  ;;  %v10378_v55 = vld [vmem:[%s13415_s1 + $0x184] ss:$16 sps:$4 sm:$0xff]   ;;  %v10372_v59 = vld [vmem:[%s13415_s1 + $0xf8] ss:$16 sps:$4 sm:$0xff]   ;;  %v597_v15 = vrot.slane %v10770_v36, 1 }
  0x10   :  { %455 = vmatpush1.bf16.msra.mxu0 %v10346_v16  ;;  %7834 = vmatprep.subr.msk.bf16.mxu1 %vm201_vm0, %v7831_v24  ;;  %v10811_v52 = vsel %vm77_vm1, %v92_v46, %v96_v47  ;;  %v7887_v57 = vld [vmem:[%s13415_s1 + $0x1a0] sm:$0xff]  ;;  %v100_v3 = vor.u32 %v98_v58, %v96_v47  ;;  %v10847_v4 = vld [vmem:[%s13416_s0 + $0x10] ss:$0 sps:$4 sm:$0x11]   ;;  %v10386_v8 = vld [vmem:[%s13415_s1 + $0xc] ss:$16 sps:$4 sm:$0xff]   ;;  %v7862_v24 = vcombine.high %v43_v20, %v43_v20 }
  0x11   :  { %7863 = vmatprep.subr.msk.bf16.mxu0 %vm201_vm0, %v7860_v25  ;;  %v84_v37 = vor.u32 %v83_v32, %v79_v27  ;;  %v10376_v60 = vld [vmem:[%s13415_s1 + $0x180] ss:$16 sps:$4 sm:$0xff]   ;;  %v7907_v62 = vcombine.high %v7887_v57, %v7887_v57  ;;  %v7906_v0 = vcombine.low %v7887_v57, %v7887_v57  ;;  %v10384_v12 = vld [vmem:[%s13415_s1 + $0x8] ss:$16 sps:$4 sm:$0xff]   ;;  %v10389_v13 = vld [vmem:[%s13415_s1 + $0x2c] ss:$16 sps:$4 sm:$0xff]   ;;  %v598_v17 = vsel %vm593_vm3, %v595_v10, %v597_v15 }
  0x12   :  { %v570_v2 = vld [vmem:[%s13416_s0] sm:$0xe]  ;;  %v10387_v14 = vld [vmem:[%s13415_s1 + $0x28] ss:$16 sps:$4 sm:$0xff]   ;;  %v10392_v16 = vld [vmem:[%s13415_s1 + $0x4c] ss:$16 sps:$4 sm:$0xff]   ;;  %v7861_v25 = vcombine.low %v43_v20, %v43_v20 }
  0x13   :  { %223 = vmatpush1.bf16.msra.mxu1 %v203_v30  ;;  %v10776_v39 = vsel %vm77_vm1, %v84_v37, %v88_v33  ;;  %v7889_v5 = vcombine.low %v570_v2, %v10744_v21  ;;  %v699_v7 = vsel %vm201_vm0, %v7906_v0, 0  ;;  %v10390_v18 = vld [vmem:[%s13415_s1 + $0x48] ss:$16 sps:$4 sm:$0xff]   ;;  %v10395_v19 = vld [vmem:[%s13415_s1 + $0x6c] ss:$16 sps:$4 sm:$0xff]   ;;  %vm1215_vm8 = vcmask 1040384  }
  0x14   :  { %457 = vmatpush1.bf16.msra.mxu0 %v437_v35  ;;  %275 = vmatprep.subr.bf16.mxu1 %v10355_v31  ;;  %v10393_v21 = vld [vmem:[%s13415_s1 + $0x68] ss:$16 sps:$4 sm:$0xff]   ;;  %v443_v26 = vsel %vm201_vm0, %v7861_v25, 0  ;;  %v10400_v27 = vld [vmem:[%s13415_s1 + $0x12c] ss:$16 sps:$4 sm:$0xff]   ;;  %vm1211_vm9 = vcmask 269312  }
  0x15   :  { %710 = vmatprep.subr.bf16.mxu0 %v10358_v34  ;;  %v594_v9 = vrot.slane %v7889_v5, 1  ;;  %v10398_v28 = vld [vmem:[%s13415_s1 + $0x128] ss:$16 sps:$4 sm:$0xff]   ;;  %v10403_v29 = vld [vmem:[%s13415_s1 + $0x14c] ss:$16 sps:$4 sm:$0xff]   ;;  %vm1328_vm10 = vcmask 257024  }
  0x16   :  { %7835 = vmatmul.mubr.msk.bf16.vlgmr.msra.gmra.mrb[0].mxu1 %vm191_vm2, %v10776_v39  ;;  %v10401_v30 = vld [vmem:[%s13415_s1 + $0x148] ss:$16 sps:$4 sm:$0xff]   ;;  %v10406_v31 = vld [vmem:[%s13415_s1 + $0x16c] ss:$16 sps:$4 sm:$0xff]   ;;  %vm936_vm4 = vsmask.f32 3328 }
  0x17   :  { %7864 = vmatmul.mubr.msk.bf16.vlgmr.msra.gmra.mrb[0].mxu0 %vm191_vm2, %v10747_v22  ;;  %276 = vmatpush1.bf16.msra.mxu1 %v10353_v38  ;;  %v596_v11 = vsel %vm593_vm3, %v594_v9, %v595_v10  ;;  %v10404_v32 = vld [vmem:[%s13415_s1 + $0x168] ss:$16 sps:$4 sm:$0xff]   ;;  %vm937_vm5 = vsmask.f32 7440  ;;  %vm1356_vm11 = vcmask 256000   ;;  %vm10649_vm12 = vmmov 0  }
  0x18   :  { %711 = vmatpush1.bf16.msra.mxu0 %v10356_v40  ;;  %256 = vmatprep.mubr.bf16.mxu1 %v13421_v1  ;;  %v7888_v33 = vld [vmem:[%s13415_s1 + $0x1a8] sm:$0xff]  ;;  %vm10951_vm6 = vmor %vm936_vm4, %vm937_vm5  ;;  %1331 = vst.msk [vmem:[#allocation3 + $0x8] sm:$0xf] %vm1328_vm10, %v13421_v1  ;;  %vm1625_vm13 = vcmask 261120   ;;  %vm1365_vm14 = vcmask 257027   ;;  %vm1379_vm15 = vcmask 257025  }
  0x19   :  { %490 = vmatprep.mubr.bf16.mxu0 %v13421_v1  ;;  %277 = vmatprep.subr.bf16.mxu1 %v10362_v43  ;;  %v10407_v34 = vld [vmem:[%s13415_s1 + $0x188] ss:$16 sps:$4 sm:$0xff]   ;;  %v7909_v35 = vcombine.high %v7888_v33, %v7888_v33  ;;  %v7908_v36 = vcombine.low %v7888_v33, %v7888_v33  ;;  %1332 = vst.msk [vmem:[#allocation3 + $0xc] sm:$0xf] %vm1328_vm10, %v13421_v1  ;;  %1329 = vst.msk [vmem:[#allocation3] sm:$0xf] %vm1328_vm10, %v13421_v1 }
  0x1a   :  { %712 = vmatprep.subr.bf16.mxu0 %v10365_v44  ;;  %1357 = vst.msk [vmem:[#allocation3 + $0x6c] sm:$0x7] %vm1356_vm11, %v13421_v1  ;;  %vm1381_vm4 = vcmask 253952   ;;  %vm1391_vm5 = vcmask 257026  }
  0x1b   :  { %278 = vmatpush1.bf16.msra.mxu1 %v10360_v45  ;;  %v705_v37 = vsel %vm201_vm0, %v7908_v36, 0  ;;  %1330 = vst.msk [vmem:[#allocation3 + $0x4] sm:$0xf] %vm1328_vm10, %v13421_v1  ;;  %1333 = vst.msk [vmem:[#allocation3 + $0x10] sm:$0xf] %vm1328_vm10, %v13421_v1 }
  0x1c   :  { %713 = vmatpush1.bf16.msra.mxu0 %v10363_v48  ;;  %279 = vmatprep.subr.bf16.mxu1 %v10368_v49  ;;  %1334 = vst.msk [vmem:[#allocation3 + $0x14] sm:$0xf] %vm1328_vm10, %v13421_v1  ;;  %1335 = vst.msk [vmem:[#allocation3 + $0x18] sm:$0xf] %vm1328_vm10, %v13421_v1 }
  0x1d   :  { %714 = vmatprep.subr.bf16.mxu0 %v10371_v50  ;;  %1336 = vst.msk [vmem:[#allocation3 + $0x1c] sm:$0xf] %vm1328_vm10, %v13421_v1  ;;  %1337 = vst.msk [vmem:[#allocation3 + $0x20] sm:$0xf] %vm1328_vm10, %v13421_v1 }
  0x1e   :  { %7836 = vmatmul.mubr.msk.bf16.gmra.mrb[4].mxu1 %vm191_vm2, %v10811_v52  ;;  %1338 = vst.msk [vmem:[#allocation3 + $0x24] sm:$0xf] %vm1328_vm10, %v13421_v1  ;;  %1339 = vst.msk [vmem:[#allocation3 + $0x28] sm:$0xf] %vm1328_vm10, %v13421_v1 }
  0x1f   :  { %7865 = vmatmul.mubr.msk.bf16.gmra.mrb[4].mxu0 %vm191_vm2, %v10752_v23  ;;  %280 = vmatpush1.bf16.msra.mxu1 %v10366_v51  ;;  %1340 = vst.msk [vmem:[#allocation3 + $0x2c] sm:$0xf] %vm1328_vm10, %v13421_v1  ;;  %1341 = vst.msk [vmem:[#allocation3 + $0x30] sm:$0xf] %vm1328_vm10, %v13421_v1 }
  0x20   :  { %715 = vmatpush1.bf16.msra.mxu0 %v10369_v53  ;;  %266 = vmatprep.mubr.bf16.mxu1 %v13421_v1  ;;  %1342 = vst.msk [vmem:[#allocation3 + $0x34] sm:$0xf] %vm1328_vm10, %v13421_v1  ;;  %1343 = vst.msk [vmem:[#allocation3 + $0x38] sm:$0xf] %vm1328_vm10, %v13421_v1 }
  0x21   :  { %500 = vmatprep.mubr.bf16.mxu0 %v13421_v1  ;;  %281 = vmatprep.subr.bf16.mxu1 %v10374_v54  ;;  %1344 = vst.msk [vmem:[#allocation3 + $0x3c] sm:$0xf] %vm1328_vm10, %v13421_v1  ;;  %1345 = vst.msk [vmem:[#allocation3 + $0x40] sm:$0xf] %vm1328_vm10, %v13421_v1 }
  0x22   :  { %716 = vmatprep.subr.bf16.mxu0 %v10378_v55  ;;  %1346 = vst.msk [vmem:[#allocation3 + $0x44] sm:$0xf] %vm1328_vm10, %v13421_v1  ;;  %1347 = vst.msk [vmem:[#allocation3 + $0x48] sm:$0xf] %vm1328_vm10, %v13421_v1 }
  0x23   :  { %282 = vmatpush1.bf16.msra.mxu1 %v10372_v59  ;;  %1348 = vst.msk [vmem:[#allocation3 + $0x4c] sm:$0xf] %vm1328_vm10, %v13421_v1  ;;  %1349 = vst.msk [vmem:[#allocation3 + $0x50] sm:$0xf] %vm1328_vm10, %v13421_v1 }
  0x24   :  { %717 = vmatpush1.bf16.msra.mxu0 %v10376_v60  ;;  %7838 = vmatprep.subr.msk.bf16.mxu1 %vm201_vm0, %v7833_v61  ;;  %1350 = vst.msk [vmem:[#allocation3 + $0x54] sm:$0xf] %vm1328_vm10, %v13421_v1  ;;  %1351 = vst.msk [vmem:[#allocation3 + $0x58] sm:$0xf] %vm1328_vm10, %v13421_v1 }
  0x25   :  { %7910 = vmatprep.subr.msk.bf16.mxu0 %vm201_vm0, %v7907_v62  ;;  %1352 = vst.msk [vmem:[#allocation3 + $0x5c] sm:$0xf] %vm1328_vm10, %v13421_v1  ;;  %1353 = vst.msk [vmem:[#allocation3 + $0x60] sm:$0xf] %vm1328_vm10, %v13421_v1 }
  0x26   :  { %7837 = vmatmul.mubr.msk.bf16.gmra.mrb[8].mxu1 %vm191_vm2, %v100_v3  ;;  %1354 = vst.msk [vmem:[#allocation3 + $0x64] sm:$0xf] %vm1328_vm10, %v13421_v1  ;;  %1355 = vst.msk [vmem:[#allocation3 + $0x68] sm:$0xf] %vm1328_vm10, %v13421_v1 }
  0x27   :  { %7866 = vmatmul.mubr.msk.bf16.gmra.mrb[8].mxu0 %vm191_vm2, %v10847_v4  ;;  %284 = vmatpush1.bf16.msra.mxu1 %v209_v6 }
  0x28   :  { %719 = vmatpush1.bf16.msra.mxu0 %v699_v7  ;;  %307 = vmatprep.mubr.bf16.mxu1 %v13421_v1 }
  0x29   :  { %742 = vmatprep.mubr.bf16.mxu0 %v13421_v1  ;;  %509 = vmatprep.subr.bf16.mxu1 %v10386_v8 }
  0x2e   :  { %7839 = vmatmul.mubr.msk.bf16.vlgmr.msra.gmra.mrb[12].mxu1 %vm191_vm2, %v10776_v39 }
  0x2f   :  { %7911 = vmatmul.mubr.msk.bf16.vlgmr.msra.gmra.mrb[0].mxu0 %vm191_vm2, %v596_v11  ;;  %510 = vmatpush1.bf16.msra.mxu1 %v10384_v12  ;;  %v13439_v12 = vmov 0 }
  0x30   :  { %317 = vmatprep.mubr.bf16.mxu1 %v13421_v1  ;;  %752 = vmatprep.mubr.bf16.mxu0 %v13421_v1  ;;  %v13440_v12 = vsel %vm10951_vm6, 4294967295, %v13439_v12 }
  0x31   :  { %511 = vmatprep.subr.bf16.mxu1 %v10389_v13  ;;  %13441 = vst [vmem:[#allocation6_spill] sm:$0xff] %v13440_v12 }
  0x33   :  { %512 = vmatpush1.bf16.msra.mxu1 %v10387_v14 }
  0x34   :  { %513 = vmatprep.subr.bf16.mxu1 %v10392_v16 }
  0x36   :  { %7840 = vmatmul.mubr.msk.bf16.gmra.mrb[16].mxu1 %vm191_vm2, %v10811_v52 }
  0x37   :  { %7912 = vmatmul.mubr.msk.bf16.gmra.mrb[4].mxu0 %vm191_vm2, %v598_v17  ;;  %514 = vmatpush1.bf16.msra.mxu1 %v10390_v18 }
  0x38   :  { %327 = vmatprep.mubr.bf16.mxu1 %v13421_v1  ;;  %762 = vmatprep.mubr.bf16.mxu0 %v13421_v1 }
  0x39   :  { %515 = vmatprep.subr.bf16.mxu1 %v10395_v19 }
  0x3b   :  { %516 = vmatpush1.bf16.msra.mxu1 %v10393_v21 }
  0x3c   :  { %7867 = vmatprep.subr.msk.bf16.mxu1 %vm201_vm0, %v7862_v24 }
  0x3e   :  { %7841 = vmatmul.mubr.msk.bf16.gmra.mrb[20].mxu1 %vm191_vm2, %v100_v3 }
  0x3f   :  { %7913 = vmatmul.mubr.msk.bf16.gmra.mrb[8].mxu0 %vm191_vm2, %v597_v15  ;;  %518 = vmatpush1.bf16.msra.mxu1 %v443_v26 }
  0x40   :  { %541 = vmatprep.mubr.bf16.mxu1 %v13421_v1  ;;  %771 = vmatprep.subr.bf16.mxu1 %v10400_v27 }
  0x46   :  { %7868 = vmatmul.mubr.msk.bf16.vlgmr.msra.gmra.mrb[12].mxu1 %vm191_vm2, %v10747_v22  ;;  %v10409_v22 = vld [vmem:[%s13415_s1 + $0x18c] ss:$16 sps:$4 sm:$0xff]   ;;  %s10647_s1 = smov 96  }
  0x47   :  { %772 = vmatpush1.bf16.msra.mxu1 %v10398_v28  ;;  %551 = vmatprep.mubr.bf16.mxu1 %v13421_v1 }
  0x48   :  { %773 = vmatprep.subr.bf16.mxu1 %v10403_v29 }
  0x4b   :  { %774 = vmatpush1.bf16.msra.mxu1 %v10401_v30 }
  0x4c   :  { %775 = vmatprep.subr.bf16.mxu1 %v10406_v31 }
  0x4e   :  { %7869 = vmatmul.mubr.msk.bf16.gmra.mrb[16].mxu1 %vm191_vm2, %v10752_v23 }
  0x4f   :  { %776 = vmatpush1.bf16.msra.mxu1 %v10404_v32  ;;  %561 = vmatprep.mubr.bf16.mxu1 %v13421_v1 }
  0x50   :  { %777 = vmatprep.subr.bf16.mxu1 %v10409_v22 }
  0x53   :  { %778 = vmatpush1.bf16.msra.mxu1 %v10407_v34 }
  0x54   :  { %7914 = vmatprep.subr.msk.bf16.mxu1 %vm201_vm0, %v7909_v35 }
  0x56   :  { %7870 = vmatmul.mubr.msk.bf16.gmra.mrb[20].mxu1 %vm191_vm2, %v10847_v4 }
  0x57   :  { %780 = vmatpush1.bf16.msra.mxu1 %v705_v37  ;;  %803 = vmatprep.mubr.bf16.mxu1 %v13421_v1 }
  0x5e   :  { %7915 = vmatmul.mubr.msk.bf16.vlgmr.msra.gmra.mrb[12].mxu1 %vm191_vm2, %v596_v11 }
  0x5f   :  { %813 = vmatprep.mubr.bf16.mxu1 %v13421_v1 }
  0x66   :  { %7916 = vmatmul.mubr.msk.bf16.gmra.mrb[16].mxu1 %vm191_vm2, %v598_v17 }
  0x67   :  { %823 = vmatprep.mubr.bf16.mxu1 %v13421_v1 }
  0x6e   :  { %7917 = vmatmul.mubr.msk.bf16.gmra.mrb[20].mxu1 %vm191_vm2, %v597_v15 }
  0x6f   :  { %1262 = vmatprep.mubr.bf16.mxu1 %v13421_v1 }
  0xe9   :  { %v248_v23 = vpop.f32.mrb[0].mxu1 }
  0xea   :  { %v250_v38 = vpop.f32.mrb[1].mxu1 }
  0xeb   :  { %v252_v39 = vpop.f32.mrb[2].mxu1 }
  0xec   :  { %v254_v40 = vpop.f32.mrb[3].mxu1 }
  0xf1   :  { %v258_v41 = vpop.f32.mrb[4].mxu1 }
  0xf2   :  { %v260_v42 = vpop.f32.mrb[5].mxu1 }
  0xf3   :  { %v262_v43 = vpop.f32.mrb[6].mxu1 }
  0xf4   :  { %v264_v44 = vpop.f32.mrb[7].mxu1 }
  0xf9   :  { %v268_v45 = vpop.f32.mrb[8].mxu1 }
  0xfa   :  { %v270_v46 = vpop.f32.mrb[9].mxu1 }
  0xfb   :  { %v272_v47 = vpop.f32.mrb[10].mxu1 }
  0xfc   :  { %v273_v48 = vpop.f32.mrb[11].mxu1 }
 0x102   :  { %v744_v49 = vpop.f32.mrb[0].mxu0 }
 0x103   :  { %v9721_v50 = vadd.f32 %v744_v49, %v248_v23  ;;  %v746_v51 = vpop.f32.mrb[1].mxu0 }
 0x104   :  { %v9722_v52 = vadd.f32 %v746_v51, %v250_v38  ;;  %v748_v53 = vpop.f32.mrb[2].mxu0 }
 0x105   :  { %v9723_v54 = vadd.f32 %v748_v53, %v252_v39  ;;  %v750_v55 = vpop.f32.mrb[3].mxu0 }
 0x106   :  { %v8392_v56 = vpack.c.bf16 %v9722_v52, %v9721_v50  ;;  %v9724_v57 = vadd.f32 %v750_v55, %v254_v40 }
 0x108   :  { %v8394_v58 = vpack.c.bf16 %v9724_v57, %v9723_v54  ;;  %v940_v59 = vshrl.u32 %v8392_v56, 16  ;;  %v943_v60 = vshll.u32 %v8392_v56, 16 }
 0x10a   :  { %v754_v61 = vpop.f32.mrb[4].mxu0  ;;  %v942_v62 = vrot.slane %v940_v59, 4  ;;  %v945_v63 = vrot.slane %v943_v60, 5  ;;  %v949_v0 = vshll.u32 %v8394_v58, 16  ;;  %v967_v2 = vshrl.u32 %v8394_v58, 16 }
 0x10b   :  { %v9725_v3 = vadd.f32 %v754_v61, %v258_v41  ;;  %v756_v4 = vpop.f32.mrb[5].mxu0 }
 0x10c   :  { %v9726_v5 = vadd.f32 %v756_v4, %v260_v42  ;;  %v758_v6 = vpop.f32.mrb[6].mxu0  ;;  %v946_v7 = vor.u32 %v945_v63, %v942_v62  ;;  %v951_v8 = vrot.slane %v949_v0, 5  ;;  %v969_v9 = vrot.slane %v967_v2, 4 }
 0x10d   :  { %v9727_v10 = vadd.f32 %v758_v6, %v262_v43  ;;  %v760_v11 = vpop.f32.mrb[7].mxu0 }
 0x10e   :  { %v8396_v13 = vpack.c.bf16 %v9726_v5, %v9725_v3  ;;  %v9728_v14 = vadd.f32 %v760_v11, %v264_v44  ;;  %v947_v15 = vrot.slane %v946_v7, 4  ;;  %v970_v16 = vor.u32 %v969_v9, %v951_v8 }
 0x110   :  { %v10955_v17 = vpack.c.bf16 %v9728_v14, %v9727_v10  ;;  %v952_v18 = vsel %vm10951_vm6, %v947_v15, %v951_v8  ;;  %v973_v19 = vshll.u32 %v8396_v13, 16  ;;  %v987_v21 = vshrl.u32 %v8396_v13, 16 }
 0x111   :  { %v10959_v20 = vmax.bf16 %v8392_v56, %v952_v18  ;;  %v971_v25 = vrot.slane %v970_v16, 4 }
 0x112   :  { %v764_v24 = vpop.f32.mrb[8].mxu0  ;;  %v975_v26 = vrot.slane %v973_v19, 5  ;;  %v989_v29 = vrot.slane %v987_v21, 4  ;;  %v993_v30 = vshll.u32 %v10955_v17, 16  ;;  %v1007_v41 = vshrl.u32 %v10955_v17, 16 }
 0x113   :  { %v9729_v27 = vadd.f32 %v764_v24, %v268_v45  ;;  %v766_v28 = vpop.f32.mrb[9].mxu0  ;;  %1065 = vrot.lane.b32.xlu0 %v10959_v20, %s10647_s1 }
 0x114   :  { %v9730_v31 = vadd.f32 %v766_v28, %v270_v46  ;;  %v976_v32 = vsel %vm10951_vm6, %v971_v25, %v975_v26  ;;  %v768_v22 = vpop.f32.mrb[10].mxu0  ;;  %v990_v33 = vor.u32 %v989_v29, %v975_v26  ;;  %v995_v23 = vrot.slane %v993_v30, 5 }
 0x115   :  { %v10966_v34 = vmax.bf16 %v8394_v58, %v976_v32  ;;  %v769_v35 = vpop.f32.mrb[11].mxu0  ;;  %v1009_v50 = vrot.slane %v1007_v41, 4 }
 0x116   :  { %v8400_v36 = vpack.c.bf16 %v9730_v31, %v9729_v27  ;;  %v991_v37 = vrot.slane %v990_v33, 4 }
 0x117   :  { %1069 = vrot.lane.b32.xlu1 %v10966_v34, %s10647_s1  ;;  %v1010_v59 = vor.u32 %v1009_v50, %v995_v23 }
 0x118   :  { %924 = vst [vmem:[#allocation2 + $0x40] sm:$0x11] %v8400_v36  ;;  %v996_v38 = vsel %vm10951_vm6, %v991_v37, %v995_v23 }
 0x119   :  { %v10972_v39 = vmax.bf16 %v8396_v13, %v996_v38  ;;  %v1011_v7 = vrot.slane %v1010_v59, 4 }
 0x11b   :  { %1073 = vrot.lane.b32.xlu0 %v10972_v39, %s10647_s1 }
 0x11f   :  { %v934_v45 = vld [vmem:[#allocation2 + $0x40] sm:$0x11] }
 0x120   :  { %v1013_v51 = vshll.u32 %v934_v45, 16  ;;  %v1027_v26 = vshrl.u32 %v934_v45, 16 }
 0x122   :  { %v1015_v2 = vrot.slane %v1013_v51, 5  ;;  %v1053_v33 = vmax.bf16 %v1027_v26, %v934_v45 }
 0x124   :  { %v1016_v11 = vsel %vm10951_vm6, %v1011_v7, %v1015_v2 }
 0x125   :  { %v10988_v24 = vmax.bf16 %v10955_v17, %v1016_v11 }
 0x131   :  { %v805_v40 = vpop.f32.mrb[12].mxu1 }
 0x132   :  { %v807_v42 = vpop.f32.mrb[13].mxu1 }
 0x133   :  { %v8393_v43 = vpack.c.bf16 %v807_v42, %v805_v40  ;;  %v809_v44 = vpop.f32.mrb[14].mxu1 }
 0x134   :  { %v811_v46 = vpop.f32.mrb[15].mxu1 }
 0x135   :  { %v8395_v47 = vpack.c.bf16 %v811_v46, %v809_v44  ;;  %v954_v48 = vshrl.u32 %v8393_v43, 16  ;;  %v957_v49 = vshll.u32 %v8393_v43, 16 }
 0x137   :  { %v956_v52 = vrot.slane %v954_v48, 4  ;;  %v959_v53 = vrot.slane %v957_v49, 5  ;;  %v963_v54 = vshll.u32 %v8395_v47, 16  ;;  %v977_v55 = vshrl.u32 %v8395_v47, 16 }
 0x139   :  { %v815_v56 = vpop.f32.mrb[16].mxu1  ;;  %v960_v57 = vor.u32 %v959_v53, %v956_v52  ;;  %v965_v58 = vrot.slane %v963_v54, 5  ;;  %v979_v60 = vrot.slane %v977_v55, 4 }
 0x13a   :  { %v817_v61 = vpop.f32.mrb[17].mxu1 }
 0x13b   :  { %v8397_v62 = vpack.c.bf16 %v817_v61, %v815_v56  ;;  %v819_v63 = vpop.f32.mrb[18].mxu1  ;;  %v961_v0 = vrot.slane %v960_v57, 4  ;;  %v980_v3 = vor.u32 %v979_v60, %v965_v58 }
 0x13c   :  { %v821_v4 = vpop.f32.mrb[19].mxu1 }
 0x13d   :  { %v8399_v5 = vpack.c.bf16 %v821_v4, %v819_v63  ;;  %v966_v6 = vsel %vm10951_vm6, %v961_v0, %v965_v58  ;;  %v983_v8 = vshll.u32 %v8397_v62, 16  ;;  %v997_v10 = vshrl.u32 %v8397_v62, 16 }
 0x13e   :  { %v10979_v9 = vmax.bf16 %v8393_v43, %v966_v6  ;;  %v981_v13 = vrot.slane %v980_v3, 4 }
 0x13f   :  { %v985_v14 = vrot.slane %v983_v8, 5  ;;  %v999_v15 = vrot.slane %v997_v10, 4  ;;  %v1003_v16 = vshll.u32 %v8399_v5, 16  ;;  %v1017_v30 = vshrl.u32 %v8399_v5, 16 }
 0x140   :  { %1067 = vrot.lane.b32.xlu0 %v10979_v9, %s10647_s1 }
 0x141   :  { %v825_v18 = vpop.f32.mrb[20].mxu1  ;;  %v986_v19 = vsel %vm10951_vm6, %v981_v13, %v985_v14  ;;  %v1000_v27 = vor.u32 %v999_v15, %v985_v14  ;;  %v1005_v22 = vrot.slane %v1003_v16, 5  ;;  %v1019_v36 = vrot.slane %v1017_v30, 4 }
 0x142   :  { %v827_v21 = vpop.f32.mrb[21].mxu1  ;;  %v10990_v25 = vmax.bf16 %v8395_v47, %v986_v19  ;;  %v1217_v30 = vsel %vm1215_vm8, 65535, %v13421_v1  ;;  %vm3920_vm8 = vcmask 1044480  }
 0x143   :  { %v8401_v28 = vpack.c.bf16 %v827_v21, %v825_v18  ;;  %v829_v29 = vpop.f32.mrb[22].mxu1  ;;  %v1001_v32 = vrot.slane %v1000_v27, 4  ;;  %v1020_v37 = vor.u32 %v1019_v36, %v1005_v22 }
 0x144   :  { %v830_v31 = vpop.f32.mrb[23].mxu1  ;;  %1077 = vrot.lane.b32.xlu0 %v10988_v24, %s10647_s1  ;;  %1071 = vrot.lane.b32.xlu1 %v10990_v25, %s10647_s1 }
 0x145   :  { %925 = vst [vmem:[#allocation2 + $0x48] sm:$0x11] %v8401_v28  ;;  %v1006_v17 = vsel %vm10951_vm6, %v1001_v32, %v1005_v22  ;;  %v1021_v40 = vrot.slane %v1020_v37, 4 }
 0x146   :  { %v10998_v35 = vmax.bf16 %v8397_v62, %v1006_v17 }
 0x148   :  { %1081 = vrot.lane.b32.xlu0 %v1053_v33, %s10647_s1  ;;  %1075 = vrot.lane.b32.xlu1 %v10998_v35, %s10647_s1 }
 0x14c   :  { %v935_v23 = vld [vmem:[#allocation2 + $0x48] sm:$0x11] }
 0x14d   :  { %v1023_v38 = vshll.u32 %v935_v23, 16  ;;  %v1031_v44 = vshrl.u32 %v935_v23, 16 }
 0x14f   :  { %v1025_v41 = vrot.slane %v1023_v38, 5  ;;  %v1054_v45 = vmax.bf16 %v1031_v44, %v935_v23 }
 0x151   :  { %v1026_v42 = vsel %vm10951_vm6, %v1021_v40, %v1025_v41 }
 0x152   :  { %v11005_v43 = vmax.bf16 %v8399_v5, %v1026_v42 }
 0x154   :  { %1079 = vrot.lane.b32.xlu1 %v11005_v43, %s10647_s1 }
 0x158   :  { %1083 = vrot.lane.b32.xlu1 %v1054_v45, %s10647_s1 }
 0x185   :  { %v1066_v46 = vpop.permute.xlu0 %1065 }
 0x186   :  { %v1085_v50 = vrot.slane %v1066_v46, 4 }
 0x189   :  { %v1070_v48 = vpop.permute.xlu1 %1069 }
 0x18a   :  { %v1087_v54 = vrot.slane %v1070_v48, 4 }
 0x18d   :  { %v1074_v47 = vpop.permute.xlu0 %1073 }
 0x18e   :  { %v1089_v3 = vrot.slane %v1074_v47, 4 }
 0x1b2   :  { %v1068_v49 = vpop.permute.xlu0 %1067 }
 0x1b3   :  { %v1086_v51 = vrot.slane %v1068_v49, 4 }
 0x1b5   :  { %v1096_v52 = vsel %vm201_vm0, %v1085_v50, %v1086_v51  ;;  %v1099_v29 = vsel %vm1097_vm7, %v1068_v49, %v1086_v51  ;;  %v10414_v49 = vld [vmem:[%s13418_s2 + $0x8] sm:$0xff]   ;;  %v10415_v50 = vld [vmem:[#allocation3] sm:$0xff]   ;;  %v1136_v51 = vlaneseq }
 0x1b6   :  { %v1072_v53 = vpop.permute.xlu1 %1071  ;;  %v1098_v56 = vsel %vm1097_vm7, %v1066_v46, %v1096_v52  ;;  %v1078_v2 = vpop.permute.xlu0 %1077  ;;  %v1123_v17 = vmax.bf16 %v1099_v29, %v10979_v9 }
 0x1b7   :  { %v1088_v55 = vrot.slane %v1072_v53, 4  ;;  %v1122_v59 = vmax.bf16 %v1098_v56, %v10959_v20  ;;  %v1091_v6 = vrot.slane %v1078_v2, 4  ;;  %v1137_v52 = vshrl.u32 %v1136_v51, 7 }
 0x1b9   :  { %v1100_v57 = vsel %vm201_vm0, %v1087_v54, %v1088_v55  ;;  %v1102_v26 = vsel %vm1097_vm7, %v1072_v53, %v1088_v55  ;;  %v1138_v53 = vsub.s32 0, %v1137_v52  ;;  %v1134_v54 = vld [vmem:[%s13419_s4] ss:$2 sm:$0xf]  ;;  %v1142_v55 = vsub.s32 1, %v1137_v52 }
 0x1ba   :  { %v1101_v58 = vsel %vm1097_vm7, %v1070_v48, %v1100_v57  ;;  %v1076_v63 = vpop.permute.xlu1 %1075  ;;  %v1082_v8 = vpop.permute.xlu0 %1081  ;;  %v13428_v48 = vmov 0.0  }
 0x1bb   :  { %v1124_v60 = vmax.bf16 %v1101_v58, %v10966_v34  ;;  %v1090_v0 = vrot.slane %v1076_v63, 4  ;;  %v1093_v13 = vrot.slane %v1082_v8, 4  ;;  %8803 = vmatprep.subr.bf16.mxu0 %v13428_v48  ;;  %8807 = vmatprep.mubr.msk.bf16.mxu0 %vm10649_vm12, %v13428_v48  ;;  %v1139_v56 = vrot.slane %v1134_v54, %v1138_v53 }
 0x1bc   :  { %v1143_v57 = vrot.slane %v1134_v54, %v1142_v55 }
 0x1bd   :  { %v7932_v61 = vcombine.high %v1122_v59, %v1124_v60  ;;  %v7931_v62 = vcombine.low %v1122_v59, %v1124_v60  ;;  %v1103_v4 = vsel %vm201_vm0, %v1089_v3, %v1090_v0  ;;  %v1105_v23 = vsel %vm1097_vm7, %v1076_v63, %v1090_v0 }
 0x1be   :  { %v1104_v10 = vsel %vm1097_vm7, %v1074_v47, %v1103_v4  ;;  %v1127_v41 = vmax.bf16 %v1105_v23, %v10998_v35  ;;  %v10413_v35 = vld [vmem:[%s13418_s2] sm:$0xff]   ;;  %v1146_v3 = vsub.s32 2, %v1137_v52  ;;  %v1150_v4 = vsub.s32 3, %v1137_v52 }
 0x1bf   :  { %1230 = vmatprep.subr.bf16.mxu1 %v7932_v61  ;;  %v1126_v15 = vmax.bf16 %v1104_v10, %v10972_v39  ;;  %v1125_v39 = vmax.bf16 %v1102_v26, %v10990_v25  ;;  %v10412_v25 = vld [vmem:[%s13417_s3] ss:$8 sps:$4 sm:$0xff]   ;;  %8804 = vmatpush3.bf16.msra.mxu0 %v10413_v35  ;;  %v10421_v10 = vld [vmem:[%s13418_s2 + $0x18] sm:$0xff]  }
 0x1c0   :  { %1231 = vmatpush1.bf16.msra.mxu1 %v7931_v62  ;;  %8805 = vmatprep.subr.bf16.mxu0 %v13428_v48 }
 0x1c1   :  { %v7934_v40 = vcombine.high %v1123_v17, %v1125_v39  ;;  %v7933_v42 = vcombine.low %v1123_v17, %v1125_v39 }
 0x1c3   :  { %8806 = vmatpush3.bf16.msra.mxu0 %v10414_v49 }
 0x1c4   :  { %8859 = vmatprep.subr.bf16.mxu0 %v13428_v48 }
 0x1c6   :  { %v1080_v5 = vpop.permute.xlu1 %1079  ;;  %8808 = vmatmul.mubr.msk.bf16.vlgmr.msra.gmra.mrb[12].mxu0 %vm1625_vm13, %v10415_v50 }
 0x1c7   :  { %v1092_v7 = vrot.slane %v1080_v5, 4  ;;  %8811 = vmatprep.mubr.msk.bf16.mxu0 %vm10649_vm12, %v13428_v48 }
 0x1c9   :  { %v1106_v20 = vsel %vm201_vm0, %v1091_v6, %v1092_v7  ;;  %v1108_v32 = vsel %vm1097_vm7, %v1080_v5, %v1092_v7  ;;  %v10419_v5 = vld [vmem:[%s13418_s2 + $0x10] sm:$0xff]   ;;  %v10420_v6 = vld [vmem:[%s13418_s2 + $0x20] sm:$0xff]   ;;  %v1147_v7 = vrot.slane %v1134_v54, %v1146_v3 }
 0x1ca   :  { %v1084_v11 = vpop.permute.xlu1 %1083  ;;  %v1107_v34 = vsel %vm1097_vm7, %v1078_v2, %v1106_v20  ;;  %8860 = vmatpush3.bf16.msra.mxu0 %v10420_v6 }
 0x1cb   :  { %v1094_v14 = vrot.slane %v1084_v11, 4  ;;  %v1128_v16 = vmax.bf16 %v1107_v34, %v10988_v24  ;;  %8861 = vmatprep.subr.bf16.mxu0 %v13428_v48 }
 0x1cd   :  { %v1109_v18 = vsel %vm201_vm0, %v1093_v13, %v1094_v14  ;;  %v7936_v19 = vcombine.high %v1126_v15, %v1128_v16  ;;  %v7935_v21 = vcombine.low %v1126_v15, %v1128_v16  ;;  %v1111_v22 = vsel %vm1097_vm7, %v1084_v11, %v1094_v14 }
 0x1ce   :  { %v1110_v27 = vsel %vm1097_vm7, %v1082_v8, %v1109_v18  ;;  %v1131_v38 = vmax.bf16 %v1111_v22, %v1054_v45  ;;  %v1151_v8 = vrot.slane %v1134_v54, %v1150_v4  ;;  %vm1393_vm7 = vcmask 254976  }
 0x1cf   :  { %1232 = vmatprep.subr.bf16.mxu1 %v7936_v19  ;;  %v1130_v28 = vmax.bf16 %v1110_v27, %v1053_v33  ;;  %v1129_v33 = vmax.bf16 %v1108_v32, %v11005_v43 }
 0x1d0   :  { %1233 = vmatpush1.bf16.msra.mxu1 %v7935_v21  ;;  %v7942_v9 = vcombine.high %v1131_v38, %v1131_v38  ;;  %v7941_v45 = vcombine.low %v1131_v38, %v1131_v38 }
 0x1d1   :  { %v7940_v31 = vcombine.high %v1130_v28, %v1130_v28  ;;  %v7939_v24 = vcombine.low %v1130_v28, %v1130_v28  ;;  %v7938_v44 = vcombine.high %v1127_v41, %v1129_v33  ;;  %v7937_v43 = vcombine.low %v1127_v41, %v1129_v33 }
 0x1d2   :  { %v1228_v46 = vand.u32 %v7942_v9, %v1217_v30  ;;  %v1225_v47 = vand.u32 %v7941_v45, %v1217_v30 }
 0x1d3   :  { %v1222_v36 = vand.u32 %v7940_v31, %v1217_v30  ;;  %v1219_v37 = vand.u32 %v7939_v24, %v1217_v30 }
 0x1d5   :  { %1234 = vmatprep.subr.bf16.mxu1 %v1222_v36 }
 0x1d6   :  { %1235 = vmatpush1.bf16.msra.mxu1 %v1219_v37 }
 0x1d7   :  { %1273 = vmatprep.subr.bf16.mxu1 %v7934_v40 }
 0x1d9   :  { %7943 = vmatmul.mubr.msk.bf16.vlgmr.msra.gmra.mrb[24].mxu1 %vm1211_vm9, %v10412_v25 }
 0x1da   :  { %1274 = vmatpush1.bf16.msra.mxu1 %v7933_v42  ;;  %1305 = vmatprep.mubr.bf16.mxu1 %v13421_v1 }
 0x1db   :  { %1275 = vmatprep.subr.bf16.mxu1 %v7938_v44 }
 0x1de   :  { %1276 = vmatpush1.bf16.msra.mxu1 %v7937_v43 }
 0x1df   :  { %1277 = vmatprep.subr.bf16.mxu1 %v1228_v46 }
 0x1e2   :  { %1278 = vmatpush1.bf16.msra.mxu1 %v1225_v47 }
 0x1e3   :  { %8747 = vmatprep.subr.bf16.mxu1 %v13428_v48 }
 0x1e5   :  { %7944 = vmatmul.mubr.msk.bf16.vlgmr.msra.gmra.mrb[28].mxu1 %vm1211_vm9, %v10412_v25  ;;  %vm2756_vm9 = vsmask.f32 6400 }
 0x1e6   :  { %8751 = vmatprep.mubr.msk.bf16.mxu1 %vm10649_vm12, %v13428_v48  ;;  %8748 = vmatpush3.bf16.msra.mxu1 %v10419_v5 }
 0x1e7   :  { %8749 = vmatprep.subr.bf16.mxu1 %v13428_v48 }
 0x1ea   :  { %8750 = vmatpush3.bf16.msra.mxu1 %v10421_v10  ;;  %v1516_v10 = vld [vmem:[#allocation3 + $0x4] sm:$0xe] }
 0x1eb   :  { %4867 = vmatprep.subr.bf16.mxu1 %v13421_v1 }
 0x2ac   :  { %v1264_v58 = vpop.f32.mrb[24].mxu1 }
 0x2ad   :  { %v1265_v59 = vadd.f32 %v1264_v58, %v1139_v56  ;;  %v1266_v60 = vpop.f32.mrb[25].mxu1 }
 0x2ae   :  { %v1267_v61 = vadd.f32 %v1266_v60, %v1143_v57  ;;  %v1268_v62 = vpop.f32.mrb[26].mxu1 }
 0x2af   :  { %10610 = vtanh.f32 %v1265_v59  ;;  %v1269_v63 = vadd.f32 %v1268_v62, %v1139_v56  ;;  %v1270_v0 = vpop.f32.mrb[27].mxu1 }
 0x2b0   :  { %10612 = vtanh.f32 %v1267_v61  ;;  %v1271_v2 = vadd.f32 %v1270_v0, %v1143_v57  ;;  %v3422_v61 = vld [vmem:[#allocation3] sm:$0xe] }
 0x2b1   :  { %10614 = vtanh.f32 %v1269_v63  ;;  %v11165_v63 = vld [vmem:[#allocation3 + $0x4] sm:$0xf] }
 0x2b2   :  { %10616 = vtanh.f32 %v1271_v2  ;;  %13442 = vst [vmem:[#allocation7_spill] sm:$0xff] %v11165_v63  ;;  %v8097_v0 = vcombine.low %v3422_v61, %v11165_v63 }
 0x2b4   :  { %v3430_v4 = vrot.slane %v8097_v0, 1 }
 0x2b8   :  { %v1307_v20 = vpop.f32.mrb[28].mxu1 }
 0x2b9   :  { %v10611_v11 = vpop.eup %10610  ;;  %v1308_v34 = vadd.f32 %v1307_v20, %v1147_v7  ;;  %v1309_v13 = vpop.f32.mrb[29].mxu1 }
 0x2ba   :  { %v10613_v14 = vpop.eup %10612  ;;  %v8402_v15 = vpack.c.bf16 %v10611_v11, %v10611_v11  ;;  %v1310_v16 = vadd.f32 %v1309_v13, %v1151_v8  ;;  %v1311_v18 = vpop.f32.mrb[30].mxu1 }
 0x2bb   :  { %v10615_v19 = vpop.eup %10614  ;;  %v8403_v21 = vpack.c.bf16 %v10613_v14, %v10613_v14  ;;  %10618 = vtanh.f32 %v1308_v34  ;;  %v1312_v26 = vadd.f32 %v1311_v18, %v1147_v7  ;;  %v1313_v27 = vpop.f32.mrb[31].mxu1  ;;  %v10432_v7 = vld [vmem:[%s13418_s2 + $0x28] sm:$0xff]  }
 0x2bc   :  { %v10617_v28 = vpop.eup %10616  ;;  %v1361_v29 = vrot.slane %v8402_v15, 5  ;;  %v11128_v30 = vpack.c.bf16 %v10615_v19, %v10615_v19  ;;  %10620 = vtanh.f32 %v1310_v16  ;;  %v1314_v39 = vadd.f32 %v1313_v27, %v1151_v8  ;;  %1368 = vrot.lane.b32.xlu0 %v8402_v15, %s10650_s25  ;;  %8862 = vmatpush3.bf16.msra.mxu0 %v10432_v7 }
 0x2bd   :  { %v1375_v31 = vrot.slane %v8403_v21, 7  ;;  %v8407_v24 = vpack.c.bf16 %v10617_v28, %v10617_v28  ;;  %10622 = vtanh.f32 %v1312_v26  ;;  %v1383_v32 = vrot.slane %v8403_v21, 6  ;;  %8915 = vmatprep.subr.bf16.mxu0 %v13428_v48 }
 0x2be   :  { %v1362_v22 = vrot.slane %v1361_v29, 4  ;;  %1366 = vst.msk [vmem:[#allocation3 + $0x8] sm:$0x8] %vm1365_vm14, %v1361_v29  ;;  %v1429_v17 = vrot.slane %v11128_v30, 7  ;;  %10624 = vtanh.f32 %v1314_v39  ;;  %v1435_v57 = vrot.slane %v11128_v30, 6 }
 0x2bf   :  { %v1376_v36 = vrot.slane %v1375_v31, 4  ;;  %1380 = vst.msk [vmem:[#allocation3 + $0x14] sm:$0xe] %vm1379_vm15, %v1375_v31  ;;  %v1447_v37 = vrot.slane %v8407_v24, 5  ;;  %1385 = vrot.lane.b32.xlu1 %v1383_v32, %s10650_s25  ;;  %v1384_v23 = vrot.slane %v1383_v32, 4 }
 0x2c0   :  { %1367 = vst.msk [vmem:[#allocation3 + $0xc] sm:$0x7] %vm1356_vm11, %v1362_v22  ;;  %v1430_v33 = vrot.slane %v1429_v17, 4  ;;  %v1436_v60 = vrot.slane %v1435_v57, 4 }
 0x2c1   :  { %1433 = vst.msk [vmem:[#allocation3 + $0x3c] sm:$0xe] %vm1379_vm15, %v1429_v17  ;;  %v1448_v38 = vrot.slane %v1447_v37, 4  ;;  %1387 = vrot.lane.b32.xlu0 %v1384_v23, %s10650_s25 }
 0x2c2   :  { %1451 = vst.msk [vmem:[#allocation3 + $0x44] sm:$0x8] %vm1365_vm14, %v1447_v37 }
 0x2c3   :  { %1382 = vst.msk [vmem:[#allocation3 + $0x18] sm:$0x1] %vm1381_vm4, %v1376_v36  ;;  %1434 = vst.msk [vmem:[#allocation3 + $0x40] sm:$0x1] %vm1381_vm4, %v1430_v33 }
 0x2c4   :  { %1452 = vst.msk [vmem:[#allocation3 + $0x48] sm:$0x7] %vm1356_vm11, %v1448_v38 }
 0x2c5   :  { %v10619_v40 = vpop.eup %10618  ;;  %v11142_v44 = vld [vmem:[#allocation3 + $0x8] sm:$0xf] }
 0x2c6   :  { %v10621_v25 = vpop.eup %10620  ;;  %v8404_v41 = vpack.c.bf16 %v10619_v40, %v10619_v40  ;;  %v7953_v34 = vcombine.low %v1516_v10, %v11142_v44  ;;  %v3912_v14 = vld [vmem:[#allocation3 + $0x8] sm:$0x8]  ;;  %v1492_v15 = vld [vmem:[#allocation3 + $0x14] sm:$0xf] }
 0x2c7   :  { %v10623_v42 = vpop.eup %10622  ;;  %v8405_v9 = vpack.c.bf16 %v10621_v25, %v10621_v25  ;;  %v11144_v43 = vld [vmem:[#allocation3 + $0xc] sm:$0xf]  ;;  %v2005_v28 = vld [vmem:[#allocation3 + $0x8] sm:$0xc] }
 0x2c8   :  { %v10625_v45 = vpop.eup %10624  ;;  %v1398_v46 = vrot.slane %v8404_v41, 5  ;;  %v8408_v47 = vpack.c.bf16 %v10623_v42, %v10623_v42  ;;  %1404 = vrot.lane.b32.xlu1 %v8404_v41, %s10650_s25  ;;  %v7982_v35 = vcombine.low %v11142_v44, %v11144_v43  ;;  %v11170_v3 = vld [vmem:[#allocation3 + $0x8] sm:$0xff]   ;;  %v1588_v27 = vrot.slane %v7953_v34, 1 }
 0x2c9   :  { %v1411_v49 = vrot.slane %v8405_v9, 7  ;;  %v8409_v50 = vpack.c.bf16 %v10625_v45, %v10625_v45  ;;  %v1417_v51 = vrot.slane %v8405_v9, 6  ;;  %v13424_v5 = vrot.slane %v11170_v3, 1  ;;  %v2006_v11 = vld [vmem:[#allocation3 + $0xc] sm:$0xf] }
 0x2ca   :  { %v1399_v52 = vrot.slane %v1398_v46, 4  ;;  %1402 = vst.msk [vmem:[#allocation3 + $0x1c] sm:$0x8] %vm1365_vm14, %v1398_v46  ;;  %v1459_v53 = vrot.slane %v8408_v47, 7  ;;  %8812 = vmatmul.mubr.msk.bf16.gmra.mrb[16].mxu0 %vm1625_vm13, %v7982_v35  ;;  %v1465_v62 = vrot.slane %v8408_v47, 6  ;;  %v8129_v16 = vcombine.low %v3912_v14, %v2006_v11 }
 0x2cb   :  { %v1412_v54 = vrot.slane %v1411_v49, 4  ;;  %1415 = vst.msk [vmem:[#allocation3 + $0x28] sm:$0xe] %vm1379_vm15, %v1411_v49  ;;  %v1477_v55 = vrot.slane %v8409_v50, 5  ;;  %1419 = vrot.lane.b32.xlu0 %v1417_v51, %s10650_s25  ;;  %v1418_v56 = vrot.slane %v1417_v51, 4  ;;  %8815 = vmatprep.mubr.msk.bf16.mxu0 %vm10649_vm12, %v13428_v48  ;;  %v11178_v6 = vsel %vm593_vm3, %v3430_v4, %v13424_v5 }
 0x2cc   :  { %1403 = vst.msk [vmem:[#allocation3 + $0x20] sm:$0x7] %vm1356_vm11, %v1399_v52  ;;  %v1460_v58 = vrot.slane %v1459_v53, 4  ;;  %v1466_v2 = vrot.slane %v1465_v62, 4  ;;  %13443 = vst [vmem:[#allocation8_spill] sm:$0xff] %v11178_v6  ;;  %v2758_v29 = vshrl.u32 %v7953_v34, 16  ;;  %v11200_v36 = vcombine.low %v2005_v28, %v2006_v11 }
 0x2cd   :  { %1463 = vst.msk [vmem:[#allocation3 + $0x50] sm:$0xe] %vm1379_vm15, %v1459_v53  ;;  %v1478_v59 = vrot.slane %v1477_v55, 4  ;;  %1421 = vrot.lane.b32.xlu1 %v1418_v56, %s10650_s25  ;;  %v2761_v30 = vshll.u32 %v7953_v34, 16  ;;  %v3921_v32 = vrot.slane %v8129_v16, 3  ;;  %vm4853_vm15 = vcmask 498688  }
 0x2ce   :  { %1481 = vst.msk [vmem:[#allocation3 + $0x58] sm:$0x8] %vm1365_vm14, %v1477_v55  ;;  %v2760_v42 = vrot.slane %v2758_v29, 1  ;;  %v3095_v47 = vshrl.u32 %v11200_v36, 16  ;;  %v3098_v56 = vshll.u32 %v11200_v36, 16  ;;  %vm4259_vm14 = vcmask 519168  }
 0x2cf   :  { %1416 = vst.msk [vmem:[#allocation3 + $0x2c] sm:$0x1] %vm1381_vm4, %v1412_v54  ;;  %1464 = vst.msk [vmem:[#allocation3 + $0x54] sm:$0x1] %vm1381_vm4, %v1460_v58  ;;  %1437 = vrot.lane.b32.xlu0 %v1435_v57, %s10650_s25  ;;  %v2763_v9 = vrot.slane %v2761_v30, 2  ;;  %vm4634_vm4 = vcmask 1046532  }
 0x2d0   :  { %1482 = vst.msk [vmem:[#allocation3 + $0x5c] sm:$0x7] %vm1356_vm11, %v1478_v59  ;;  %v3100_v16 = vrot.slane %v3098_v56, 3  ;;  %vm3093_vm11 = vsmask.f32 5376 }
 0x2d1   :  { %1439 = vrot.lane.b32.xlu1 %v1436_v60, %s10650_s25  ;;  %v2764_v59 = vor.u32 %v2763_v9, %v2760_v42  ;;  %v11264_v9 = vld [vmem:[#allocation3 + $0x68] sm:$0xf] }
 0x2d3   :  { %1453 = vrot.lane.b32.xlu0 %v8407_v24, %s10650_s25  ;;  %v1495_v38 = vld [vmem:[#allocation3 + $0x20] sm:$0xf] }
 0x2d5   :  { %1467 = vrot.lane.b32.xlu1 %v1465_v62, %s10650_s25 }
 0x2d7   :  { %1469 = vrot.lane.b32.xlu0 %v1466_v2, %s10650_s25 }
 0x2d9   :  { %1483 = vrot.lane.b32.xlu1 %v8409_v50, %s10650_s25 }
 0x32e   :  { %v1369_v8 = vpop.permute.xlu0 %1368 }
 0x32f   :  { %1371 = vst.msk [vmem:[#allocation3 + $0x10] sm:$0xf] %vm1328_vm10, %v1369_v8 }
 0x331   :  { %v1386_v20 = vpop.permute.xlu1 %1385 }
 0x332   :  { %1392 = vst.msk [vmem:[#allocation3 + $0x18] sm:$0xc] %vm1391_vm5, %v1386_v20 }
 0x333   :  { %v1388_v13 = vpop.permute.xlu0 %1387 }
 0x334   :  { %1394 = vst.msk [vmem:[#allocation3 + $0x1c] sm:$0x3] %vm1393_vm7, %v1388_v13 }
 0x336   :  { %v1491_v18 = vld [vmem:[#allocation3 + $0x10] sm:$0xf] }
 0x337   :  { %v11188_v19 = vld [vmem:[#allocation3 + $0x10] sm:$0xff]   ;;  %v11191_v21 = vcombine.low %v11144_v43, %v1491_v18  ;;  %v7983_v26 = vcombine.low %v1491_v18, %v1492_v15 }
 0x338   :  { %v13423_v39 = vrot.slane %v11188_v19, 3  ;;  %v3103_v35 = vshrl.u32 %v11188_v19, 16  ;;  %v3106_v57 = vshll.u32 %v11188_v19, 16 }
 0x339   :  { %8816 = vmatmul.mubr.msk.bf16.gmra.mrb[20].mxu0 %vm1625_vm13, %v7983_v26  ;;  %v1589_v31 = vrot.slane %v11191_v21, 1  ;;  %v1493_v24 = vld [vmem:[#allocation3 + $0x18] sm:$0xf]  ;;  %v2766_v37 = vshrl.u32 %v11191_v21, 16  ;;  %v2769_v45 = vshll.u32 %v11191_v21, 16 }
 0x33a   :  { %v1405_v22 = vpop.permute.xlu1 %1404  ;;  %8819 = vmatprep.mubr.msk.bf16.mxu0 %vm10649_vm12, %v13428_v48  ;;  %v11198_v17 = vcombine.low %v1492_v15, %v1493_v24  ;;  %v11208_v40 = vsel %vm3920_vm8, %v3921_v32, %v13423_v39  ;;  %v3105_v10 = vrot.slane %v3103_v35, 2  ;;  %v3108_v34 = vrot.slane %v3106_v57, 3  ;;  %v11250_v32 = vld [vmem:[#allocation3 + $0x38] sm:$0xf] }
 0x33b   :  { %1407 = vst.msk [vmem:[#allocation3 + $0x24] sm:$0xf] %vm1328_vm10, %v1405_v22  ;;  %v1590_v23 = vsel %vm593_vm3, %v1588_v27, %v1589_v31  ;;  %v1494_v33 = vld [vmem:[#allocation3 + $0x1c] sm:$0xf]  ;;  %13444 = vst [vmem:[#allocation9_spill] sm:$0xff] %v11208_v40  ;;  %v2768_v43 = vrot.slane %v2766_v37, 1 }
 0x33c   :  { %8752 = vmatmul.mubr.msk.bf16.vlgmr.msra.gmra.mrb[32].mxu1 %vm1625_vm13, %v1590_v23  ;;  %v11211_v25 = vcombine.low %v1494_v33, %v1495_v38  ;;  %v1591_v46 = vrot.slane %v11198_v17, 1  ;;  %v7984_v50 = vcombine.low %v1493_v24, %v1494_v33  ;;  %v2771_v51 = vrot.slane %v2769_v45, 2  ;;  %v1500_v24 = vld [vmem:[#allocation3 + $0x34] sm:$0xf]  ;;  %v11259_v23 = vld [vmem:[#allocation3 + $0x64] sm:$0xf] }
 0x33d   :  { %v1420_v41 = vpop.permute.xlu0 %1419  ;;  %8755 = vmatprep.mubr.msk.bf16.mxu1 %vm10649_vm12, %v13428_v48  ;;  %v2775_v52 = vshrl.u32 %v11198_v17, 16  ;;  %v2778_v53 = vshll.u32 %v11198_v17, 16  ;;  %v3097_v15 = vrot.slane %v3095_v47, 2  ;;  %v11246_v29 = vor.u32 %v3108_v34, %v3105_v10  ;;  %v2748_v33 = vld [vmem:[#allocation3 + $0x68] sm:$0x3] }
 0x33e   :  { %1425 = vst.msk [vmem:[#allocation3 + $0x2c] sm:$0xc] %vm1391_vm5, %v1420_v41  ;;  %v2784_v54 = vshrl.u32 %v11211_v25, 16  ;;  %v2787_v55 = vshll.u32 %v11211_v25, 16  ;;  %v2772_v60 = vor.u32 %v2771_v51, %v2768_v43  ;;  %v1592_v0 = vsel %vm593_vm3, %v1589_v31, %v1591_v46  ;;  %v1497_v31 = vld [vmem:[#allocation3 + $0x28] sm:$0xf] }
 0x33f   :  { %v1422_v49 = vpop.permute.xlu1 %1421  ;;  %v2777_v61 = vrot.slane %v2775_v52, 1  ;;  %v2780_v62 = vrot.slane %v2778_v53, 2  ;;  %v1593_v27 = vrot.slane %v11211_v25, 1  ;;  %13447 = vst [vmem:[#allocation12_spill] sm:$0xff] %v11246_v29  ;;  %v3101_v37 = vor.u32 %v3100_v16, %v3097_v15  ;;  %v3085_v43 = vld [vmem:[#allocation3 + $0x6c] sm:$0x7] }
 0x340   :  { %1426 = vst.msk [vmem:[#allocation3 + $0x30] sm:$0x3] %vm1393_vm7, %v1422_v49  ;;  %v11233_v4 = vsel %vm2756_vm9, %v2764_v59, %v2772_v60  ;;  %v2786_v8 = vrot.slane %v2784_v54, 1  ;;  %v2789_v11 = vrot.slane %v2787_v55, 2  ;;  %v11273_v35 = vcombine.low %v1500_v24, %v11250_v32  ;;  %v11275_v49 = vld [vmem:[#allocation3 + $0x38] sm:$0xff]  }
 0x341   :  { %v1438_v58 = vpop.permute.xlu0 %1437  ;;  %8820 = vmatmul.mubr.msk.bf16.gmra.mrb[24].mxu0 %vm1625_vm13, %v7984_v50  ;;  %13445 = vst [vmem:[#allocation10_spill] sm:$0xff] %v11233_v4  ;;  %v2781_v7 = vor.u32 %v2780_v62, %v2777_v61  ;;  %v1594_v41 = vsel %vm593_vm3, %v1591_v46, %v1593_v27  ;;  %v11268_v45 = vsel %vm3093_vm11, %v3101_v37, %v11246_v29  ;;  %v3667_v51 = vld [vmem:[#allocation3 + $0x4] sm:$0xc]  ;;  %v3148_v56 = vshrl.u32 %v11275_v49, 16 }
 0x342   :  { %1443 = vst.msk [vmem:[#allocation3 + $0x40] sm:$0xc] %vm1391_vm5, %v1438_v58  ;;  %8823 = vmatprep.mubr.msk.bf16.mxu0 %vm10649_vm12, %v13428_v48  ;;  %v1496_v20 = vld [vmem:[#allocation3 + $0x24] sm:$0xf]  ;;  %v11244_v28 = vor.u32 %v2789_v11, %v2786_v8  ;;  %13449 = vst [vmem:[#allocation14_spill] sm:$0xff] %v11268_v45  ;;  %v11280_v46 = vcombine.low %v11259_v23, %v2748_v33  ;;  %v11283_v50 = vcombine.low %v11264_v9, %v3085_v43 }
 0x343   :  { %v1440_v2 = vpop.permute.xlu1 %1439  ;;  %v11240_v14 = vsel %vm2756_vm9, %v2772_v60, %v2781_v7  ;;  %v7985_v26 = vcombine.low %v1495_v38, %v1496_v20  ;;  %v11262_v42 = vcombine.low %v1496_v20, %v1497_v31  ;;  %v2811_v55 = vshrl.u32 %v11273_v35, 16  ;;  %v11302_v8 = vld [vmem:[#allocation3 + $0x3c] sm:$0xf] }
 0x344   :  { %1444 = vst.msk [vmem:[#allocation3 + $0x44] sm:$0x3] %vm1393_vm7, %v1440_v2  ;;  %8756 = vmatmul.mubr.msk.bf16.gmra.mrb[36].mxu1 %vm1625_vm13, %v1592_v0  ;;  %13446 = vst [vmem:[#allocation11_spill] sm:$0xff] %v11240_v14  ;;  %v11254_v22 = vsel %vm2756_vm9, %v2781_v7, %v11244_v28  ;;  %v3151_v57 = vshll.u32 %v11275_v49, 16  ;;  %v2814_v58 = vshll.u32 %v11273_v35, 16  ;;  %v2865_v59 = vshrl.u32 %v11280_v46, 16 }
 0x345   :  { %v1454_v13 = vpop.permute.xlu0 %1453  ;;  %8759 = vmatprep.mubr.msk.bf16.mxu1 %vm10649_vm12, %v13428_v48  ;;  %13448 = vst [vmem:[#allocation13_spill] sm:$0xff] %v11254_v22  ;;  %v1498_v47 = vld [vmem:[#allocation3 + $0x2c] sm:$0xf]  ;;  %13450 = vst [vmem:[#allocation15_spill] sm:$0xff] %v11283_v50  ;;  %v1595_v53 = vrot.slane %v11262_v42, 1  ;;  %v2868_v60 = vshll.u32 %v11280_v46, 16  ;;  %v8113_v10 = vcombine.low %v3667_v51, %v11142_v44 }
 0x346   :  { %1456 = vst.msk [vmem:[#allocation3 + $0x4c] sm:$0xf] %vm1328_vm10, %v1454_v13  ;;  %v7986_v52 = vcombine.low %v1497_v31, %v1498_v47  ;;  %v3202_v0 = vshrl.u32 %v11283_v50, 16  ;;  %v3205_v2 = vshll.u32 %v11283_v50, 16  ;;  %v11306_v20 = vld [vmem:[#allocation3 + $0x38] sm:$0xff]   ;;  %v2813_v11 = vrot.slane %v2811_v55, 1 }
 0x347   :  { %v1468_v18 = vpop.permute.xlu1 %1467  ;;  %v1499_v54 = vld [vmem:[#allocation3 + $0x30] sm:$0xf]  ;;  %v1596_v7 = vsel %vm593_vm3, %v1593_v27, %v1595_v53  ;;  %v3150_v34 = vrot.slane %v3148_v56, 2  ;;  %v3153_v13 = vrot.slane %v3151_v57, 3  ;;  %v2816_v16 = vrot.slane %v2814_v58, 2 }
 0x348   :  { %1473 = vst.msk [vmem:[#allocation3 + $0x54] sm:$0xc] %vm1391_vm5, %v1468_v18  ;;  %v11295_v61 = vcombine.low %v1498_v47, %v1499_v54  ;;  %v2867_v18 = vrot.slane %v2865_v59, 1  ;;  %v3204_v44 = vrot.slane %v3202_v0, 2  ;;  %v7987_v31 = vcombine.low %v1499_v54, %v1500_v24  ;;  %v11325_v51 = vld [vmem:[#allocation3 + $0x48] sm:$0xf] }
 0x349   :  { %v1470_v30 = vpop.permute.xlu0 %1469  ;;  %8824 = vmatmul.mubr.msk.bf16.gmra.mrb[28].mxu0 %vm1625_vm13, %v7985_v26  ;;  %v11297_v62 = vld [vmem:[#allocation3 + $0x40] sm:$0xf]  ;;  %v2870_v26 = vrot.slane %v2868_v60, 2  ;;  %v1599_v37 = vrot.slane %v11273_v35, 1  ;;  %v11316_v33 = vrot.slane %v8113_v10, 2  ;;  %v11331_v54 = vor.u32 %v3153_v13, %v3150_v34 }
 0x34a   :  { %1474 = vst.msk [vmem:[#allocation3 + $0x58] sm:$0x3] %vm1393_vm7, %v1470_v30  ;;  %8827 = vmatprep.mubr.msk.bf16.mxu0 %vm10649_vm12, %v13428_v48  ;;  %v11312_v15 = vcombine.low %v11302_v8, %v11297_v62  ;;  %v1597_v27 = vrot.slane %v11295_v61, 1  ;;  %v3207_v30 = vrot.slane %v3205_v2, 3  ;;  %v2802_v34 = vshrl.u32 %v11295_v61, 16 }
 0x34b   :  { %v1484_v38 = vpop.permute.xlu1 %1483  ;;  %v11329_v24 = vor.u32 %v2870_v26, %v2867_v18  ;;  %v2805_v13 = vshll.u32 %v11295_v61, 16  ;;  %vm4941_vm7 = vcmask 519171  }
 0x34c   :  { %1486 = vst.msk [vmem:[#allocation3 + $0x60] sm:$0xf] %vm1328_vm10, %v1484_v38  ;;  %8760 = vmatmul.mubr.msk.bf16.gmra.mrb[40].mxu1 %vm1625_vm13, %v1594_v41  ;;  %v7988_v38 = vcombine.low %v11250_v32, %v11302_v8  ;;  %v11320_v41 = vld [vmem:[#allocation3 + $0x44] sm:$0xf]  ;;  %v13425_v47 = vrot.slane %v11312_v15, 1  ;;  %v1598_v55 = vsel %vm593_vm3, %v1595_v53, %v1597_v27  ;;  %v11340_v57 = vor.u32 %v3207_v30, %v3204_v44 }
 0x34d   :  { %8763 = vmatprep.mubr.msk.bf16.mxu1 %vm10649_vm12, %v13428_v48  ;;  %13451 = vst [vmem:[#allocation16_spill] sm:$0xff] %v11329_v24  ;;  %v11336_v32 = vld [vmem:[#allocation3 + $0x4c] sm:$0xf]  ;;  %v1600_v60 = vsel %vm593_vm3, %v1597_v27, %v1599_v37  ;;  %v11347_v0 = vcombine.low %v11320_v41, %v11325_v51  ;;  %v11349_v53 = vld [vmem:[#allocation3 + $0x50] sm:$0xf]  ;;  %v2796_v8 = vshll.u32 %v11262_v42, 16 }
 0x34e   :  { %v11368_v18 = vsel %vm593_vm3, %v1599_v37, %v13425_v47  ;;  %v11372_v26 = vcombine.low %v11336_v32, %v11349_v53  ;;  %v2804_v1 = vrot.slane %v2802_v34, 1  ;;  %v2807_v39 = vrot.slane %v2805_v13, 2 }
 0x34f   :  { %v11351_v2 = vld [vmem:[#allocation3 + $0x54] sm:$0xf]  ;;  %v1603_v37 = vrot.slane %v11347_v0, 1  ;;  %v2823_v43 = vshll.u32 %v11312_v15, 16  ;;  %v2832_v30 = vshll.u32 %v11347_v0, 16  ;;  %vm2100_vm10 = vcmask 1045504  }
 0x350   :  { %v2808_v10 = vor.u32 %v2807_v39, %v2804_v1  ;;  %v2838_v34 = vshrl.u32 %v11372_v26, 16  ;;  %v2841_v13 = vshll.u32 %v11372_v26, 16 }
 0x351   :  { %8828 = vmatmul.mubr.msk.bf16.gmra.mrb[32].mxu0 %vm1625_vm13, %v7986_v52  ;;  %v11327_v52 = vor.u32 %v2816_v16, %v2813_v11  ;;  %v11338_v56 = vld [vmem:[#allocation3 + $0x58] sm:$0xf]  ;;  %v2820_v16 = vshrl.u32 %v11312_v15, 16 }
 0x352   :  { %8831 = vmatprep.mubr.msk.bf16.mxu0 %vm10649_vm12, %v13428_v48  ;;  %v11376_v27 = vcombine.low %v11351_v2, %v11338_v56  ;;  %v2840_v12 = vrot.slane %v2838_v34, 1  ;;  %v2843_v40 = vrot.slane %v2841_v13, 2 }
 0x353   :  { %v11358_v11 = vld [vmem:[#allocation3 + $0x60] sm:$0xf]  ;;  %v2822_v58 = vrot.slane %v2820_v16, 1  ;;  %v11405_v39 = vsel %vm2756_vm9, %v2808_v10, %v11327_v52 }
 0x354   :  { %8764 = vmatmul.mubr.msk.bf16.gmra.mrb[44].mxu1 %vm1625_vm13, %v1596_v7  ;;  %v2793_v7 = vshrl.u32 %v11262_v42, 16  ;;  %v2847_v47 = vshrl.u32 %v11376_v27, 16  ;;  %13454 = vst [vmem:[#allocation19_spill] sm:$0xff] %v11405_v39  ;;  %v2850_v6 = vshll.u32 %v11376_v27, 16 }
 0x355   :  { %8767 = vmatprep.mubr.msk.bf16.mxu1 %vm10649_vm12, %v13428_v48 }
 0x356   :  { %v2795_v44 = vrot.slane %v2793_v7, 1  ;;  %v2829_v7 = vshrl.u32 %v11347_v0, 16  ;;  %v2852_v34 = vrot.slane %v2850_v6, 2 }
 0x359   :  { %8832 = vmatmul.mubr.msk.bf16.gmra.mrb[36].mxu0 %vm1625_vm13, %v7987_v31  ;;  %v11380_v31 = vld [vmem:[#allocation3 + $0x5c] sm:$0xf] }
 0x35a   :  { %8835 = vmatprep.mubr.msk.bf16.mxu0 %vm10649_vm12, %v13428_v48  ;;  %v11385_v59 = vcombine.low %v11380_v31, %v11358_v11 }
 0x35c   :  { %8768 = vmatmul.mubr.msk.bf16.gmra.mrb[48].mxu1 %vm1625_vm13, %v1598_v55  ;;  %v2798_v55 = vrot.slane %v2796_v8, 2  ;;  %v2825_v8 = vrot.slane %v2823_v43, 2  ;;  %v11407_v43 = vld [vmem:[#allocation3 + $0x20] sm:$0xff]   ;;  %v2859_v29 = vshll.u32 %v11385_v59, 16 }
 0x35d   :  { %8771 = vmatprep.mubr.msk.bf16.mxu1 %vm10649_vm12, %v13428_v48 }
 0x35e   :  { %v2799_v5 = vor.u32 %v2798_v55, %v2795_v44  ;;  %v2826_v44 = vor.u32 %v2825_v8, %v2822_v58  ;;  %v2834_v55 = vrot.slane %v2832_v30, 2  ;;  %v11419_v30 = vld [vmem:[#allocation3 + $0x30] sm:$0xff]   ;;  %v2861_v45 = vrot.slane %v2859_v29, 2 }
 0x35f   :  { %v3121_v58 = vshrl.u32 %v11407_v43, 16 }
 0x360   :  { %v11398_v16 = vsel %vm2756_vm9, %v11244_v28, %v2799_v5  ;;  %v11401_v1 = vsel %vm2756_vm9, %v2799_v5, %v2808_v10  ;;  %v2849_v28 = vrot.slane %v2847_v47, 1  ;;  %v2856_v5 = vshrl.u32 %v11385_v59, 16 }
 0x361   :  { %8836 = vmatmul.mubr.msk.bf16.gmra.mrb[40].mxu0 %vm1625_vm13, %v7988_v38  ;;  %13452 = vst [vmem:[#allocation17_spill] sm:$0xff] %v11398_v16  ;;  %13453 = vst [vmem:[#allocation18_spill] sm:$0xff] %v11401_v1  ;;  %v2831_v38 = vrot.slane %v2829_v7, 1  ;;  %v13455_v10 = vmov 0.0   ;;  %v2844_v47 = vor.u32 %v2843_v40, %v2840_v12  ;;  %v3124_v16 = vshll.u32 %v11407_v43, 16  ;;  %v11439_v12 = vld [vmem:[#allocation3 + $0x40] sm:$0xff]  }
 0x362   :  { %8839 = vmatprep.mubr.msk.bf16.mxu0 %vm10649_vm12, %v13428_v48  ;;  %v11410_v48 = vld [vmem:[#allocation3 + $0x28] sm:$0xff]   ;;  %v2858_v13 = vrot.slane %v2856_v5, 1  ;;  %v2853_v6 = vor.u32 %v2852_v34, %v2849_v28  ;;  %v3123_v5 = vrot.slane %v3121_v58, 2  ;;  %v11457_v34 = vld [vmem:[#allocation3 + $0x50] sm:$0xff]   ;;  %v11481_v58 = vld [vmem:[#allocation3 + $0x60] sm:$0xff]  }
 0x363   :  { %v2835_v7 = vor.u32 %v2834_v55, %v2831_v38  ;;  %v3130_v29 = vshrl.u32 %v11410_v48, 16  ;;  %v11446_v55 = vld [vmem:[#allocation3 + $0x48] sm:$0xff]   ;;  %v3133_v8 = vshll.u32 %v11410_v48, 16  ;;  %v3178_v22 = vshll.u32 %v11457_v34, 16 }
 0x364   :  { %8772 = vmatmul.mubr.msk.bf16.gmra.mrb[52].mxu1 %vm1625_vm13, %v1600_v60  ;;  %v11423_v60 = vsel %vm2756_vm9, %v11327_v52, %v2826_v44  ;;  %v13459_v52 = vrot.slane %v11312_v15, 1  ;;  %v2862_v40 = vor.u32 %v2861_v45, %v2858_v13  ;;  %v13461_v45 = vrot.slane %v11372_v26, 1 }
 0x365   :  { %8775 = vmatprep.mubr.msk.bf16.mxu1 %vm10649_vm12, %v13455_v10  ;;  %13456 = vst [vmem:[#allocation20_spill] sm:$0xff] %v11423_v60  ;;  %v11427_v39 = vsel %vm2756_vm9, %v2826_v44, %v2835_v7  ;;  %v11430_v1 = vsel %vm2756_vm9, %v2835_v7, %v2844_v47  ;;  %v13460_v44 = vcombine.low %v11297_v62, %v11320_v41  ;;  %v3126_v7 = vrot.slane %v3124_v16, 3 }
 0x366   :  { %13457 = vst [vmem:[#allocation21_spill] sm:$0xff] %v11427_v39  ;;  %13458 = vst [vmem:[#allocation22_spill] sm:$0xff] %v11430_v1  ;;  %v11437_v38 = vsel %vm593_vm3, %v13459_v52, %v1603_v37  ;;  %v3139_v52 = vshrl.u32 %v11419_v30, 16  ;;  %v11455_v28 = vsel %vm593_vm3, %v1603_v37, %v13461_v45  ;;  %v11460_v62 = vsel %vm2756_vm9, %v2844_v47, %v2853_v6  ;;  %v11474_v45 = vld [vmem:[#allocation3 + $0x58] sm:$0xff]  }
 0x367   :  { %13462 = vst [vmem:[#allocation23_spill] sm:$0xff] %v11460_v62  ;;  %v11463_v41 = vsel %vm2756_vm9, %v2853_v6, %v2862_v40  ;;  %v11467_v16 = vsel %vm2756_vm9, %v2862_v40, %v11329_v24  ;;  %v3135_v37 = vrot.slane %v3133_v8, 3  ;;  %v3142_v6 = vshll.u32 %v11419_v30, 16 }
 0x368   :  { %13463 = vst [vmem:[#allocation24_spill] sm:$0xff] %v11463_v41  ;;  %13464 = vst [vmem:[#allocation25_spill] sm:$0xff] %v11467_v16  ;;  %v3141_v47 = vrot.slane %v3139_v52, 2  ;;  %v3157_v41 = vshrl.u32 %v11439_v12, 16  ;;  %v3160_v40 = vshll.u32 %v11439_v12, 16  ;;  %v11483_v13 = vor.u32 %v3126_v7, %v3123_v5  ;;  %v11493_v5 = vld [vmem:[#allocation3 + $0x10] sm:$0xff]  }
 0x369   :  { %8840 = vmatmul.mubr.msk.bf16.gmra.mrb[44].mxu0 %vm1625_vm13, %v13460_v44  ;;  %v3132_v44 = vrot.slane %v3130_v29, 2  ;;  %v3166_v29 = vshrl.u32 %v11446_v55, 16  ;;  %v3144_v24 = vrot.slane %v3142_v6, 3  ;;  %v3175_v62 = vshrl.u32 %v11457_v34, 16  ;;  %v11495_v7 = vld [vmem:[#allocation3 + $0x18] sm:$0xff]  }
 0x36a   :  { %8843 = vmatprep.mubr.msk.bf16.mxu0 %vm10649_vm12, %v13455_v10  ;;  %13465 = vst [vmem:[#allocation26_spill] sm:$0xff] %v11483_v13  ;;  %v3159_v52 = vrot.slane %v3157_v41, 2  ;;  %v3162_v16 = vrot.slane %v3160_v40, 3  ;;  %v3184_v40 = vshrl.u32 %v11474_v45, 16  ;;  %v3180_v14 = vrot.slane %v3178_v22, 3  ;;  %v11523_v22 = vld [vmem:[#allocation3 + $0x40] sm:$0xff]  }
 0x36b   :  { %v3136_v8 = vor.u32 %v3135_v37, %v3132_v44  ;;  %v3168_v39 = vrot.slane %v3166_v29, 2  ;;  %v11497_v44 = vld [vmem:[#allocation3 + $0x20] sm:$0xff]   ;;  %v3145_v37 = vor.u32 %v3144_v24, %v3141_v47  ;;  %v3177_v6 = vrot.slane %v3175_v62, 2  ;;  %v11504_v29 = vld [vmem:[#allocation3 + $0x28] sm:$0xff]  }
 0x36c   :  { %8776 = vmatmul.mubr.msk.bf16.gmra.mrb[56].mxu1 %vm1625_vm13, %v11368_v18  ;;  %v3169_v18 = vshll.u32 %v11446_v55, 16  ;;  %13467 = vst [vmem:[#allocation28_spill] sm:$0xff] %v11497_v44  ;;  %v3163_v41 = vor.u32 %v3162_v16, %v3159_v52  ;;  %v3187_v4 = vshll.u32 %v11474_v45, 16  ;;  %v3193_v63 = vshrl.u32 %v11481_v58, 16  ;;  %v11530_v47 = vld [vmem:[#allocation3 + $0x48] sm:$0xff]  }
 0x36d   :  { %8779 = vmatprep.mubr.msk.bf16.mxu1 %vm10649_vm12, %v13455_v10  ;;  %v11490_v1 = vsel %vm3093_vm11, %v11483_v13, %v3136_v8  ;;  %v13468_v13 = vcombine.low %v11325_v51, %v11336_v32  ;;  %v11513_v24 = vsel %vm3093_vm11, %v3136_v8, %v3145_v37  ;;  %v11517_v51 = vsel %vm3093_vm11, %v3145_v37, %v11331_v54  ;;  %v11532_v8 = vld [vmem:[#allocation3 + $0x50] sm:$0xff]  }
 0x36e   :  { %13466 = vst [vmem:[#allocation27_spill] sm:$0xff] %v11490_v1  ;;  %v3171_v60 = vrot.slane %v3169_v18, 3  ;;  %v11506_v18 = vld [vmem:[#allocation3 + $0x30] sm:$0xff]   ;;  %13469 = vst [vmem:[#allocation29_spill] sm:$0xff] %v11513_v24  ;;  %v11521_v32 = vsel %vm3093_vm11, %v11331_v54, %v3163_v41  ;;  %v3181_v62 = vor.u32 %v3180_v14, %v3177_v6  ;;  %v3189_v16 = vrot.slane %v3187_v4, 3  ;;  %v11540_v4 = vld [vmem:[#allocation3 + $0x58] sm:$0xff]  }
 0x36f   :  { %13470 = vst [vmem:[#allocation30_spill] sm:$0xff] %v11517_v51  ;;  %13471 = vst [vmem:[#allocation31_spill] sm:$0xff] %v11521_v32  ;;  %v3196_v52 = vshll.u32 %v11481_v58, 16  ;;  %v3433_v54 = vrot.slane %v11493_v5, 1  ;;  %v3435_v37 = vrot.slane %v11495_v7, 1  ;;  %v3441_v6 = vrot.slane %v11506_v18, 1 }
 0x370   :  { %v3172_v1 = vor.u32 %v3171_v60, %v3168_v39  ;;  %v3186_v39 = vrot.slane %v3184_v40, 2  ;;  %v3437_v40 = vrot.slane %v11497_v44, 1  ;;  %v13473_v32 = vrot.slane %v11170_v3, 1 }
 0x371   :  { %8844 = vmatmul.mubr.msk.bf16.gmra.mrb[48].mxu0 %vm1625_vm13, %v13468_v13  ;;  %v3195_v13 = vrot.slane %v3193_v63, 2  ;;  %v11542_v63 = vld [vmem:[#allocation3 + $0x60] sm:$0x1f]   ;;  %v11555_v24 = vsel %vm593_vm3, %v3433_v54, %v3435_v37  ;;  %vm4945_vm9 = vcmask 519170  }
 0x372   :  { %8847 = vmatprep.mubr.msk.bf16.mxu0 %vm10649_vm12, %v13455_v10  ;;  %v11526_v60 = vsel %vm3093_vm11, %v3163_v41, %v3172_v1  ;;  %v11545_v14 = vsel %vm3093_vm11, %v3172_v1, %v3181_v62  ;;  %v3439_v41 = vrot.slane %v11504_v29, 1  ;;  %v11552_v51 = vsel %vm593_vm3, %v13473_v32, %v3433_v54 }
 0x373   :  { %13472 = vst [vmem:[#allocation32_spill] sm:$0xff] %v11526_v60  ;;  %v3198_v60 = vrot.slane %v3196_v52, 3  ;;  %13474 = vst [vmem:[#allocation33_spill] sm:$0xff] %v11552_v51  ;;  %v11558_v44 = vsel %vm593_vm3, %v3435_v37, %v3437_v40  ;;  %v13477_v52 = vrot.slane %v11306_v20, 1  ;;  %v3445_v54 = vrot.slane %v11523_v22, 1 }
 0x374   :  { %8780 = vmatmul.mubr.msk.bf16.gmra.mrb[60].mxu1 %vm1625_vm13, %v11437_v38  ;;  %v3190_v38 = vor.u32 %v3189_v16, %v3186_v39  ;;  %13475 = vst [vmem:[#allocation34_spill] sm:$0xff] %v11558_v44  ;;  %v11564_v39 = vsel %vm593_vm3, %v3437_v40, %v3439_v41  ;;  %v11567_v16 = vsel %vm593_vm3, %v3439_v41, %v3441_v6  ;;  %v3447_v37 = vrot.slane %v11530_v47, 1 }
 0x375   :  { %8783 = vmatprep.mubr.msk.bf16.mxu1 %vm10649_vm12, %v13455_v10  ;;  %13476 = vst [vmem:[#allocation35_spill] sm:$0xff] %v11567_v16  ;;  %v11572_v32 = vsel %vm593_vm3, %v3441_v6, %v13477_v52  ;;  %v3199_v51 = vor.u32 %v3198_v60, %v3195_v13  ;;  %v3449_v44 = vrot.slane %v11532_v8, 1  ;;  %v3451_v40 = vrot.slane %v11540_v4, 1 }
 0x376   :  { %v11561_v1 = vsel %vm3093_vm11, %v3181_v62, %v3190_v38  ;;  %v13478_v62 = vcombine.low %v11349_v53, %v11351_v2  ;;  %v13436_v41 = vrot.slane %v11542_v63, 1  ;;  %v3676_v16 = vrot.slane %v11191_v21, 2 }
 0x377   :  { %v3678_v6 = vrot.slane %v11198_v17, 2  ;;  %v11588_v60 = vsel %vm3093_vm11, %v3190_v38, %v3199_v51  ;;  %v11592_v13 = vsel %vm3093_vm11, %v3199_v51, %v11340_v57  ;;  %v13479_v53 = vmov %v13477_v52 }
 0x378   :  { %v11597_v2 = vsel %vm593_vm3, %v13479_v53, %v3445_v54  ;;  %v11600_v52 = vsel %vm593_vm3, %v3445_v54, %v3447_v37  ;;  %v11603_v21 = vsel %vm593_vm3, %v3447_v37, %v3449_v44  ;;  %v11606_v17 = vsel %vm593_vm3, %v3449_v44, %v3451_v40 }
 0x379   :  { %8848 = vmatmul.mubr.msk.bf16.gmra.mrb[52].mxu0 %vm1625_vm13, %v13478_v62  ;;  %v11611_v38 = vsel %vm593_vm3, %v3451_v40, %v13436_v41  ;;  %v11615_v51 = vsel %vm2100_vm10, %v11316_v33, %v3676_v16  ;;  %v11620_v54 = vsel %vm2100_vm10, %v3676_v16, %v3678_v6  ;;  %v3680_v37 = vrot.slane %v11211_v25, 2 }
 0x37a   :  { %8851 = vmatprep.mubr.msk.bf16.mxu0 %vm10649_vm12, %v13455_v10  ;;  %13480 = vst [vmem:[#allocation36_spill] sm:$0xff] %v11620_v54  ;;  %v3682_v44 = vrot.slane %v11262_v42, 2  ;;  %v3684_v62 = vrot.slane %v11295_v61, 2  ;;  %v3688_v40 = vrot.slane %v11312_v15, 2  ;;  %v3690_v33 = vrot.slane %v11347_v0, 2 }
 0x37b   :  { %v3692_v53 = vrot.slane %v11372_v26, 2  ;;  %v11632_v16 = vsel %vm2100_vm10, %v3678_v6, %v3680_v37  ;;  %v13482_v61 = vrot.slane %v11273_v35, 2  ;;  %v3932_v35 = vrot.slane %v11275_v49, 3 }
 0x37c   :  { %8784 = vmatmul.mubr.msk.bf16.gmra.mrb[64].mxu1 %vm1625_vm13, %v11455_v28  ;;  %v3694_v28 = vrot.slane %v11376_v27, 2  ;;  %v11635_v25 = vsel %vm2100_vm10, %v3680_v37, %v3682_v44  ;;  %v11638_v42 = vsel %vm2100_vm10, %v3682_v44, %v3684_v62  ;;  %v11651_v54 = vsel %vm2100_vm10, %v3688_v40, %v3690_v33 }
 0x37d   :  { %8787 = vmatprep.mubr.msk.bf16.mxu1 %vm10649_vm12, %v13455_v10  ;;  %13481 = vst [vmem:[#allocation37_spill] sm:$0xff] %v11638_v42  ;;  %v11643_v41 = vsel %vm2100_vm10, %v3684_v62, %v13482_v61  ;;  %v13484_v15 = vmov %v13482_v61  ;;  %13486 = vst [vmem:[#allocation40_spill] sm:$0xff] %v11651_v54  ;;  %v11654_v6 = vsel %vm2100_vm10, %v3690_v33, %v3692_v53  ;;  %v3696_v44 = vrot.slane %v11385_v59, 2 }
 0x37e   :  { %13483 = vst [vmem:[#allocation38_spill] sm:$0xff] %v11643_v41  ;;  %v11648_v0 = vsel %vm2100_vm10, %v13484_v15, %v3688_v40  ;;  %13487 = vst [vmem:[#allocation41_spill] sm:$0xff] %v11654_v6  ;;  %v11657_v37 = vsel %vm2100_vm10, %v3692_v53, %v3694_v28  ;;  %v3928_v62 = vrot.slane %v11410_v48, 3  ;;  %v13489_v61 = vcombine.low %v11338_v56, %v11380_v31 }
 0x37f   :  { %13485 = vst [vmem:[#allocation39_spill] sm:$0xff] %v11648_v0  ;;  %13488 = vst [vmem:[#allocation42_spill] sm:$0xff] %v11657_v37  ;;  %v3930_v40 = vrot.slane %v11419_v30, 3  ;;  %v3934_v33 = vrot.slane %v11439_v12, 3  ;;  %v3936_v53 = vrot.slane %v11446_v55, 3  ;;  %v3938_v15 = vrot.slane %v11457_v34, 3 }
 0x380   :  { %v13490_v37 = vrot.slane %v11376_v27, 1  ;;  %v13491_v42 = vrot.slane %v11372_v26, 1  ;;  %v11679_v56 = vsel %vm2100_vm10, %v3694_v28, %v3696_v44  ;;  %v13492_v31 = vrot.slane %v11280_v46, 2 }
 0x381   :  { %8852 = vmatmul.mubr.msk.bf16.gmra.mrb[56].mxu0 %vm1625_vm13, %v13489_v61  ;;  %v13438_v54 = vrot.slane %v11283_v50, 3  ;;  %v13493_v0 = vrot.slane %v11407_v43, 3  ;;  %v11693_v26 = vsel %vm3920_vm8, %v3928_v62, %v3930_v40  ;;  %v11699_v28 = vsel %vm3920_vm8, %v3932_v35, %v3934_v33 }
 0x382   :  { %v1608_v6 = vsel %vm593_vm3, %v13491_v42, %v13490_v37  ;;  %8855 = vmatprep.mubr.msk.bf16.mxu0 %vm10649_vm12, %v13455_v10  ;;  %v11684_v61 = vsel %vm2100_vm10, %v3696_v44, %v13492_v31  ;;  %v11696_v42 = vsel %vm3920_vm8, %v3930_v40, %v3932_v35  ;;  %v11703_v37 = vsel %vm3920_vm8, %v3934_v33, %v3936_v53 }
 0x383   :  { %v11690_v41 = vsel %vm3920_vm8, %v13493_v0, %v3928_v62  ;;  %v11706_v44 = vsel %vm3920_vm8, %v3936_v53, %v3938_v15  ;;  %v3940_v0 = vrot.slane %v11474_v45, 3  ;;  %v3942_v31 = vrot.slane %v11481_v58, 3  ;;  %v1518_v53 = vld [vmem:[#allocation3 + $0x68] sm:$0x1] }
 0x384   :  { %8788 = vmatmul.mubr.msk.bf16.gmra.mrb[68].mxu1 %vm1625_vm13, %v1608_v6  ;;  %v7993_v40 = vcombine.low %v11358_v11, %v11358_v11  ;;  %v1609_v33 = vrot.slane %v11385_v59, 1  ;;  %v7965_v50 = vcombine.low %v11259_v23, %v1518_v53  ;;  %v2101_v59 = vrot.slane %v11200_v36, 2  ;;  %v10446_v11 = vld [vmem:[%s13418_s2 + $0x30] sm:$0xff]   ;;  %v10454_v23 = vld [vmem:[%s13418_s2 + $0x38] sm:$0xff]  }
 0x385   :  { %8791 = vmatprep.mubr.msk.bf16.mxu1 %vm10649_vm12, %v13455_v10  ;;  %v11713_v62 = vsel %vm3920_vm8, %v3938_v15, %v3940_v0  ;;  %v11716_v35 = vsel %vm3920_vm8, %v3940_v0, %v3942_v31  ;;  %v11721_v6 = vsel %vm3920_vm8, %v3942_v31, %v13438_v54  ;;  %v13494_v15 = vrot.slane %v11376_v27, 1  ;;  %v11742_v54 = vld [vmem:[#allocation3 + $0x18] sm:$0xff]  }
 0x386   :  { %v2102_v31 = vrot.slane %v11188_v19, 2 }
 0x387   :  { %v1610_v0 = vsel %vm593_vm3, %v13494_v15, %v1609_v33 }
 0x388   :  { %v2103_v27 = vsel %vm2100_vm10, %v2101_v59, %v2102_v31  ;;  %v2110_v59 = vrot.slane %v11419_v30, 2 }
 0x389   :  { %8856 = vmatmul.mubr.msk.bf16.gmra.mrb[60].mxu0 %vm1625_vm13, %v7993_v40  ;;  %v1611_v40 = vrot.slane %v7965_v50, 1  ;;  %v2104_v50 = vrot.slane %v11742_v54, 2 }
 0x38a   :  { %8863 = vmatprep.mubr.msk.bf16.mxu0 %vm10649_vm12, %v13455_v10 }
 0x38b   :  { %v1612_v36 = vsel %vm593_vm3, %v1609_v33, %v1611_v40  ;;  %v2105_v53 = vsel %vm2100_vm10, %v2102_v31, %v2104_v50  ;;  %v2106_v33 = vrot.slane %v11407_v43, 2 }
 0x38c   :  { %8792 = vmatmul.mubr.msk.bf16.gmra.mrb[72].mxu1 %vm1625_vm13, %v1610_v0  ;;  %v2108_v0 = vrot.slane %v11410_v48, 2 }
 0x38d   :  { %8795 = vmatprep.mubr.msk.bf16.mxu1 %vm10649_vm12, %v13455_v10  ;;  %v2107_v15 = vsel %vm2100_vm10, %v2104_v50, %v2106_v33  ;;  %v2120_v50 = vrot.slane %v11474_v45, 2 }
 0x38e   :  { %v2109_v31 = vsel %vm2100_vm10, %v2106_v33, %v2108_v0  ;;  %v2030_v33 = vld [vmem:[#allocation3 + $0x6c] sm:$0x3] }
 0x391   :  { %8864 = vmatmul.mubr.msk.bf16.vlgmr.msra.gmra.mrb[12].mxu0 %vm1625_vm13, %v2103_v27  ;;  %v2114_v27 = vrot.slane %v11439_v12, 2 }
 0x392   :  { %8867 = vmatprep.mubr.msk.bf16.mxu0 %vm10649_vm12, %v13455_v10  ;;  %8916 = vmatpush3.bf16.msra.mxu0 %v10446_v11  ;;  %v2111_v11 = vsel %vm2100_vm10, %v2108_v0, %v2110_v59  ;;  %v2338_v0 = vld [vmem:[#allocation3] sm:$0xf] }
 0x393   :  { %8917 = vmatprep.subr.bf16.mxu0 %v13455_v10 }
 0x394   :  { %8796 = vmatmul.mubr.msk.bf16.gmra.mrb[76].mxu1 %vm1625_vm13, %v1612_v36  ;;  %v2118_v36 = vrot.slane %v11457_v34, 2 }
 0x395   :  { %8799 = vmatprep.mubr.msk.bf16.mxu1 %vm10649_vm12, %v13455_v10 }
 0x396   :  { %8918 = vmatpush3.bf16.msra.mxu0 %v10454_v23  ;;  %v2116_v23 = vrot.slane %v11446_v55, 2  ;;  %v2121_v55 = vsel %vm2100_vm10, %v2118_v36, %v2120_v50 }
 0x397   :  { %8971 = vmatprep.subr.bf16.mxu0 %v13455_v10 }
 0x398   :  { %v2119_v12 = vsel %vm2100_vm10, %v2116_v23, %v2118_v36  ;;  %v2449_v36 = vshll.u32 %v11493_v5, 16 }
 0x399   :  { %8868 = vmatmul.mubr.msk.bf16.gmra.mrb[16].mxu0 %vm1625_vm13, %v2105_v53  ;;  %v2122_v53 = vrot.slane %v11481_v58, 2 }
 0x39a   :  { %8871 = vmatprep.mubr.msk.bf16.mxu0 %vm10649_vm12, %v13455_v10 }
 0x39b   :  { %v2123_v34 = vsel %vm2100_vm10, %v2120_v50, %v2122_v53  ;;  %v2445_v50 = vshrl.u32 %v11170_v3, 16 }
 0x39c   :  { %8800 = vmatmul.mubr.msk.bf16.gmra.mrb[80].mxu1 %vm1625_vm13, %v1611_v40  ;;  %v2112_v40 = vrot.slane %v11275_v49, 2  ;;  %v2117_v49 = vsel %vm2100_vm10, %v2114_v27, %v2116_v23  ;;  %v10462_v23 = vld [vmem:[%s13418_s2 + $0x40] sm:$0xff]  }
 0x39e   :  { %v2113_v48 = vsel %vm2100_vm10, %v2110_v59, %v2112_v40  ;;  %v2115_v30 = vsel %vm2100_vm10, %v2112_v40, %v2114_v27  ;;  %v13495_v59 = vld [vmem:[#allocation7_spill] sm:$0xff] }
 0x3a1   :  { %8872 = vmatmul.mubr.msk.bf16.gmra.mrb[20].mxu0 %vm1625_vm13, %v2107_v15  ;;  %v8021_v15 = vcombine.low %v11264_v9, %v2030_v33  ;;  %v2441_v9 = vshll.u32 %v11170_v3, 16 }
 0x3a2   :  { %8875 = vmatprep.mubr.msk.bf16.mxu0 %vm10649_vm12, %v13455_v10 }
 0x3a3   :  { %v2124_v45 = vrot.slane %v8021_v15, 2  ;;  %v2453_v15 = vshrl.u32 %v11493_v5, 16 }
 0x3a9   :  { %8876 = vmatmul.mubr.msk.bf16.gmra.mrb[24].mxu0 %vm1625_vm13, %v2109_v31  ;;  %v2125_v31 = vsel %vm2100_vm10, %v2122_v53, %v2124_v45 }
 0x3aa   :  { %8879 = vmatprep.mubr.msk.bf16.mxu0 %vm10649_vm12, %v13455_v10 }
 0x3b1   :  { %8880 = vmatmul.mubr.msk.bf16.gmra.mrb[28].mxu0 %vm1625_vm13, %v2111_v11  ;;  %v8037_v11 = vcombine.low %v2338_v0, %v13495_v59 }
 0x3b2   :  { %8883 = vmatprep.mubr.msk.bf16.mxu0 %vm10649_vm12, %v13455_v10 }
 0x3b3   :  { %v2436_v58 = vshll.u32 %v8037_v11, 16  ;;  %v2434_v40 = vshrl.u32 %v8037_v11, 16  ;;  %v2461_v11 = vshrl.u32 %v11495_v7, 16 }
 0x3b9   :  { %8884 = vmatmul.mubr.msk.bf16.gmra.mrb[32].mxu0 %vm1625_vm13, %v2113_v48  ;;  %v2438_v48 = vrot.slane %v2436_v58, 1 }
 0x3ba   :  { %8887 = vmatprep.mubr.msk.bf16.mxu0 %vm10649_vm12, %v13455_v10 }
 0x3bb   :  { %v2439_v27 = vor.u32 %v2438_v48, %v2434_v40 }
 0x3c1   :  { %8888 = vmatmul.mubr.msk.bf16.gmra.mrb[36].mxu0 %vm1625_vm13, %v2115_v30  ;;  %v2443_v30 = vrot.slane %v2441_v9, 1 }
 0x3c2   :  { %8891 = vmatprep.mubr.msk.bf16.mxu0 %vm10649_vm12, %v13455_v10 }
 0x3c3   :  { %v2447_v53 = vor.u32 %v2445_v50, %v2443_v30 }
 0x3c9   :  { %8892 = vmatmul.mubr.msk.bf16.gmra.mrb[40].mxu0 %vm1625_vm13, %v2117_v49  ;;  %v2444_v49 = vsel %vm77_vm1, %v2439_v27, %v2443_v30  ;;  %v2473_v27 = vshll.u32 %v11504_v29, 16 }
 0x3ca   :  { %8895 = vmatprep.mubr.msk.bf16.mxu0 %vm10649_vm12, %v13455_v10 }
 0x3d1   :  { %8896 = vmatmul.mubr.msk.bf16.gmra.mrb[44].mxu0 %vm1625_vm13, %v2119_v12  ;;  %v10470_v12 = vld [vmem:[%s13418_s2 + $0x48] sm:$0xff]  }
 0x3d2   :  { %8899 = vmatprep.mubr.msk.bf16.mxu0 %vm10649_vm12, %v13455_v10 }
 0x3d9   :  { %8900 = vmatmul.mubr.msk.bf16.gmra.mrb[48].mxu0 %vm1625_vm13, %v2121_v55  ;;  %v2451_v55 = vrot.slane %v2449_v36, 1  ;;  %v2475_v36 = vrot.slane %v2473_v27, 1 }
 0x3da   :  { %8903 = vmatprep.mubr.msk.bf16.mxu0 %vm10649_vm12, %v13455_v10 }
 0x3db   :  { %v2452_v33 = vsel %vm77_vm1, %v2447_v53, %v2451_v55  ;;  %v2455_v0 = vor.u32 %v2453_v15, %v2451_v55  ;;  %v2481_v53 = vshll.u32 %v11506_v18, 16  ;;  %v2477_v15 = vshrl.u32 %v11504_v29, 16 }
 0x3e1   :  { %8904 = vmatmul.mubr.msk.bf16.gmra.mrb[52].mxu0 %vm1625_vm13, %v2123_v34  ;;  %v2457_v34 = vshll.u32 %v11495_v7, 16 }
 0x3e2   :  { %8907 = vmatprep.mubr.msk.bf16.mxu0 %vm10649_vm12, %v13455_v10 }
 0x3e9   :  { %8908 = vmatmul.mubr.msk.bf16.gmra.mrb[56].mxu0 %vm1625_vm13, %v2125_v31  ;;  %v13496_v31 = vld [vmem:[#allocation28_spill] sm:$0xff] }
 0x3ea   :  { %8911 = vmatprep.mubr.msk.bf16.mxu0 %vm10649_vm12, %v13455_v10  ;;  %v2465_v59 = vshll.u32 %v13496_v31, 16 }
 0x3ec   :  { %v2467_v58 = vrot.slane %v2465_v59, 1 }
 0x3f1   :  { %8912 = vmatmul.mubr.msk.bf16.gmra.mrb[60].mxu0 %vm1625_vm13, %v2124_v45  ;;  %v2459_v45 = vrot.slane %v2457_v34, 1 }
 0x3f2   :  { %8919 = vmatprep.mubr.msk.bf16.mxu0 %vm10649_vm12, %v13455_v10 }
 0x3f3   :  { %v2460_v3 = vsel %vm77_vm1, %v2455_v0, %v2459_v45  ;;  %v2463_v40 = vor.u32 %v2461_v11, %v2459_v45  ;;  %v2479_v45 = vor.u32 %v2477_v15, %v2475_v36  ;;  %v2483_v0 = vrot.slane %v2481_v53, 1 }
 0x3f4   :  { %v2485_v11 = vshrl.u32 %v11506_v18, 16 }
 0x3f5   :  { %v2468_v5 = vsel %vm77_vm1, %v2463_v40, %v2467_v58  ;;  %v2484_v59 = vsel %vm77_vm1, %v2479_v45, %v2483_v0 }
 0x3f6   :  { %v2487_v29 = vor.u32 %v2485_v11, %v2483_v0  ;;  %v2505_v0 = vshll.u32 %v11530_v47, 16  ;;  %v2501_v11 = vshrl.u32 %v11523_v22, 16 }
 0x3f9   :  { %8920 = vmatmul.mubr.msk.bf16.vlgmr.msra.gmra.mrb[12].mxu0 %vm1625_vm13, %v2444_v49  ;;  %v2469_v49 = vshrl.u32 %v13496_v31, 16 }
 0x3fa   :  { %8923 = vmatprep.mubr.msk.bf16.mxu0 %vm10649_vm12, %v13455_v10  ;;  %8972 = vmatpush3.bf16.msra.mxu0 %v10462_v23 }
 0x3fb   :  { %8973 = vmatprep.subr.bf16.mxu0 %v13455_v10  ;;  %v2471_v7 = vor.u32 %v2469_v49, %v2467_v58 }
 0x3fd   :  { %v2476_v55 = vsel %vm77_vm1, %v2471_v7, %v2475_v36  ;;  %v2497_v7 = vshll.u32 %v11523_v22, 16 }
 0x3fe   :  { %8974 = vmatpush3.bf16.msra.mxu0 %v10470_v12 }
 0x3ff   :  { %9027 = vmatprep.subr.bf16.mxu0 %v13455_v10 }
 0x401   :  { %8924 = vmatmul.mubr.msk.bf16.gmra.mrb[16].mxu0 %vm1625_vm13, %v2452_v33 }
 0x402   :  { %8927 = vmatprep.mubr.msk.bf16.mxu0 %vm10649_vm12, %v13455_v10 }
 0x409   :  { %8928 = vmatmul.mubr.msk.bf16.gmra.mrb[20].mxu0 %vm1625_vm13, %v2460_v3 }
 0x40a   :  { %8931 = vmatprep.mubr.msk.bf16.mxu0 %vm10649_vm12, %v13455_v10 }
 0x40f   :  { %v11843_v48 = vpop.f32.mrb[32].mxu1 }
 0x410   :  { %v8753_v9 = vpop.f32.mrb[33].mxu1 }
 0x411   :  { %v11847_v30 = vpop.f32.mrb[34].mxu1  ;;  %8932 = vmatmul.mubr.msk.bf16.gmra.mrb[24].mxu0 %vm1625_vm13, %v2468_v5  ;;  %v2489_v9 = vshll.u32 %v11306_v20, 16 }
 0x412   :  { %v8754_v23 = vpop.f32.mrb[35].mxu1  ;;  %8935 = vmatprep.mubr.msk.bf16.mxu0 %vm10649_vm12, %v13455_v10 }
 0x413   :  { %v2491_v5 = vrot.slane %v2489_v9, 1 }
 0x415   :  { %v2492_v49 = vsel %vm77_vm1, %v2487_v29, %v2491_v5 }
 0x417   :  { %v11853_v12 = vpop.f32.mrb[36].mxu1 }
 0x418   :  { %v8757_v50 = vpop.f32.mrb[37].mxu1 }
 0x419   :  { %v11857_v33 = vpop.f32.mrb[38].mxu1  ;;  %8936 = vmatmul.mubr.msk.bf16.gmra.mrb[28].mxu0 %vm1625_vm13, %v2476_v55  ;;  %v2493_v50 = vshrl.u32 %v11306_v20, 16  ;;  %v2499_v55 = vrot.slane %v2497_v7, 1 }
 0x41a   :  { %v8758_v34 = vpop.f32.mrb[39].mxu1  ;;  %8939 = vmatprep.mubr.msk.bf16.mxu0 %vm10649_vm12, %v13455_v10 }
 0x41b   :  { %v2495_v53 = vor.u32 %v2493_v50, %v2491_v5  ;;  %v2503_v20 = vor.u32 %v2501_v11, %v2499_v55  ;;  %v2517_v11 = vshrl.u32 %v11532_v8, 16 }
 0x41d   :  { %v2500_v45 = vsel %vm77_vm1, %v2495_v53, %v2499_v55 }
 0x41f   :  { %v11863_v3 = vpop.f32.mrb[40].mxu1 }
 0x420   :  { %v8761_v31 = vpop.f32.mrb[41].mxu1 }
 0x421   :  { %v11867_v58 = vpop.f32.mrb[42].mxu1  ;;  %8940 = vmatmul.mubr.msk.bf16.gmra.mrb[32].mxu0 %vm1625_vm13, %v2484_v59 }
 0x422   :  { %v8762_v40 = vpop.f32.mrb[43].mxu1  ;;  %8943 = vmatprep.mubr.msk.bf16.mxu0 %vm10649_vm12, %v13455_v10 }
 0x423   :  { %v2507_v40 = vrot.slane %v2505_v0, 1 }
 0x425   :  { %v2508_v5 = vsel %vm77_vm1, %v2503_v20, %v2507_v40 }
 0x427   :  { %v11873_v27 = vpop.f32.mrb[44].mxu1 }
 0x428   :  { %v8765_v23 = vpop.f32.mrb[45].mxu1 }
 0x429   :  { %v11877_v18 = vpop.f32.mrb[46].mxu1  ;;  %8944 = vmatmul.mubr.msk.bf16.gmra.mrb[36].mxu0 %vm1625_vm13, %v2492_v49  ;;  %v2513_v23 = vshll.u32 %v11532_v8, 16 }
 0x42a   :  { %v8766_v36 = vpop.f32.mrb[47].mxu1  ;;  %8947 = vmatprep.mubr.msk.bf16.mxu0 %vm10649_vm12, %v13455_v10 }
 0x42b   :  { %v2509_v36 = vshrl.u32 %v11530_v47, 16  ;;  %v2515_v50 = vrot.slane %v2513_v23, 1  ;;  %v2529_v23 = vshll.u32 %v11542_v63, 16 }
 0x42d   :  { %v2511_v22 = vor.u32 %v2509_v36, %v2507_v40  ;;  %v2519_v47 = vor.u32 %v2517_v11, %v2515_v50 }
 0x42f   :  { %v11883_v34 = vpop.f32.mrb[48].mxu1 }
 0x430   :  { %v8769_v15 = vpop.f32.mrb[49].mxu1 }
 0x431   :  { %v11887_v31 = vpop.f32.mrb[50].mxu1  ;;  %8948 = vmatmul.mubr.msk.bf16.gmra.mrb[40].mxu0 %vm1625_vm13, %v2500_v45  ;;  %v2516_v15 = vsel %vm77_vm1, %v2511_v22, %v2515_v50  ;;  %v2521_v45 = vshll.u32 %v11540_v4, 16  ;;  %v2525_v22 = vshrl.u32 %v11540_v4, 16  ;;  %v2531_v50 = vrot.slane %v2529_v23, 1 }
 0x432   :  { %v8770_v59 = vpop.f32.mrb[51].mxu1  ;;  %8951 = vmatprep.mubr.msk.bf16.mxu0 %vm10649_vm12, %v13455_v10 }
 0x433   :  { %v2523_v20 = vrot.slane %v2521_v45, 1 }
 0x435   :  { %v2527_v8 = vor.u32 %v2525_v22, %v2523_v20 }
 0x437   :  { %v11893_v9 = vpop.f32.mrb[52].mxu1  ;;  %v2532_v45 = vsel %vm77_vm1, %v2527_v8, %v2531_v50 }
 0x438   :  { %v8773_v29 = vpop.f32.mrb[53].mxu1 }
 0x439   :  { %v11897_v49 = vpop.f32.mrb[54].mxu1  ;;  %8952 = vmatmul.mubr.msk.bf16.gmra.mrb[44].mxu0 %vm1625_vm13, %v2508_v5  ;;  %v2524_v5 = vsel %vm77_vm1, %v2519_v47, %v2523_v20  ;;  %v2533_v47 = vshrl.u32 %v11542_v63, 16 }
 0x43a   :  { %v8774_v7 = vpop.f32.mrb[55].mxu1  ;;  %8955 = vmatprep.mubr.msk.bf16.mxu0 %vm10649_vm12, %v13455_v10 }
 0x43b   :  { %v2535_v4 = vor.u32 %v2533_v47, %v2531_v50 }
 0x43f   :  { %v11903_v55 = vpop.f32.mrb[56].mxu1 }
 0x440   :  { %v8777_v53 = vpop.f32.mrb[57].mxu1 }
 0x441   :  { %v11907_v0 = vpop.f32.mrb[58].mxu1  ;;  %8956 = vmatmul.mubr.msk.bf16.gmra.mrb[48].mxu0 %vm1625_vm13, %v2516_v15 }
 0x442   :  { %v8778_v59 = vpop.f32.mrb[59].mxu1  ;;  %8959 = vmatprep.mubr.msk.bf16.mxu0 %vm10649_vm12, %v13455_v10 }
 0x447   :  { %v11913_v40 = vpop.f32.mrb[60].mxu1 }
 0x448   :  { %v8781_v29 = vpop.f32.mrb[61].mxu1 }
 0x449   :  { %v11917_v7 = vpop.f32.mrb[62].mxu1  ;;  %8960 = vmatmul.mubr.msk.bf16.gmra.mrb[52].mxu0 %vm1625_vm13, %v2524_v5 }
 0x44a   :  { %v8782_v36 = vpop.f32.mrb[63].mxu1  ;;  %8963 = vmatprep.mubr.msk.bf16.mxu0 %vm10649_vm12, %v13455_v10 }
 0x44b   :  { %v10474_v36 = vld [vmem:[%s13418_s2 + $0x50] sm:$0xff]  }
 0x44f   :  { %v11923_v53 = vpop.f32.mrb[64].mxu1 }
 0x450   :  { %v8785_v15 = vpop.f32.mrb[65].mxu1 }
 0x451   :  { %v11926_v59 = vpop.f32.mrb[66].mxu1  ;;  %8964 = vmatmul.mubr.msk.bf16.gmra.mrb[56].mxu0 %vm1625_vm13, %v2532_v45  ;;  %v13497_v45 = vld [vmem:[#allocation10_spill] sm:$0xff] }
 0x452   :  { %v8786_v11 = vpop.f32.mrb[67].mxu1  ;;  %8967 = vmatprep.mubr.msk.bf16.mxu0 %vm10649_vm12, %v13455_v10 }
 0x453   :  { %v10475_v11 = vld [vmem:[%s13418_s2 + $0x58] sm:$0xff]  }
 0x457   :  { %v11932_v29 = vpop.f32.mrb[68].mxu1 }
 0x458   :  { %v8789_v20 = vpop.f32.mrb[69].mxu1 }
 0x459   :  { %v11934_v5 = vpop.f32.mrb[70].mxu1  ;;  %8968 = vmatmul.mubr.msk.bf16.gmra.mrb[60].mxu0 %vm1625_vm13, %v2535_v4 }
 0x45a   :  { %v8790_v23 = vpop.f32.mrb[71].mxu1  ;;  %8975 = vmatprep.mubr.msk.bf16.mxu0 %vm10649_vm12, %v13455_v10 }
 0x45b   :  { %v13500_v23 = vld [vmem:[#allocation11_spill] sm:$0xff] }
 0x45f   :  { %v11942_v22 = vpop.f32.mrb[72].mxu1 }
 0x460   :  { %v8793_v8 = vpop.f32.mrb[73].mxu1 }
 0x461   :  { %v11944_v15 = vpop.f32.mrb[74].mxu1  ;;  %8976 = vmatmul.mubr.msk.bf16.vlgmr.msra.gmra.mrb[12].mxu0 %vm1625_vm13, %v13497_v45  ;;  %v13502_v45 = vld [vmem:[#allocation17_spill] sm:$0xff] }
 0x462   :  { %v8794_v50 = vpop.f32.mrb[75].mxu1  ;;  %8979 = vmatprep.mubr.msk.bf16.mxu0 %vm10649_vm12, %v13455_v10  ;;  %9028 = vmatpush3.bf16.msra.mxu0 %v10474_v36  ;;  %v13501_v36 = vld [vmem:[#allocation13_spill] sm:$0xff] }
 0x463   :  { %9029 = vmatprep.subr.bf16.mxu0 %v13455_v10  ;;  %v13503_v50 = vld [vmem:[#allocation18_spill] sm:$0xff] }
 0x466   :  { %9030 = vmatpush3.bf16.msra.mxu0 %v10475_v11  ;;  %v13504_v11 = vld [vmem:[#allocation19_spill] sm:$0xff] }
 0x467   :  { %v11954_v47 = vpop.f32.mrb[76].mxu1  ;;  %9083 = vmatprep.subr.bf16.mxu0 %v13455_v10 }
 0x468   :  { %13498 = vst [vmem:[#allocation7_spill] sm:$0xff] %v11954_v47  ;;  %v8797_v4 = vpop.f32.mrb[77].mxu1  ;;  %v13513_v47 = vld [vmem:[#allocation12_spill] sm:$0xff] }
 0x469   :  { %v11957_v20 = vpop.f32.mrb[78].mxu1  ;;  %8980 = vmatmul.mubr.msk.bf16.gmra.mrb[16].mxu0 %vm1625_vm13, %v13500_v23  ;;  %v13505_v4 = vld [vmem:[#allocation20_spill] sm:$0xff]  ;;  %v13506_v23 = vld [vmem:[#allocation21_spill] sm:$0xff] }
 0x46a   :  { %13499 = vst [vmem:[#allocation28_spill] sm:$0xff] %v11957_v20  ;;  %v8798_v8 = vpop.f32.mrb[79].mxu1  ;;  %8983 = vmatprep.mubr.msk.bf16.mxu0 %vm10649_vm12, %v13455_v10 }
 0x46b   :  { %v13507_v8 = vld [vmem:[#allocation22_spill] sm:$0xff] }
 0x471   :  { %8984 = vmatmul.mubr.msk.bf16.gmra.mrb[20].mxu0 %vm1625_vm13, %v13501_v36  ;;  %v13508_v36 = vld [vmem:[#allocation23_spill] sm:$0xff] }
 0x472   :  { %8987 = vmatprep.mubr.msk.bf16.mxu0 %vm10649_vm12, %v13455_v10 }
 0x479   :  { %8988 = vmatmul.mubr.msk.bf16.gmra.mrb[24].mxu0 %vm1625_vm13, %v13502_v45  ;;  %v13509_v45 = vld [vmem:[#allocation24_spill] sm:$0xff] }
 0x47a   :  { %8991 = vmatprep.mubr.msk.bf16.mxu0 %vm10649_vm12, %v13455_v10 }
 0x481   :  { %8992 = vmatmul.mubr.msk.bf16.gmra.mrb[28].mxu0 %vm1625_vm13, %v13503_v50  ;;  %v13510_v50 = vld [vmem:[#allocation25_spill] sm:$0xff] }
 0x482   :  { %8995 = vmatprep.mubr.msk.bf16.mxu0 %vm10649_vm12, %v13455_v10 }
 0x489   :  { %8996 = vmatmul.mubr.msk.bf16.gmra.mrb[32].mxu0 %vm1625_vm13, %v13504_v11  ;;  %v13511_v11 = vld [vmem:[#allocation16_spill] sm:$0xff] }
 0x48a   :  { %8999 = vmatprep.mubr.msk.bf16.mxu0 %vm10649_vm12, %v13455_v10 }
 0x491   :  { %9000 = vmatmul.mubr.msk.bf16.gmra.mrb[36].mxu0 %vm1625_vm13, %v13505_v4  ;;  %v3112_v4 = vshrl.u32 %v11742_v54, 16 }
 0x492   :  { %9003 = vmatprep.mubr.msk.bf16.mxu0 %vm10649_vm12, %v13455_v10 }
 0x499   :  { %9004 = vmatmul.mubr.msk.bf16.gmra.mrb[40].mxu0 %vm1625_vm13, %v13506_v23  ;;  %v3115_v23 = vshll.u32 %v11742_v54, 16 }
 0x49a   :  { %9007 = vmatprep.mubr.msk.bf16.mxu0 %vm10649_vm12, %v13455_v10 }
 0x4a1   :  { %9008 = vmatmul.mubr.msk.bf16.gmra.mrb[44].mxu0 %vm1625_vm13, %v13507_v8  ;;  %v10476_v8 = vld [vmem:[%s13418_s2 + $0x60] sm:$0xff]  }
 0x4a2   :  { %9011 = vmatprep.mubr.msk.bf16.mxu0 %vm10649_vm12, %v13455_v10 }
 0x4a9   :  { %9012 = vmatmul.mubr.msk.bf16.gmra.mrb[48].mxu0 %vm1625_vm13, %v13508_v36  ;;  %v3114_v36 = vrot.slane %v3112_v4, 2 }
 0x4aa   :  { %9015 = vmatprep.mubr.msk.bf16.mxu0 %vm10649_vm12, %v13455_v10 }
 0x4b1   :  { %9016 = vmatmul.mubr.msk.bf16.gmra.mrb[52].mxu0 %vm1625_vm13, %v13509_v45  ;;  %v3117_v45 = vrot.slane %v3115_v23, 3  ;;  %v13514_v23 = vld [vmem:[#allocation26_spill] sm:$0xff] }
 0x4b2   :  { %9019 = vmatprep.mubr.msk.bf16.mxu0 %vm10649_vm12, %v13455_v10 }
 0x4b3   :  { %v3118_v20 = vor.u32 %v3117_v45, %v3114_v36  ;;  %v13515_v36 = vld [vmem:[#allocation27_spill] sm:$0xff]  ;;  %v13517_v45 = vld [vmem:[#allocation30_spill] sm:$0xff] }
 0x4b5   :  { %v3119_v4 = vsel %vm3093_vm11, %v13513_v47, %v3118_v20  ;;  %v13516_v47 = vld [vmem:[#allocation29_spill] sm:$0xff] }
 0x4b9   :  { %9020 = vmatmul.mubr.msk.bf16.gmra.mrb[56].mxu0 %vm1625_vm13, %v13510_v50  ;;  %v13512_v50 = vld [vmem:[#allocation14_spill] sm:$0xff] }
 0x4ba   :  { %9023 = vmatprep.mubr.msk.bf16.mxu0 %vm10649_vm12, %v13455_v10 }
 0x4c1   :  { %9024 = vmatmul.mubr.msk.bf16.gmra.mrb[60].mxu0 %vm1625_vm13, %v13511_v11  ;;  %v10477_v11 = vld [vmem:[%s13418_s2 + $0x68] sm:$0xff]  }
 0x4c2   :  { %9031 = vmatprep.mubr.msk.bf16.mxu0 %vm10649_vm12, %v13455_v10 }
 0x4c9   :  { %9032 = vmatmul.mubr.msk.bf16.vlgmr.msra.gmra.mrb[12].mxu0 %vm1625_vm13, %v13512_v50  ;;  %v13519_v50 = vld [vmem:[#allocation32_spill] sm:$0xff] }
 0x4ca   :  { %9035 = vmatprep.mubr.msk.bf16.mxu0 %vm10649_vm12, %v13455_v10  ;;  %9084 = vmatpush3.bf16.msra.mxu0 %v10476_v8  ;;  %v3128_v8 = vsel %vm3093_vm11, %v3118_v20, %v13514_v23  ;;  %v13518_v20 = vld [vmem:[#allocation31_spill] sm:$0xff] }
 0x4cb   :  { %9085 = vmatprep.subr.bf16.mxu0 %v13455_v10 }
 0x4ce   :  { %9086 = vmatpush3.bf16.msra.mxu0 %v10477_v11  ;;  %v13523_v11 = vld [vmem:[#allocation35_spill] sm:$0xff] }
 0x4cf   :  { %9139 = vmatprep.subr.bf16.mxu0 %v13455_v10 }
 0x4d1   :  { %9036 = vmatmul.mubr.msk.bf16.gmra.mrb[16].mxu0 %vm1625_vm13, %v3119_v4 }
 0x4d2   :  { %9039 = vmatprep.mubr.msk.bf16.mxu0 %vm10649_vm12, %v13455_v10 }
 0x4d9   :  { %9040 = vmatmul.mubr.msk.bf16.gmra.mrb[20].mxu0 %vm1625_vm13, %v3128_v8 }
 0x4da   :  { %9043 = vmatprep.mubr.msk.bf16.mxu0 %vm10649_vm12, %v13455_v10 }
 0x4e1   :  { %9044 = vmatmul.mubr.msk.bf16.gmra.mrb[24].mxu0 %vm1625_vm13, %v13515_v36 }
 0x4e2   :  { %9047 = vmatprep.mubr.msk.bf16.mxu0 %vm10649_vm12, %v13455_v10 }
 0x4e9   :  { %9048 = vmatmul.mubr.msk.bf16.gmra.mrb[28].mxu0 %vm1625_vm13, %v13516_v47 }
 0x4ea   :  { %9051 = vmatprep.mubr.msk.bf16.mxu0 %vm10649_vm12, %v13455_v10 }
 0x4f1   :  { %9052 = vmatmul.mubr.msk.bf16.gmra.mrb[32].mxu0 %vm1625_vm13, %v13517_v45 }
 0x4f2   :  { %9055 = vmatprep.mubr.msk.bf16.mxu0 %vm10649_vm12, %v13455_v10 }
 0x4f9   :  { %9056 = vmatmul.mubr.msk.bf16.gmra.mrb[36].mxu0 %vm1625_vm13, %v13518_v20 }
 0x4fa   :  { %9059 = vmatprep.mubr.msk.bf16.mxu0 %vm10649_vm12, %v13455_v10 }
 0x501   :  { %9060 = vmatmul.mubr.msk.bf16.gmra.mrb[40].mxu0 %vm1625_vm13, %v13519_v50 }
 0x502   :  { %9063 = vmatprep.mubr.msk.bf16.mxu0 %vm10649_vm12, %v13455_v10 }
 0x509   :  { %9064 = vmatmul.mubr.msk.bf16.gmra.mrb[44].mxu0 %vm1625_vm13, %v11545_v14  ;;  %v10479_v14 = vld [vmem:[%s13418_s2 + $0x70] sm:$0xff]  }
 0x50a   :  { %9067 = vmatprep.mubr.msk.bf16.mxu0 %vm10649_vm12, %v13455_v10 }
 0x511   :  { %9068 = vmatmul.mubr.msk.bf16.gmra.mrb[48].mxu0 %vm1625_vm13, %v11561_v1  ;;  %v13520_v1 = vld [vmem:[#allocation8_spill] sm:$0xff] }
 0x512   :  { %9071 = vmatprep.mubr.msk.bf16.mxu0 %vm10649_vm12, %v13455_v10 }
 0x519   :  { %9072 = vmatmul.mubr.msk.bf16.gmra.mrb[52].mxu0 %vm1625_vm13, %v11588_v60  ;;  %v10480_v60 = vld [vmem:[%s13418_s2 + $0x78] sm:$0xff]  }
 0x51a   :  { %9075 = vmatprep.mubr.msk.bf16.mxu0 %vm10649_vm12, %v13455_v10 }
 0x521   :  { %9076 = vmatmul.mubr.msk.bf16.gmra.mrb[56].mxu0 %vm1625_vm13, %v11592_v13  ;;  %v13522_v13 = vld [vmem:[#allocation34_spill] sm:$0xff] }
 0x522   :  { %9079 = vmatprep.mubr.msk.bf16.mxu0 %vm10649_vm12, %v13455_v10 }
 0x529   :  { %9080 = vmatmul.mubr.msk.bf16.gmra.mrb[60].mxu0 %vm1625_vm13, %v11340_v57  ;;  %v13521_v57 = vld [vmem:[#allocation33_spill] sm:$0xff] }
 0x52a   :  { %9087 = vmatprep.mubr.msk.bf16.mxu0 %vm10649_vm12, %v13455_v10 }
 0x531   :  { %9088 = vmatmul.mubr.msk.bf16.vlgmr.msra.gmra.mrb[12].mxu0 %vm1625_vm13, %v13520_v1 }
 0x532   :  { %9091 = vmatprep.mubr.msk.bf16.mxu0 %vm10649_vm12, %v13455_v10  ;;  %9140 = vmatpush3.bf16.msra.mxu0 %v10479_v14 }
 0x533   :  { %9141 = vmatprep.subr.bf16.mxu0 %v13455_v10 }
 0x536   :  { %9142 = vmatpush3.bf16.msra.mxu0 %v10480_v60 }
 0x537   :  { %9195 = vmatprep.subr.bf16.mxu0 %v13455_v10 }
 0x539   :  { %9092 = vmatmul.mubr.msk.bf16.gmra.mrb[16].mxu0 %vm1625_vm13, %v13521_v57 }
 0x53a   :  { %9095 = vmatprep.mubr.msk.bf16.mxu0 %vm10649_vm12, %v13455_v10 }
 0x541   :  { %9096 = vmatmul.mubr.msk.bf16.gmra.mrb[20].mxu0 %vm1625_vm13, %v11555_v24  ;;  %v13524_v24 = vrot.slane %v11542_v63, 1  ;;  %v10482_v63 = vld [vmem:[%s13418_s2 + $0x88] sm:$0xff]  }
 0x542   :  { %9099 = vmatprep.mubr.msk.bf16.mxu0 %vm10649_vm12, %v13455_v10 }
 0x549   :  { %9100 = vmatmul.mubr.msk.bf16.gmra.mrb[24].mxu0 %vm1625_vm13, %v13522_v13 }
 0x54a   :  { %9103 = vmatprep.mubr.msk.bf16.mxu0 %vm10649_vm12, %v13455_v10 }
 0x551   :  { %9104 = vmatmul.mubr.msk.bf16.gmra.mrb[28].mxu0 %vm1625_vm13, %v11564_v39  ;;  %v10481_v39 = vld [vmem:[%s13418_s2 + $0x80] sm:$0xff]  }
 0x552   :  { %9107 = vmatprep.mubr.msk.bf16.mxu0 %vm10649_vm12, %v13455_v10 }
 0x559   :  { %9108 = vmatmul.mubr.msk.bf16.gmra.mrb[32].mxu0 %vm1625_vm13, %v13523_v11 }
 0x55a   :  { %9111 = vmatprep.mubr.msk.bf16.mxu0 %vm10649_vm12, %v13455_v10 }
 0x561   :  { %9112 = vmatmul.mubr.msk.bf16.gmra.mrb[36].mxu0 %vm1625_vm13, %v11572_v32  ;;  %v13525_v32 = vld [vmem:[#allocation36_spill] sm:$0xff] }
 0x562   :  { %9115 = vmatprep.mubr.msk.bf16.mxu0 %vm10649_vm12, %v13455_v10 }
 0x569   :  { %9116 = vmatmul.mubr.msk.bf16.gmra.mrb[40].mxu0 %vm1625_vm13, %v11597_v2  ;;  %v13526_v2 = vld [vmem:[#allocation37_spill] sm:$0xff] }
 0x56a   :  { %9119 = vmatprep.mubr.msk.bf16.mxu0 %vm10649_vm12, %v13455_v10 }
 0x571   :  { %9120 = vmatmul.mubr.msk.bf16.gmra.mrb[44].mxu0 %vm1625_vm13, %v11600_v52  ;;  %v13527_v52 = vld [vmem:[#allocation38_spill] sm:$0xff] }
 0x572   :  { %9123 = vmatprep.mubr.msk.bf16.mxu0 %vm10649_vm12, %v13455_v10 }
 0x579   :  { %9124 = vmatmul.mubr.msk.bf16.gmra.mrb[48].mxu0 %vm1625_vm13, %v11603_v21  ;;  %v13528_v21 = vld [vmem:[#allocation39_spill] sm:$0xff] }
 0x57a   :  { %9127 = vmatprep.mubr.msk.bf16.mxu0 %vm10649_vm12, %v13455_v10 }
 0x581   :  { %9128 = vmatmul.mubr.msk.bf16.gmra.mrb[52].mxu0 %vm1625_vm13, %v11606_v17  ;;  %v13529_v17 = vld [vmem:[#allocation40_spill] sm:$0xff] }
 0x582   :  { %9131 = vmatprep.mubr.msk.bf16.mxu0 %vm10649_vm12, %v13455_v10 }
 0x589   :  { %9132 = vmatmul.mubr.msk.bf16.gmra.mrb[56].mxu0 %vm1625_vm13, %v11611_v38  ;;  %v13530_v38 = vld [vmem:[#allocation41_spill] sm:$0xff] }
 0x58a   :  { %9135 = vmatprep.mubr.msk.bf16.mxu0 %vm10649_vm12, %v13455_v10 }
 0x591   :  { %9136 = vmatmul.mubr.msk.bf16.gmra.mrb[60].mxu0 %vm1625_vm13, %v13524_v24 }
 0x592   :  { %9143 = vmatprep.mubr.msk.bf16.mxu0 %vm10649_vm12, %v13455_v10 }
 0x599   :  { %9144 = vmatmul.mubr.msk.bf16.vlgmr.msra.gmra.mrb[12].mxu0 %vm1625_vm13, %v11615_v51  ;;  %v13531_v51 = vld [vmem:[#allocation42_spill] sm:$0xff] }
 0x59a   :  { %9147 = vmatprep.mubr.msk.bf16.mxu0 %vm10649_vm12, %v13455_v10  ;;  %9196 = vmatpush3.bf16.msra.mxu0 %v10481_v39 }
 0x59b   :  { %9197 = vmatprep.subr.bf16.mxu0 %v13455_v10 }
 0x59e   :  { %9198 = vmatpush3.bf16.msra.mxu0 %v10482_v63 }
 0x5a1   :  { %9148 = vmatmul.mubr.msk.bf16.gmra.mrb[16].mxu0 %vm1625_vm13, %v13525_v32 }
 0x5a2   :  { %9151 = vmatprep.mubr.msk.bf16.mxu0 %vm10649_vm12, %v13455_v10 }
 0x5a9   :  { %9152 = vmatmul.mubr.msk.bf16.gmra.mrb[20].mxu0 %vm1625_vm13, %v11632_v16  ;;  %v13532_v16 = vrot.slane %v11280_v46, 2  ;;  %v13535_v46 = vrot.slane %v11407_v43, 3  ;;  %v13537_v43 = vld [vmem:[#allocation15_spill] sm:$0xff] }
 0x5aa   :  { %9155 = vmatprep.mubr.msk.bf16.mxu0 %vm10649_vm12, %v13455_v10 }
 0x5b1   :  { %9156 = vmatmul.mubr.msk.bf16.gmra.mrb[24].mxu0 %vm1625_vm13, %v11635_v25  ;;  %v13533_v25 = vld [vmem:[#allocation9_spill] sm:$0xff] }
 0x5b2   :  { %9159 = vmatprep.mubr.msk.bf16.mxu0 %vm10649_vm12, %v13455_v10 }
 0x5b9   :  { %9160 = vmatmul.mubr.msk.bf16.gmra.mrb[28].mxu0 %vm1625_vm13, %v13526_v2 }
 0x5ba   :  { %9163 = vmatprep.mubr.msk.bf16.mxu0 %vm10649_vm12, %v13455_v10 }
 0x5c1   :  { %9164 = vmatmul.mubr.msk.bf16.gmra.mrb[32].mxu0 %vm1625_vm13, %v13527_v52 }
 0x5c2   :  { %9167 = vmatprep.mubr.msk.bf16.mxu0 %vm10649_vm12, %v13455_v10 }
 0x5c9   :  { %9168 = vmatmul.mubr.msk.bf16.gmra.mrb[36].mxu0 %vm1625_vm13, %v13528_v21 }
 0x5ca   :  { %9171 = vmatprep.mubr.msk.bf16.mxu0 %vm10649_vm12, %v13455_v10 }
 0x5d1   :  { %9172 = vmatmul.mubr.msk.bf16.gmra.mrb[40].mxu0 %vm1625_vm13, %v13529_v17 }
 0x5d2   :  { %9175 = vmatprep.mubr.msk.bf16.mxu0 %vm10649_vm12, %v13455_v10 }
 0x5d9   :  { %9176 = vmatmul.mubr.msk.bf16.gmra.mrb[44].mxu0 %vm1625_vm13, %v13530_v38 }
 0x5da   :  { %9179 = vmatprep.mubr.msk.bf16.mxu0 %vm10649_vm12, %v13455_v10 }
 0x5e1   :  { %9180 = vmatmul.mubr.msk.bf16.gmra.mrb[48].mxu0 %vm1625_vm13, %v13531_v51 }
 0x5e2   :  { %9183 = vmatprep.mubr.msk.bf16.mxu0 %vm10649_vm12, %v13455_v10 }
 0x5e9   :  { %9184 = vmatmul.mubr.msk.bf16.gmra.mrb[52].mxu0 %vm1625_vm13, %v11679_v56  ;;  %v3924_v56 = vrot.slane %v11742_v54, 3  ;;  %v12268_v54 = vpop.f32.mrb[80].mxu1 }
 0x5ea   :  { %9187 = vmatprep.mubr.msk.bf16.mxu0 %vm10649_vm12, %v13455_v10 }
 0x5eb   :  { %v3927_v23 = vsel %vm3920_vm8, %v3924_v56, %v13535_v46 }
 0x5f1   :  { %9188 = vmatmul.mubr.msk.bf16.gmra.mrb[56].mxu0 %vm1625_vm13, %v11684_v61  ;;  %v13534_v61 = vrot.slane %v11188_v19, 3  ;;  %v13536_v19 = vmov 0  }
 0x5f2   :  { %9191 = vmatprep.mubr.msk.bf16.mxu0 %vm10649_vm12, %v13455_v10  ;;  %4922 = vst.msk [vmem:[#allocation5] sm:$0xf] %vm4259_vm14, %v13536_v19  ;;  %4923 = vst.msk [vmem:[#allocation5 + $0x4] sm:$0xf] %vm4259_vm14, %v13536_v19 }
 0x5f3   :  { %v3925_v4 = vsel %vm3920_vm8, %v13534_v61, %v3924_v56  ;;  %4924 = vst.msk [vmem:[#allocation5 + $0x8] sm:$0xf] %vm4259_vm14, %v13536_v19  ;;  %4925 = vst.msk [vmem:[#allocation5 + $0xc] sm:$0xf] %vm4259_vm14, %v13536_v19 }
 0x5f4   :  { %4926 = vst.msk [vmem:[#allocation5 + $0x10] sm:$0xf] %vm4259_vm14, %v13536_v19  ;;  %4927 = vst.msk [vmem:[#allocation5 + $0x14] sm:$0xf] %vm4259_vm14, %v13536_v19 }
 0x5f5   :  { %4928 = vst.msk [vmem:[#allocation5 + $0x18] sm:$0xf] %vm4259_vm14, %v13536_v19  ;;  %4929 = vst.msk [vmem:[#allocation5 + $0x1c] sm:$0xf] %vm4259_vm14, %v13536_v19 }
 0x5f6   :  { %4930 = vst.msk [vmem:[#allocation5 + $0x20] sm:$0xf] %vm4259_vm14, %v13536_v19  ;;  %4931 = vst.msk [vmem:[#allocation5 + $0x24] sm:$0xf] %vm4259_vm14, %v13536_v19 }
 0x5f9   :  { %9192 = vmatmul.mubr.msk.bf16.gmra.mrb[60].mxu0 %vm1625_vm13, %v13532_v16 }
 0x5fa   :  { %9199 = vmatprep.mubr.msk.bf16.mxu0 %vm10649_vm12, %v13455_v10 }
 0x601   :  { %9200 = vmatmul.mubr.msk.bf16.vlgmr.msra.gmra.mrb[12].mxu0 %vm1625_vm13, %v13533_v25 }
 0x602   :  { %9203 = vmatprep.mubr.msk.bf16.mxu0 %vm10649_vm12, %v13455_v10 }
 0x609   :  { %9204 = vmatmul.mubr.msk.bf16.gmra.mrb[16].mxu0 %vm1625_vm13, %v3925_v4 }
 0x60a   :  { %9207 = vmatprep.mubr.msk.bf16.mxu0 %vm10649_vm12, %v13455_v10 }
 0x611   :  { %9208 = vmatmul.mubr.msk.bf16.gmra.mrb[20].mxu0 %vm1625_vm13, %v3927_v23 }
 0x612   :  { %9211 = vmatprep.mubr.msk.bf16.mxu0 %vm10649_vm12, %v13455_v10 }
 0x619   :  { %9212 = vmatmul.mubr.msk.bf16.gmra.mrb[24].mxu0 %vm1625_vm13, %v11690_v41  ;;  %v13538_v41 = vrot.slane %v13537_v43, 3 }
 0x61a   :  { %9215 = vmatprep.mubr.msk.bf16.mxu0 %vm10649_vm12, %v13455_v10 }
 0x621   :  { %9216 = vmatmul.mubr.msk.bf16.gmra.mrb[28].mxu0 %vm1625_vm13, %v11693_v26  ;;  %v8801_v26 = vpop.f32.mrb[81].mxu1 }
 0x622   :  { %9219 = vmatprep.mubr.msk.bf16.mxu0 %vm10649_vm12, %v13455_v10 }
 0x629   :  { %9220 = vmatmul.mubr.msk.bf16.gmra.mrb[32].mxu0 %vm1625_vm13, %v11696_v42  ;;  %v1798_v42 = vpop.f32.mrb[82].mxu1 }
 0x62a   :  { %9223 = vmatprep.mubr.msk.bf16.mxu0 %vm10649_vm12, %v13455_v10 }
 0x631   :  { %9224 = vmatmul.mubr.msk.bf16.gmra.mrb[36].mxu0 %vm1625_vm13, %v11699_v28  ;;  %v8802_v28 = vpop.f32.mrb[83].mxu1 }
 0x632   :  { %9227 = vmatprep.mubr.msk.bf16.mxu0 %vm10649_vm12, %v13455_v10 }
 0x639   :  { %9228 = vmatmul.mubr.msk.bf16.gmra.mrb[40].mxu0 %vm1625_vm13, %v11703_v37 }
 0x63a   :  { %9231 = vmatprep.mubr.msk.bf16.mxu0 %vm10649_vm12, %v13455_v10 }
 0x641   :  { %9232 = vmatmul.mubr.msk.bf16.gmra.mrb[44].mxu0 %vm1625_vm13, %v11706_v44 }
 0x642   :  { %9235 = vmatprep.mubr.msk.bf16.mxu0 %vm10649_vm12, %v13455_v10 }
 0x649   :  { %9236 = vmatmul.mubr.msk.bf16.gmra.mrb[48].mxu0 %vm1625_vm13, %v11713_v62 }
 0x64a   :  { %9239 = vmatprep.mubr.msk.bf16.mxu0 %vm10649_vm12, %v13455_v10 }
 0x651   :  { %9240 = vmatmul.mubr.msk.bf16.gmra.mrb[52].mxu0 %vm1625_vm13, %v11716_v35  ;;  %v10486_v35 = vld [vmem:[%s13417_s3 + $0x14] ss:$8 sps:$4 sm:$0xff]  }
 0x652   :  { %9243 = vmatprep.mubr.msk.bf16.mxu0 %vm10649_vm12, %v13455_v10  ;;  %8188 = vmatprep.mubr.msk.bf16.mxu1 %vm4853_vm15, %v10486_v35 }
 0x659   :  { %9244 = vmatmul.mubr.msk.bf16.gmra.mrb[56].mxu0 %vm1625_vm13, %v11721_v6 }
 0x65a   :  { %9247 = vmatprep.mubr.msk.bf16.mxu0 %vm10649_vm12, %v13455_v10 }
 0x661   :  { %9248 = vmatmul.mubr.msk.bf16.gmra.mrb[60].mxu0 %vm1625_vm13, %v13538_v41  ;;  %vm4633_vm13 = vcmask 1042432  }
 0x662   :  { %vm12307_vm5 = vmor %vm4633_vm13, %vm4634_vm4  ;;  %vm4943_vm13 = vcmask 516096   ;;  %vm5063_vm4 = vcmask 523264  }
 0x6d4   :  { %v4031_v37 = vpop.f32.mrb[12].mxu0 }
 0x6d5   :  { %v9731_v44 = vadd.f32 %v4031_v37, %v11843_v48  ;;  %v9201_v62 = vpop.f32.mrb[13].mxu0 }
 0x6d6   :  { %v4034_v6 = vpop.f32.mrb[14].mxu0 }
 0x6d7   :  { %v8410_v8 = vpack.c.bf16 %v9731_v44, %v9731_v44  ;;  %v9732_v36 = vadd.f32 %v4034_v6, %v11847_v30  ;;  %v9202_v47 = vpop.f32.mrb[15].mxu0 }
 0x6d9   :  { %4260 = vst.msk [vmem:[#allocation4] sm:$0xf] %vm4259_vm14, %v8410_v8  ;;  %v8411_v45 = vpack.c.bf16 %v9732_v36, %v9732_v36 }
 0x6db   :  { %4261 = vst.msk [vmem:[#allocation4 + $0x4] sm:$0xf] %vm4259_vm14, %v8411_v45 }
 0x6dc   :  { %v4039_v20 = vpop.f32.mrb[16].mxu0 }
 0x6dd   :  { %v9733_v48 = vadd.f32 %v4039_v20, %v11853_v12  ;;  %v9205_v50 = vpop.f32.mrb[17].mxu0 }
 0x6de   :  { %v4042_v14 = vpop.f32.mrb[18].mxu0 }
 0x6df   :  { %v8412_v1 = vpack.c.bf16 %v9733_v48, %v9733_v48  ;;  %v9734_v60 = vadd.f32 %v4042_v14, %v11857_v33  ;;  %v9206_v57 = vpop.f32.mrb[19].mxu0 }
 0x6e0   :  { %v12281_v13 = vld [vmem:[#allocation4] sm:$0xf] }
 0x6e1   :  { %4262 = vst.msk [vmem:[#allocation4 + $0x8] sm:$0xf] %vm4259_vm14, %v8412_v1  ;;  %v8413_v30 = vpack.c.bf16 %v9734_v60, %v9734_v60  ;;  %v4311_v32 = vshrl.u32 %v12281_v13, 16  ;;  %v4314_v12 = vshll.u32 %v12281_v13, 16 }
 0x6e2   :  { %v4286_v11 = vld [vmem:[#allocation4 + $0x4] sm:$0xf] }
 0x6e3   :  { %4263 = vst.msk [vmem:[#allocation4 + $0xc] sm:$0xf] %vm4259_vm14, %v8413_v30  ;;  %v4320_v24 = vshll.u32 %v4286_v11, 16  ;;  %v4324_v39 = vshrl.u32 %v4286_v11, 16  ;;  %v4313_v61 = vrot.slane %v4311_v32, 4  ;;  %v4316_v4 = vrot.slane %v4314_v12, 5 }
 0x6e4   :  { %v4047_v63 = vpop.f32.mrb[20].mxu0 }
 0x6e5   :  { %v9735_v2 = vadd.f32 %v4047_v63, %v11863_v3  ;;  %v9209_v52 = vpop.f32.mrb[21].mxu0  ;;  %v12287_v33 = vrot.slane %v4320_v24, 5  ;;  %v4326_v21 = vrot.slane %v4324_v39, 4 }
 0x6e6   :  { %v4050_v17 = vpop.f32.mrb[22].mxu0 }
 0x6e7   :  { %v8414_v38 = vpack.c.bf16 %v9735_v2, %v9735_v2  ;;  %v9736_v51 = vadd.f32 %v4050_v17, %v11867_v58  ;;  %v9210_v16 = vpop.f32.mrb[23].mxu0  ;;  %v4327_v25 = vor.u32 %v4326_v21, %v12287_v33  ;;  %v4317_v58 = vor.u32 %v4316_v4, %v4313_v61 }
 0x6e8   :  { %v4287_v56 = vld [vmem:[#allocation4 + $0x8] sm:$0xf] }
 0x6e9   :  { %4264 = vst.msk [vmem:[#allocation4 + $0x10] sm:$0xf] %vm4259_vm14, %v8414_v38  ;;  %v8415_v46 = vpack.c.bf16 %v9736_v51, %v9736_v51  ;;  %v4330_v23 = vshll.u32 %v4287_v56, 16  ;;  %v4334_v3 = vshrl.u32 %v4287_v56, 16  ;;  %v4328_v41 = vrot.slane %v4327_v25, 4 }
 0x6ea   :  { %v4288_v43 = vld [vmem:[#allocation4 + $0xc] sm:$0xf]  ;;  %v4318_v57 = vrot.slane %v4317_v58, 4 }
 0x6eb   :  { %4265 = vst.msk [vmem:[#allocation4 + $0x14] sm:$0xf] %vm4259_vm14, %v8415_v46  ;;  %v4332_v26 = vrot.slane %v4330_v23, 5  ;;  %v4340_v42 = vshll.u32 %v4288_v43, 16  ;;  %v4344_v28 = vshrl.u32 %v4288_v43, 16  ;;  %v4336_v44 = vrot.slane %v4334_v3, 4 }
 0x6ec   :  { %v4055_v37 = vpop.f32.mrb[24].mxu0  ;;  %v4323_v38 = vsel %vm10951_vm6, %v4318_v57, %v12287_v33  ;;  %v10487_v51 = vld [vmem:[%s13417_s3 + $0x24] ss:$8 sps:$4 sm:$0xff]  }
 0x6ed   :  { %v9737_v62 = vadd.f32 %v4055_v37, %v11873_v27  ;;  %v9213_v35 = vpop.f32.mrb[25].mxu0  ;;  %v4333_v8 = vsel %vm10951_vm6, %v4328_v41, %v4332_v26  ;;  %v4342_v36 = vrot.slane %v4340_v42, 5  ;;  %v4346_v47 = vrot.slane %v4344_v28, 4 }
 0x6ee   :  { %v4058_v45 = vpop.f32.mrb[26].mxu0  ;;  %v4337_v20 = vor.u32 %v4336_v44, %v4332_v26  ;;  %v4585_v24 = vmax.bf16 %v4333_v8, %v4286_v11  ;;  %v4584_v58 = vmax.bf16 %v4323_v38, %v12281_v13 }
 0x6ef   :  { %v8416_v48 = vpack.c.bf16 %v9737_v62, %v9737_v62  ;;  %v9738_v50 = vadd.f32 %v4058_v45, %v11877_v18  ;;  %v9214_v14 = vpop.f32.mrb[27].mxu0  ;;  %v4347_v1 = vor.u32 %v4346_v47, %v4342_v36 }
 0x6f0   :  { %v4289_v60 = vld [vmem:[#allocation4 + $0x10] sm:$0xf]  ;;  %v4338_v30 = vrot.slane %v4337_v20, 4  ;;  %v8170_v16 = vrot.slane %v4585_v24, 9 }
 0x6f1   :  { %4266 = vst.msk [vmem:[#allocation4 + $0x18] sm:$0xf] %vm4259_vm14, %v8416_v48  ;;  %v8417_v27 = vpack.c.bf16 %v9738_v50, %v9738_v50  ;;  %v4350_v39 = vshll.u32 %v4289_v60, 16  ;;  %v4354_v63 = vshrl.u32 %v4289_v60, 16  ;;  %v4348_v12 = vrot.slane %v4347_v1, 4 }
 0x6f2   :  { %v4343_v32 = vsel %vm10951_vm6, %v4338_v30, %v4342_v36  ;;  %v4290_v2 = vld [vmem:[#allocation4 + $0x14] sm:$0xf] }
 0x6f3   :  { %4267 = vst.msk [vmem:[#allocation4 + $0x1c] sm:$0xf] %vm4259_vm14, %v8417_v27  ;;  %v4352_v18 = vrot.slane %v4350_v39, 5  ;;  %v12301_v52 = vmax.bf16 %v4343_v32, %v4287_v56  ;;  %v4356_v21 = vrot.slane %v4354_v63, 4  ;;  %v4360_v17 = vshll.u32 %v4290_v2, 16 }
 0x6f4   :  { %v4063_v11 = vpop.f32.mrb[28].mxu0  ;;  %v4364_v25 = vshrl.u32 %v4290_v2, 16 }
 0x6f5   :  { %v9739_v61 = vadd.f32 %v4063_v11, %v11883_v34  ;;  %v9217_v4 = vpop.f32.mrb[29].mxu0  ;;  %v4353_v56 = vsel %vm10951_vm6, %v4348_v12, %v4352_v18  ;;  %v4638_v46 = vrot.slane %v12301_v52, 5  ;;  %v4357_v23 = vor.u32 %v4356_v21, %v4352_v18 }
 0x6f6   :  { %v4066_v3 = vpop.f32.mrb[30].mxu0  ;;  %v12315_v41 = vmax.bf16 %v4353_v56, %v4288_v43  ;;  %v4362_v33 = vrot.slane %v4360_v17, 5  ;;  %v4366_v26 = vrot.slane %v4364_v25, 4 }
 0x6f7   :  { %v8418_v42 = vpack.c.bf16 %v9739_v61, %v9739_v61  ;;  %v9740_v28 = vadd.f32 %v4066_v3, %v11887_v31  ;;  %v9218_v37 = vpop.f32.mrb[31].mxu0  ;;  %v4639_v34 = vsel %vm12307_vm5, %v8170_v16, %v4638_v46  ;;  %v4640_v44 = vrot.slane %v4638_v46, 4 }
 0x6f8   :  { %v4641_v62 = vrot.slane %v12315_v41, 5  ;;  %v4291_v35 = vld [vmem:[#allocation4 + $0x18] sm:$0xf]  ;;  %v4358_v8 = vrot.slane %v4357_v23, 4  ;;  %v4367_v36 = vor.u32 %v4366_v26, %v4362_v33  ;;  %v4731_v20 = vmax.bf16 %v4639_v34, %v4584_v58 }
 0x6f9   :  { %4268 = vst.msk [vmem:[#allocation4 + $0x20] sm:$0xf] %vm4259_vm14, %v8418_v42  ;;  %v8419_v43 = vpack.c.bf16 %v9740_v28, %v9740_v28  ;;  %v4370_v47 = vshll.u32 %v4291_v35, 16  ;;  %v4374_v45 = vshrl.u32 %v4291_v35, 16 }
 0x6fa   :  { %v4642_v31 = vsel %vm12307_vm5, %v4640_v44, %v4641_v62  ;;  %v4363_v13 = vsel %vm10951_vm6, %v4358_v8, %v4362_v33  ;;  %v4368_v48 = vrot.slane %v4367_v36, 4  ;;  %v4292_v50 = vld [vmem:[#allocation4 + $0x1c] sm:$0xf]  ;;  %v4643_v39 = vrot.slane %v4641_v62, 4 }
 0x6fb   :  { %4269 = vst.msk [vmem:[#allocation4 + $0x24] sm:$0xf] %vm4259_vm14, %v8419_v43  ;;  %v4732_v14 = vmax.bf16 %v4642_v31, %v4585_v24  ;;  %v4372_v1 = vrot.slane %v4370_v47, 5  ;;  %v12328_v57 = vmax.bf16 %v4363_v13, %v4289_v60  ;;  %v4376_v30 = vrot.slane %v4374_v45, 4 }
 0x6fc   :  { %v4071_v27 = vpop.f32.mrb[32].mxu0  ;;  %v4380_v63 = vshll.u32 %v4292_v50, 16  ;;  %v4384_v32 = vshrl.u32 %v4292_v50, 16 }
 0x6fd   :  { %v9741_v12 = vadd.f32 %v4071_v27, %v11893_v9  ;;  %v9221_v18 = vpop.f32.mrb[33].mxu0  ;;  %v8176_v21 = vcombine.low %v4731_v20, %v4732_v14  ;;  %v4373_v17 = vsel %vm10951_vm6, %v4368_v48, %v4372_v1  ;;  %v4644_v11 = vrot.slane %v12328_v57, 5 }
 0x6fe   :  { %v4074_v38 = vpop.f32.mrb[34].mxu0  ;;  %v12334_v16 = vmax.bf16 %v4373_v17, %v4290_v2  ;;  %v4377_v24 = vor.u32 %v4376_v30, %v4372_v1  ;;  %v4382_v60 = vrot.slane %v4380_v63, 5  ;;  %v4386_v25 = vrot.slane %v4384_v32, 4 }
 0x6ff   :  { %v8420_v61 = vpack.c.bf16 %v9741_v12, %v9741_v12  ;;  %v9742_v4 = vadd.f32 %v4074_v38, %v11897_v49  ;;  %v9222_v56 = vpop.f32.mrb[35].mxu0  ;;  %4868 = vmatpush1.bf16.msra.mxu1 %v8176_v21  ;;  %v4645_v9 = vsel %vm12307_vm5, %v4643_v39, %v4644_v11  ;;  %v4646_v46 = vrot.slane %v4644_v11, 4 }
 0x700   :  { %4869 = vmatprep.subr.bf16.mxu1 %v13536_v19  ;;  %v4647_v23 = vrot.slane %v12334_v16, 5  ;;  %v4293_v3 = vld [vmem:[#allocation4 + $0x20] sm:$0xf]  ;;  %v4378_v33 = vrot.slane %v4377_v24, 4  ;;  %v4387_v2 = vor.u32 %v4386_v25, %v4382_v60  ;;  %v4733_v37 = vmax.bf16 %v4645_v9, %v12301_v52 }
 0x701   :  { %4270 = vst.msk [vmem:[#allocation4 + $0x28] sm:$0xf] %vm4259_vm14, %v8420_v61  ;;  %v8421_v26 = vpack.c.bf16 %v9742_v4, %v9742_v4  ;;  %v4390_v42 = vshll.u32 %v4293_v3, 16  ;;  %v4394_v28 = vshrl.u32 %v4293_v3, 16 }
 0x702   :  { %v4648_v49 = vsel %vm12307_vm5, %v4646_v46, %v4647_v23  ;;  %v4383_v58 = vsel %vm10951_vm6, %v4378_v33, %v4382_v60  ;;  %v4388_v34 = vrot.slane %v4387_v2, 4  ;;  %v4294_v44 = vld [vmem:[#allocation4 + $0x24] sm:$0xf]  ;;  %v4649_v45 = vrot.slane %v4647_v23, 4 }
 0x703   :  { %4271 = vst.msk [vmem:[#allocation4 + $0x2c] sm:$0xf] %vm4259_vm14, %v8421_v26  ;;  %v4734_v62 = vmax.bf16 %v4648_v49, %v12315_v41  ;;  %v4392_v8 = vrot.slane %v4390_v42, 5  ;;  %v12349_v36 = vmax.bf16 %v4383_v58, %v4291_v35  ;;  %v4396_v43 = vrot.slane %v4394_v28, 4 }
 0x704   :  { %v4079_v47 = vpop.f32.mrb[36].mxu0  ;;  %v4400_v31 = vshll.u32 %v4294_v44, 16  ;;  %v4404_v20 = vshrl.u32 %v4294_v44, 16 }
 0x705   :  { %v9743_v13 = vadd.f32 %v4079_v47, %v11903_v55  ;;  %v9225_v52 = vpop.f32.mrb[37].mxu0  ;;  %v8177_v48 = vcombine.low %v4733_v37, %v4734_v62  ;;  %v4393_v14 = vsel %vm10951_vm6, %v4388_v34, %v4392_v8  ;;  %v4650_v1 = vrot.slane %v12349_v36, 5 }
 0x706   :  { %v4082_v30 = vpop.f32.mrb[38].mxu0  ;;  %v12355_v27 = vmax.bf16 %v4393_v14, %v4292_v50  ;;  %v4397_v41 = vor.u32 %v4396_v43, %v4392_v8  ;;  %v4402_v35 = vrot.slane %v4400_v31, 5  ;;  %v4406_v39 = vrot.slane %v4404_v20, 4 }
 0x707   :  { %v8422_v63 = vpack.c.bf16 %v9743_v13, %v9743_v13  ;;  %v9744_v32 = vadd.f32 %v4082_v30, %v11907_v0  ;;  %v9226_v12 = vpop.f32.mrb[39].mxu0  ;;  %4870 = vmatpush1.bf16.msra.mxu1 %v8177_v48  ;;  %v4651_v55 = vsel %vm12307_vm5, %v4649_v45, %v4650_v1  ;;  %v4652_v18 = vrot.slane %v4650_v1, 4 }
 0x708   :  { %4871 = vmatprep.subr.bf16.mxu1 %v13536_v19  ;;  %v4653_v21 = vrot.slane %v12355_v27, 5  ;;  %v4295_v17 = vld [vmem:[#allocation4 + $0x28] sm:$0xf]  ;;  %v4398_v11 = vrot.slane %v4397_v41, 4  ;;  %v4407_v50 = vor.u32 %v4406_v39, %v4402_v35  ;;  %v4735_v25 = vmax.bf16 %v4651_v55, %v12328_v57 }
 0x709   :  { %4272 = vst.msk [vmem:[#allocation4 + $0x30] sm:$0xf] %vm4259_vm14, %v8422_v63  ;;  %v8423_v38 = vpack.c.bf16 %v9744_v32, %v9744_v32  ;;  %v4410_v24 = vshll.u32 %v4295_v17, 16  ;;  %v4414_v60 = vshrl.u32 %v4295_v17, 16 }
 0x70a   :  { %v4654_v0 = vsel %vm12307_vm5, %v4652_v18, %v4653_v21  ;;  %v4403_v61 = vsel %vm10951_vm6, %v4398_v11, %v4402_v35  ;;  %v4408_v4 = vrot.slane %v4407_v50, 4  ;;  %v4296_v56 = vld [vmem:[#allocation4 + $0x2c] sm:$0xf]  ;;  %v4655_v26 = vrot.slane %v4653_v21, 4 }
 0x70b   :  { %4273 = vst.msk [vmem:[#allocation4 + $0x34] sm:$0xf] %vm4259_vm14, %v8423_v38  ;;  %v4736_v9 = vmax.bf16 %v4654_v0, %v12334_v16  ;;  %v4412_v46 = vrot.slane %v4410_v24, 5  ;;  %v12370_v23 = vmax.bf16 %v4403_v61, %v4293_v3  ;;  %v4416_v33 = vrot.slane %v4414_v60, 4 }
 0x70c   :  { %v4087_v2 = vpop.f32.mrb[40].mxu0  ;;  %v4420_v42 = vshll.u32 %v4296_v56, 16  ;;  %v4424_v28 = vshrl.u32 %v4296_v56, 16 }
 0x70d   :  { %v9745_v49 = vadd.f32 %v4087_v2, %v11913_v40  ;;  %v9229_v57 = vpop.f32.mrb[41].mxu0  ;;  %v8178_v37 = vcombine.low %v4735_v25, %v4736_v9  ;;  %v4413_v58 = vsel %vm10951_vm6, %v4408_v4, %v4412_v46  ;;  %v4656_v34 = vrot.slane %v12370_v23, 5 }
 0x70e   :  { %v4090_v62 = vpop.f32.mrb[42].mxu0  ;;  %v12376_v8 = vmax.bf16 %v4413_v58, %v4294_v44  ;;  %v4417_v16 = vor.u32 %v4416_v33, %v4412_v46  ;;  %v4422_v3 = vrot.slane %v4420_v42, 5  ;;  %v4426_v43 = vrot.slane %v4424_v28, 4 }
 0x70f   :  { %v8424_v47 = vpack.c.bf16 %v9745_v49, %v9745_v49  ;;  %v9746_v45 = vadd.f32 %v4090_v62, %v11917_v7  ;;  %v9230_v31 = vpop.f32.mrb[43].mxu0  ;;  %4872 = vmatpush1.bf16.msra.mxu1 %v8178_v37  ;;  %v4657_v40 = vsel %vm12307_vm5, %v4655_v26, %v4656_v34  ;;  %v4658_v20 = vrot.slane %v4656_v34, 4 }
 0x710   :  { %4873 = vmatprep.subr.bf16.mxu1 %v13536_v19  ;;  %v4659_v13 = vrot.slane %v12376_v8, 5  ;;  %v4297_v52 = vld [vmem:[#allocation4 + $0x30] sm:$0xf]  ;;  %v4418_v48 = vrot.slane %v4417_v16, 4  ;;  %v4427_v44 = vor.u32 %v4426_v43, %v4422_v3  ;;  %v4737_v41 = vmax.bf16 %v4657_v40, %v12349_v36 }
 0x711   :  { %4274 = vst.msk [vmem:[#allocation4 + $0x38] sm:$0xf] %vm4259_vm14, %v8424_v47  ;;  %v8425_v14 = vpack.c.bf16 %v9746_v45, %v9746_v45  ;;  %v4430_v1 = vshll.u32 %v4297_v52, 16  ;;  %v4434_v30 = vshrl.u32 %v4297_v52, 16 }
 0x712   :  { %v4660_v7 = vsel %vm12307_vm5, %v4658_v20, %v4659_v13  ;;  %v4423_v35 = vsel %vm10951_vm6, %v4418_v48, %v4422_v3  ;;  %v4428_v39 = vrot.slane %v4427_v44, 4  ;;  %v4298_v63 = vld [vmem:[#allocation4 + $0x34] sm:$0xf]  ;;  %v4661_v11 = vrot.slane %v4659_v13, 4 }
 0x713   :  { %4275 = vst.msk [vmem:[#allocation4 + $0x3c] sm:$0xf] %vm4259_vm14, %v8425_v14  ;;  %v4738_v32 = vmax.bf16 %v4660_v7, %v12355_v27  ;;  %v4432_v12 = vrot.slane %v4430_v1, 5  ;;  %v12391_v55 = vmax.bf16 %v4423_v35, %v4295_v17  ;;  %v4436_v18 = vrot.slane %v4434_v30, 4 }
 0x714   :  { %v4095_v21 = vpop.f32.mrb[44].mxu0  ;;  %v4440_v50 = vshll.u32 %v4298_v63, 16  ;;  %v4444_v38 = vshrl.u32 %v4298_v63, 16 }
 0x715   :  { %v9747_v24 = vadd.f32 %v4095_v21, %v11923_v53  ;;  %v9233_v36 = vpop.f32.mrb[45].mxu0  ;;  %v8179_v60 = vcombine.low %v4737_v41, %v4738_v32  ;;  %v4433_v0 = vsel %vm10951_vm6, %v4428_v39, %v4432_v12  ;;  %v4662_v25 = vrot.slane %v12391_v55, 5 }
 0x716   :  { %v4098_v61 = vpop.f32.mrb[46].mxu0  ;;  %v12397_v4 = vmax.bf16 %v4433_v0, %v4296_v56  ;;  %v4437_v27 = vor.u32 %v4436_v18, %v4432_v12  ;;  %v4442_v17 = vrot.slane %v4440_v50, 5  ;;  %v4446_v9 = vrot.slane %v4444_v38, 4 }
 0x717   :  { %v8426_v46 = vpack.c.bf16 %v9747_v24, %v9747_v24  ;;  %v9748_v33 = vadd.f32 %v4098_v61, %v11926_v59  ;;  %v9234_v2 = vpop.f32.mrb[47].mxu0  ;;  %4874 = vmatpush1.bf16.msra.mxu1 %v8179_v60  ;;  %v4663_v53 = vsel %vm12307_vm5, %v4661_v11, %v4662_v25  ;;  %v4664_v26 = vrot.slane %v4662_v25, 4 }
 0x718   :  { %4875 = vmatprep.subr.bf16.mxu1 %v13536_v19  ;;  %v4665_v42 = vrot.slane %v12397_v4, 5  ;;  %v4299_v28 = vld [vmem:[#allocation4 + $0x38] sm:$0xf]  ;;  %v4438_v49 = vrot.slane %v4437_v27, 4  ;;  %v4447_v56 = vor.u32 %v4446_v9, %v4442_v17  ;;  %v4739_v34 = vmax.bf16 %v4663_v53, %v12370_v23 }
 0x719   :  { %4276 = vst.msk [vmem:[#allocation4 + $0x40] sm:$0xf] %vm4259_vm14, %v8426_v46  ;;  %v8427_v57 = vpack.c.bf16 %v9748_v33, %v9748_v33  ;;  %v4450_v37 = vshll.u32 %v4299_v28, 16  ;;  %v4454_v58 = vshrl.u32 %v4299_v28, 16 }
 0x71a   :  { %v4666_v59 = vsel %vm12307_vm5, %v4664_v26, %v4665_v42  ;;  %v4443_v62 = vsel %vm10951_vm6, %v4438_v49, %v4442_v17  ;;  %v4448_v16 = vrot.slane %v4447_v56, 4  ;;  %v4300_v3 = vld [vmem:[#allocation4 + $0x3c] sm:$0xf]  ;;  %v4667_v20 = vrot.slane %v4665_v42, 4 }
 0x71b   :  { %4277 = vst.msk [vmem:[#allocation4 + $0x44] sm:$0xf] %vm4259_vm14, %v8427_v57  ;;  %v4740_v43 = vmax.bf16 %v4666_v59, %v12376_v8  ;;  %v4452_v47 = vrot.slane %v4450_v37, 5  ;;  %v12412_v45 = vmax.bf16 %v4443_v62, %v4297_v52  ;;  %v4456_v31 = vrot.slane %v4454_v58, 4 }
 0x71c   :  { %v4103_v40 = vpop.f32.mrb[48].mxu0  ;;  %v4460_v13 = vshll.u32 %v4300_v3, 16  ;;  %v4464_v48 = vshrl.u32 %v4300_v3, 16 }
 0x71d   :  { %v9749_v44 = vadd.f32 %v4103_v40, %v11932_v29  ;;  %v9237_v23 = vpop.f32.mrb[49].mxu0  ;;  %v8180_v14 = vcombine.low %v4739_v34, %v4740_v43  ;;  %v4453_v1 = vsel %vm10951_vm6, %v4448_v16, %v4452_v47  ;;  %v4668_v30 = vrot.slane %v12412_v45, 5 }
 0x71e   :  { %v4106_v7 = vpop.f32.mrb[50].mxu0  ;;  %v12418_v41 = vmax.bf16 %v4453_v1, %v4298_v63  ;;  %v4457_v8 = vor.u32 %v4456_v31, %v4452_v47  ;;  %v4462_v52 = vrot.slane %v4460_v13, 5  ;;  %v4466_v35 = vrot.slane %v4464_v48, 4 }
 0x71f   :  { %v8428_v39 = vpack.c.bf16 %v9749_v44, %v9749_v44  ;;  %v9750_v32 = vadd.f32 %v4106_v7, %v11934_v5  ;;  %v9238_v12 = vpop.f32.mrb[51].mxu0  ;;  %4876 = vmatpush1.bf16.msra.mxu1 %v8180_v14  ;;  %v4669_v29 = vsel %vm12307_vm5, %v4667_v20, %v4668_v30  ;;  %v4670_v18 = vrot.slane %v4668_v30, 4 }
 0x720   :  { %4877 = vmatprep.subr.bf16.mxu1 %v13536_v19  ;;  %v4671_v21 = vrot.slane %v12418_v41, 5  ;;  %v4301_v11 = vld [vmem:[#allocation4 + $0x40] sm:$0xf]  ;;  %v4458_v50 = vrot.slane %v4457_v8, 4  ;;  %v4467_v63 = vor.u32 %v4466_v35, %v4462_v52  ;;  %v4741_v60 = vmax.bf16 %v4669_v29, %v12391_v55  ;;  %v13542_v29 = vld [vmem:[#allocation7_spill] sm:$0xff] }
 0x721   :  { %4278 = vst.msk [vmem:[#allocation4 + $0x48] sm:$0xf] %vm4259_vm14, %v8428_v39  ;;  %v8429_v38 = vpack.c.bf16 %v9750_v32, %v9750_v32  ;;  %v4470_v24 = vshll.u32 %v4301_v11, 16  ;;  %v4474_v36 = vshrl.u32 %v4301_v11, 16 }
 0x722   :  { %v4672_v5 = vsel %vm12307_vm5, %v4670_v18, %v4671_v21  ;;  %v4463_v0 = vsel %vm10951_vm6, %v4458_v50, %v4462_v52  ;;  %v4468_v25 = vrot.slane %v4467_v63, 4  ;;  %v4302_v61 = vld [vmem:[#allocation4 + $0x44] sm:$0xf]  ;;  %v4673_v2 = vrot.slane %v4671_v21, 4 }
 0x723   :  { %4279 = vst.msk [vmem:[#allocation4 + $0x4c] sm:$0xf] %vm4259_vm14, %v8429_v38  ;;  %v4742_v27 = vmax.bf16 %v4672_v5, %v12397_v4  ;;  %v4472_v17 = vrot.slane %v4470_v24, 5  ;;  %v12433_v9 = vmax.bf16 %v4463_v0, %v4299_v28  ;;  %v4476_v46 = vrot.slane %v4474_v36, 4 }
 0x724   :  { %v4111_v33 = vpop.f32.mrb[52].mxu0  ;;  %v4480_v53 = vshll.u32 %v4302_v61, 16  ;;  %v4484_v26 = vshrl.u32 %v4302_v61, 16 }
 0x725   :  { %v9751_v42 = vadd.f32 %v4111_v33, %v11942_v22  ;;  %v9241_v55 = vpop.f32.mrb[53].mxu0  ;;  %v8181_v49 = vcombine.low %v4741_v60, %v4742_v27  ;;  %v4473_v56 = vsel %vm10951_vm6, %v4468_v25, %v4472_v17  ;;  %v4674_v57 = vrot.slane %v12433_v9, 5  ;;  %v13543_v60 = vld [vmem:[#allocation28_spill] sm:$0xff] }
 0x726   :  { %v4114_v37 = vpop.f32.mrb[54].mxu0  ;;  %v12439_v58 = vmax.bf16 %v4473_v56, %v4300_v3  ;;  %v4477_v4 = vor.u32 %v4476_v46, %v4472_v17  ;;  %v4482_v28 = vrot.slane %v4480_v53, 5  ;;  %v4486_v59 = vrot.slane %v4484_v26, 4 }
 0x727   :  { %v8430_v34 = vpack.c.bf16 %v9751_v42, %v9751_v42  ;;  %v9752_v62 = vadd.f32 %v4114_v37, %v11944_v15  ;;  %v9242_v16 = vpop.f32.mrb[55].mxu0  ;;  %4878 = vmatpush1.bf16.msra.mxu1 %v8181_v49  ;;  %v4675_v22 = vsel %vm12307_vm5, %v4673_v2, %v4674_v57  ;;  %v4676_v43 = vrot.slane %v4674_v57, 4 }
 0x728   :  { %4879 = vmatprep.subr.bf16.mxu1 %v13536_v19  ;;  %v4677_v47 = vrot.slane %v12439_v58, 5  ;;  %v4303_v31 = vld [vmem:[#allocation4 + $0x48] sm:$0xf]  ;;  %v4478_v40 = vrot.slane %v4477_v4, 4  ;;  %v4487_v3 = vor.u32 %v4486_v59, %v4482_v28  ;;  %v4743_v44 = vmax.bf16 %v4675_v22, %v12412_v45 }
 0x729   :  { %4280 = vst.msk [vmem:[#allocation4 + $0x50] sm:$0xf] %vm4259_vm14, %v8430_v34  ;;  %v8431_v20 = vpack.c.bf16 %v9752_v62, %v9752_v62  ;;  %v4490_v13 = vshll.u32 %v4303_v31, 16  ;;  %v4494_v48 = vshrl.u32 %v4303_v31, 16 }
 0x72a   :  { %v4678_v15 = vsel %vm12307_vm5, %v4676_v43, %v4677_v47  ;;  %v4483_v23 = vsel %vm10951_vm6, %v4478_v40, %v4482_v28  ;;  %v4488_v14 = vrot.slane %v4487_v3, 4  ;;  %v4304_v1 = vld [vmem:[#allocation4 + $0x4c] sm:$0xf]  ;;  %v4679_v39 = vrot.slane %v4677_v47, 4 }
 0x72b   :  { %4281 = vst.msk [vmem:[#allocation4 + $0x54] sm:$0xf] %vm4259_vm14, %v8431_v20  ;;  %v4744_v30 = vmax.bf16 %v4678_v15, %v12418_v41  ;;  %v4492_v7 = vrot.slane %v4490_v13, 5  ;;  %v12454_v8 = vmax.bf16 %v4483_v23, %v4301_v11  ;;  %v4496_v52 = vrot.slane %v4494_v48, 4 }
 0x72c   :  { %v4119_v35 = vpop.f32.mrb[56].mxu0  ;;  %v4500_v32 = vshll.u32 %v4304_v1, 16  ;;  %v4504_v12 = vshrl.u32 %v4304_v1, 16 }
 0x72d   :  { %v9753_v18 = vadd.f32 %v4119_v35, %v13542_v29  ;;  %v9245_v45 = vpop.f32.mrb[57].mxu0  ;;  %v8182_v21 = vcombine.low %v4743_v44, %v4744_v30  ;;  %v4493_v50 = vsel %vm10951_vm6, %v4488_v14, %v4492_v7  ;;  %v4680_v63 = vrot.slane %v12454_v8, 5 }
 0x72e   :  { %v4122_v38 = vpop.f32.mrb[58].mxu0  ;;  %v12460_v24 = vmax.bf16 %v4493_v50, %v4302_v61  ;;  %v4497_v41 = vor.u32 %v4496_v52, %v4492_v7  ;;  %v4502_v11 = vrot.slane %v4500_v32, 5  ;;  %v4506_v36 = vrot.slane %v4504_v12, 4 }
 0x72f   :  { %v8432_v5 = vpack.c.bf16 %v9753_v18, %v9753_v18  ;;  %v9754_v0 = vadd.f32 %v4122_v38, %v13543_v60  ;;  %v9246_v25 = vpop.f32.mrb[59].mxu0  ;;  %4880 = vmatpush1.bf16.msra.mxu1 %v8182_v21  ;;  %v4681_v27 = vsel %vm12307_vm5, %v4679_v39, %v4680_v63  ;;  %v4682_v17 = vrot.slane %v4680_v63, 4 }
 0x730   :  { %4881 = vmatprep.subr.bf16.mxu1 %v13536_v19  ;;  %v4683_v46 = vrot.slane %v12460_v24, 5  ;;  %v4305_v33 = vld [vmem:[#allocation4 + $0x50] sm:$0xf]  ;;  %v4498_v2 = vrot.slane %v4497_v41, 4  ;;  %v4507_v61 = vor.u32 %v4506_v36, %v4502_v11  ;;  %v4745_v49 = vmax.bf16 %v4681_v27, %v12433_v9 }
 0x731   :  { %4282 = vst.msk [vmem:[#allocation4 + $0x58] sm:$0xf] %vm4259_vm14, %v8432_v5  ;;  %v8433_v53 = vpack.c.bf16 %v9754_v0, %v9754_v0  ;;  %v4510_v26 = vshll.u32 %v4305_v33, 16  ;;  %v4514_v42 = vshrl.u32 %v4305_v33, 16 }
 0x732   :  { %v4684_v55 = vsel %vm12307_vm5, %v4682_v17, %v4683_v46  ;;  %v4503_v56 = vsel %vm10951_vm6, %v4498_v2, %v4502_v11  ;;  %v4508_v57 = vrot.slane %v4507_v61, 4  ;;  %v4306_v37 = vld [vmem:[#allocation4 + $0x54] sm:$0xf]  ;;  %v4685_v16 = vrot.slane %v4683_v46, 4 }
 0x733   :  { %4283 = vst.msk [vmem:[#allocation4 + $0x5c] sm:$0xf] %vm4259_vm14, %v8433_v53  ;;  %v4746_v4 = vmax.bf16 %v4684_v55, %v12439_v58  ;;  %v4512_v28 = vrot.slane %v4510_v26, 5  ;;  %v12475_v59 = vmax.bf16 %v4503_v56, %v4303_v31  ;;  %v4516_v34 = vrot.slane %v4514_v42, 4 }
 0x734   :  { %v4127_v62 = vpop.f32.mrb[60].mxu0  ;;  %v4520_v22 = vshll.u32 %v4306_v37, 16  ;;  %v4524_v43 = vshrl.u32 %v4306_v37, 16 }
 0x735   :  { %v9755_v47 = vadd.f32 %v4127_v62, %v12268_v54  ;;  %v9249_v9 = vpop.f32.mrb[61].mxu0  ;;  %v8183_v40 = vcombine.low %v4745_v49, %v4746_v4  ;;  %v4513_v3 = vsel %vm10951_vm6, %v4508_v57, %v4512_v28  ;;  %v4686_v20 = vrot.slane %v12475_v59, 5 }
 0x736   :  { %v4130_v13 = vpop.f32.mrb[62].mxu0  ;;  %v4603_v48 = vmax.bf16 %v4513_v3, %v4304_v1  ;;  %v4517_v58 = vor.u32 %v4516_v34, %v4512_v28  ;;  %v4522_v15 = vrot.slane %v4520_v22, 5  ;;  %v4526_v31 = vrot.slane %v4524_v43, 4 }
 0x737   :  { %v8434_v44 = vpack.c.bf16 %v9755_v47, %v9755_v47  ;;  %v9250_v23 = vpop.f32.mrb[63].mxu0  ;;  %4882 = vmatpush1.bf16.msra.mxu1 %v8183_v40  ;;  %v4687_v14 = vsel %vm12307_vm5, %v4685_v16, %v4686_v20  ;;  %v4688_v54 = vrot.slane %v4686_v20, 4 }
 0x738   :  { %4883 = vmatprep.subr.bf16.mxu1 %v13536_v19  ;;  %v4689_v30 = vrot.slane %v4603_v48, 5  ;;  %v4307_v7 = vld [vmem:[#allocation4 + $0x58] sm:$0xf]  ;;  %v4518_v52 = vrot.slane %v4517_v58, 4  ;;  %v4527_v35 = vor.u32 %v4526_v31, %v4522_v15  ;;  %v4747_v12 = vmax.bf16 %v4687_v14, %v12454_v8 }
 0x739   :  { %4284 = vst.msk [vmem:[#allocation4 + $0x60] sm:$0xf] %vm4259_vm14, %v8434_v44  ;;  %v4530_v39 = vshll.u32 %v4307_v7, 16  ;;  %v4534_v1 = vshrl.u32 %v4307_v7, 16  ;;  %vm4951_vm14 = vcmask 518145  }
 0x73a   :  { %v4690_v32 = vsel %vm12307_vm5, %v4688_v54, %v4689_v30  ;;  %v4523_v29 = vsel %vm10951_vm6, %v4518_v52, %v4522_v15  ;;  %v4528_v18 = vrot.slane %v4527_v35, 4  ;;  %v4308_v45 = vld [vmem:[#allocation4 + $0x5c] sm:$0xf]  ;;  %v4691_v41 = vrot.slane %v4689_v30, 4 }
 0x73b   :  { %v4748_v21 = vmax.bf16 %v4690_v32, %v12460_v24  ;;  %v4532_v50 = vrot.slane %v4530_v39, 5  ;;  %v4604_v63 = vmax.bf16 %v4523_v29, %v4305_v33  ;;  %v4536_v38 = vrot.slane %v4534_v1, 4  ;;  %v10484_v32 = vld [vmem:[%s13417_s3 + $0x10] ss:$8 sps:$4 sm:$0xff]  }
 0x73c   :  { %v4540_v11 = vshll.u32 %v4308_v45, 16  ;;  %v4544_v36 = vshrl.u32 %v4308_v45, 16  ;;  %v10651_v54 = vmov 65535   ;;  %v10490_v29 = vld [vmem:[%s13418_s2 + $0xb0] sm:$0xff]  }
 0x73d   :  { %v8184_v5 = vcombine.low %v4747_v12, %v4748_v21  ;;  %v4533_v60 = vsel %vm10951_vm6, %v4528_v18, %v4532_v50  ;;  %v4692_v0 = vrot.slane %v4604_v63, 5  ;;  %v4537_v25 = vor.u32 %v4536_v38, %v4532_v50  ;;  %v10489_v12 = vld [vmem:[%s13417_s3 + $0x20] ss:$8 sps:$4 sm:$0xff]   ;;  %v10491_v18 = vld [vmem:[%s13418_s2 + $0xb8] sm:$0xff]  }
 0x73e   :  { %v4605_v8 = vmax.bf16 %v4533_v60, %v4306_v37  ;;  %v4542_v27 = vrot.slane %v4540_v11, 5  ;;  %v4546_v17 = vrot.slane %v4544_v36, 4  ;;  %v4862_v30 = vsel %vm2100_vm10, 4294967295, %v10651_v54  ;;  %v10493_v21 = vld [vmem:[%s13418_s2 + $0xc8] sm:$0xff]   ;;  %v8171_v50 = vld [vmem:[%s13419_s4 + $0x1] ss:$0 sm:$0xff] }
 0x73f   :  { %4884 = vmatpush1.bf16.msra.mxu1 %v8184_v5  ;;  %v4693_v46 = vsel %vm12307_vm5, %v4691_v41, %v4692_v0  ;;  %v4538_v24 = vrot.slane %v4537_v25, 4  ;;  %v4694_v33 = vrot.slane %v4692_v0, 4  ;;  %v4863_v35 = vsel %vm593_vm3, %v4862_v30, 0  ;;  %v10497_v54 = vld [vmem:[%s13418_s2 + $0x90] sm:$0xff]  }
 0x740   :  { %4885 = vmatprep.subr.bf16.mxu1 %v13536_v19  ;;  %v4695_v2 = vrot.slane %v4605_v8, 5  ;;  %v4309_v61 = vld [vmem:[#allocation4 + $0x60] sm:$0xf]  ;;  %v4547_v53 = vor.u32 %v4546_v17, %v4542_v27  ;;  %v4749_v56 = vmax.bf16 %v4693_v46, %v12475_v59 }
 0x741   :  { %v4543_v26 = vsel %vm10951_vm6, %v4538_v24, %v4542_v27  ;;  %v4550_v42 = vshll.u32 %v4309_v61, 16  ;;  %v4554_v55 = vshrl.u32 %v4309_v61, 16 }
 0x742   :  { %v4696_v49 = vsel %vm12307_vm5, %v4694_v33, %v4695_v2  ;;  %v4606_v57 = vmax.bf16 %v4543_v26, %v4307_v7  ;;  %v4548_v4 = vrot.slane %v4547_v53, 4  ;;  %v4697_v9 = vrot.slane %v4695_v2, 4 }
 0x743   :  { %v4750_v37 = vmax.bf16 %v4696_v49, %v4603_v48  ;;  %v4552_v28 = vrot.slane %v4550_v42, 5  ;;  %v4556_v34 = vrot.slane %v4554_v55, 4  ;;  %v12551_v49 = vld [vmem:[#allocation5 + $0x24] sm:$0xf] }
 0x744   :  { %v4698_v62 = vrot.slane %v4606_v57, 5 }
 0x745   :  { %v8185_v16 = vcombine.low %v4749_v56, %v4750_v37  ;;  %v4553_v22 = vsel %vm10951_vm6, %v4548_v4, %v4552_v28  ;;  %v4557_v43 = vor.u32 %v4556_v34, %v4552_v28  ;;  %vm4932_vm6 = vcmask 518144   ;;  %v4995_v4 = vld [vmem:[#allocation5] sm:$0x8] }
 0x746   :  { %v4607_v47 = vmax.bf16 %v4553_v22, %v4308_v45  ;;  %v4699_v59 = vsel %vm12307_vm5, %v4697_v9, %v4698_v62  ;;  %v4700_v3 = vrot.slane %v4698_v62, 4  ;;  %v10492_v45 = vld [vmem:[%s13418_s2 + $0xc0] sm:$0xff]   ;;  %4933 = vst.msk [vmem:[#allocation5 + $0x28] sm:$0x7] %vm4932_vm6, %v13536_v19 }
 0x747   :  { %4886 = vmatpush1.bf16.msra.mxu1 %v8185_v16  ;;  %v4558_v40 = vrot.slane %v4557_v43, 4  ;;  %v4751_v15 = vmax.bf16 %v4699_v59, %v4604_v63  ;;  %v5438_v28 = vld [vmem:[#allocation5] sm:$0xf] }
 0x748   :  { %4887 = vmatprep.subr.bf16.mxu1 %v13536_v19  ;;  %v4701_v20 = vrot.slane %v4607_v47, 5 }
 0x749   :  { %v4608_v13 = vmax.bf16 %v4558_v40, %v4309_v61 }
 0x74a   :  { %v4702_v48 = vsel %vm12307_vm5, %v4700_v3, %v4701_v20  ;;  %v4703_v58 = vrot.slane %v4701_v20, 4 }
 0x74b   :  { %v4752_v6 = vmax.bf16 %v4702_v48, %v4605_v8  ;;  %v4704_v31 = vrot.slane %v4608_v13, 5 }
 0x74d   :  { %v8186_v44 = vcombine.low %v4751_v15, %v4752_v6  ;;  %v4705_v23 = vsel %vm12307_vm5, %v4703_v58, %v4704_v31  ;;  %v4706_v14 = vrot.slane %v4704_v31, 4  ;;  %v5772_v56 = vld [vmem:[#allocation5 + $0x28] sm:$0x7]  ;;  %vm5622_vm5 = vsmask.f32 4352 }
 0x74e   :  { %v4753_v7 = vmax.bf16 %v4705_v23, %v4606_v57  ;;  %v12554_v22 = vcombine.low %v12551_v49, %v5772_v56  ;;  %v10501_v56 = vld [vmem:[%s13418_s2 + $0xa0] sm:$0xff]  }
 0x74f   :  { %4888 = vmatpush1.bf16.msra.mxu1 %v8186_v44  ;;  %v4754_v52 = vmax.bf16 %v4706_v14, %v4607_v47  ;;  %v12558_v47 = vld [vmem:[#allocation5 + $0x14] sm:$0xf] }
 0x750   :  { %4889 = vmatprep.subr.bf16.mxu1 %v13536_v19  ;;  %v5820_v6 = vshrl.u32 %v12554_v22, 16  ;;  %v5823_v44 = vshll.u32 %v12554_v22, 16 }
 0x751   :  { %v8187_v39 = vcombine.low %v4753_v7, %v4754_v52 }
 0x753   :  { %v4865_v1 = vand.u32 %v8187_v39, %v4863_v35 }
 0x755   :  { %4890 = vmatpush1.bf16.msra.mxu1 %v4865_v1 }
 0x756   :  { %9251 = vmatprep.subr.bf16.mxu1 %v13455_v10 }
 0x758   :  { %4900 = vmatmul.mubr.bf16.vlgmr.msra.gmra.mrb[84].mxu1 %v10484_v32 }
 0x759   :  { %8189 = vmatprep.mubr.msk.bf16.mxu1 %vm4853_vm15, %v10487_v51  ;;  %9252 = vmatpush3.bf16.msra.mxu1 %v10490_v29  ;;  %vm4956_vm15 = vcmask 517120   ;;  %v5822_v51 = vrot.slane %v5820_v6, 2 }
 0x75a   :  { %9253 = vmatprep.subr.bf16.mxu1 %v13455_v10 }
 0x75d   :  { %9254 = vmatpush3.bf16.msra.mxu1 %v10491_v18 }
 0x75e   :  { %9255 = vmatprep.subr.bf16.mxu1 %v13455_v10 }
 0x760   :  { %4908 = vmatmul.mubr.bf16.gmra.mrb[88].mxu1 %v10489_v12 }
 0x761   :  { %9259 = vmatprep.mubr.msk.bf16.mxu1 %vm10649_vm12, %v13455_v10  ;;  %9256 = vmatpush3.bf16.msra.mxu1 %v10492_v45  ;;  %v5825_v45 = vrot.slane %v5823_v44, 3 }
 0x762   :  { %9257 = vmatprep.subr.bf16.mxu1 %v13455_v10 }
 0x765   :  { %9258 = vmatpush3.bf16.msra.mxu1 %v10493_v21 }
 0x766   :  { %9279 = vmatprep.subr.bf16.mxu1 %v13455_v10 }
 0x82b   :  { %v4901_v63 = vpop.f32.mrb[84].mxu1 }
 0x82c   :  { %v4902_v38 = vadd.f32 %v8171_v50, %v4901_v63  ;;  %v4903_v41 = vpop.f32.mrb[85].mxu1 }
 0x82d   :  { %v4904_v11 = vpop.f32.mrb[86].mxu1 }
 0x82e   :  { %10626 = vtanh.f32 %v4902_v38  ;;  %v4905_v36 = vadd.f32 %v8171_v50, %v4904_v11  ;;  %v4906_v5 = vpop.f32.mrb[87].mxu1 }
 0x830   :  { %10628 = vtanh.f32 %v4905_v36 }
 0x833   :  { %v4909_v60 = vpop.f32.mrb[88].mxu1 }
 0x834   :  { %v4910_v0 = vadd.f32 %v8171_v50, %v4909_v60  ;;  %v4911_v25 = vpop.f32.mrb[89].mxu1 }
 0x835   :  { %v4912_v8 = vpop.f32.mrb[90].mxu1 }
 0x836   :  { %10630 = vtanh.f32 %v4910_v0  ;;  %v4913_v27 = vadd.f32 %v8171_v50, %v4912_v8  ;;  %v4914_v17 = vpop.f32.mrb[91].mxu1  ;;  %v10500_v50 = vld [vmem:[%s13418_s2 + $0x98] sm:$0xff]  }
 0x838   :  { %v10627_v19 = vpop.eup %10626  ;;  %10632 = vtanh.f32 %v4913_v27 }
 0x839   :  { %v8435_v46 = vpack.c.bf16 %v10627_v19, %v10627_v19 }
 0x83a   :  { %v10629_v24 = vpop.eup %10628 }
 0x83b   :  { %v4937_v33 = vrot.slane %v8435_v46, 5  ;;  %v4920_v2 = vpack.c.bf16 %v10629_v24, %v10627_v19  ;;  %v8436_v61 = vpack.c.bf16 %v10629_v24, %v10629_v24  ;;  %v4996_v19 = vld [vmem:[#allocation5 + $0x24] sm:$0x7] }
 0x83d   :  { %v4938_v53 = vrot.slane %v4937_v33, 4  ;;  %v4949_v26 = vrot.slane %v8436_v61, 7  ;;  %v8192_v42 = vrot.slane %v8436_v61, 10  ;;  %4942 = vst.msk [vmem:[#allocation5 + $0x4] sm:$0x8] %vm4941_vm7, %v4937_v33 }
 0x83e   :  { %4946 = vst.msk [vmem:[#allocation5 + $0x8] sm:$0xc] %vm4945_vm9, %v4920_v2  ;;  %v5439_v33 = vld [vmem:[#allocation5 + $0x24] sm:$0x1]  ;;  %v6241_v2 = vrot.slane %v12554_v22, 3 }
 0x83f   :  { %4952 = vst.msk [vmem:[#allocation5 + $0xc] sm:$0x6] %vm4951_vm14, %v4949_v26 }
 0x840   :  { %4957 = vst.msk [vmem:[#allocation5 + $0x10] sm:$0x3] %vm4956_vm15, %v8192_v42  ;;  %v10631_v55 = vpop.eup %10630 }
 0x841   :  { %4944 = vst.msk [vmem:[#allocation5 + $0x8] sm:$0x1] %vm4943_vm13, %v4938_v53  ;;  %v8437_v57 = vpack.c.bf16 %v10631_v55, %v10631_v55 }
 0x842   :  { %v10633_v37 = vpop.eup %10632 }
 0x843   :  { %v4961_v34 = vrot.slane %v8437_v57, 7  ;;  %v8194_v62 = vrot.slane %v8437_v57, 10  ;;  %v8438_v16 = vpack.c.bf16 %v10633_v37, %v10633_v37 }
 0x844   :  { %v12556_v43 = vld [vmem:[#allocation5 + $0x4] sm:$0xf] }
 0x845   :  { %4963 = vst.msk [vmem:[#allocation5 + $0x18] sm:$0x6] %vm4951_vm14, %v4961_v34  ;;  %v4970_v9 = vrot.slane %v8438_v16, 5  ;;  %v8196_v40 = vcombine.low %v4995_v4, %v12556_v43  ;;  %v8235_v59 = vcombine.low %v5438_v28, %v12556_v43  ;;  %v5266_v46 = vld [vmem:[#allocation5 + $0x4] sm:$0xc]  ;;  %v12633_v4 = vor.u32 %v5825_v45, %v5822_v51 }
 0x846   :  { %4967 = vst.msk [vmem:[#allocation5 + $0x1c] sm:$0x3] %vm4956_vm15, %v8194_v62  ;;  %v12567_v20 = vld [vmem:[#allocation5 + $0xc] sm:$0xf]  ;;  %v5948_v28 = vld [vmem:[#allocation5] sm:$0xe] }
 0x847   :  { %4977 = vst.msk [vmem:[#allocation5 + $0x20] sm:$0xc] %vm4945_vm9, %v8438_v16  ;;  %v12569_v13 = vld [vmem:[#allocation5 + $0x10] sm:$0xf]  ;;  %v4971_v48 = vrot.slane %v4970_v9, 4  ;;  %v5457_v31 = vshll.u32 %v8235_v59, 16 }
 0x848   :  { %v12565_v3 = vld [vmem:[#allocation5 + $0x8] sm:$0xf]  ;;  %4974 = vst.msk [vmem:[#allocation5 + $0x1c] sm:$0x8] %vm4941_vm7, %v4970_v9  ;;  %v12578_v15 = vcombine.low %v12569_v13, %v12558_v47  ;;  %v5030_v23 = vrot.slane %v8196_v40, 3  ;;  %v5455_v52 = vshrl.u32 %v8235_v59, 16  ;;  %v8277_v8 = vcombine.low %v12567_v20, %v12569_v13 }
 0x849   :  { %v12574_v58 = vcombine.low %v12565_v3, %v12567_v20  ;;  %4975 = vst.msk [vmem:[#allocation5 + $0x20] sm:$0x1] %vm4943_vm13, %v4971_v48  ;;  %v5459_v35 = vrot.slane %v5457_v31, 1  ;;  %v5624_v18 = vshrl.u32 %v8196_v40, 16  ;;  %v8276_v21 = vcombine.low %v12556_v43, %v12565_v3  ;;  %v12601_v63 = vld [vmem:[#allocation5 + $0x8] sm:$0xf] }
 0x84a   :  { %v5468_v39 = vshll.u32 %v12578_v15, 16  ;;  %v5627_v36 = vshll.u32 %v8196_v40, 16  ;;  %v5472_v0 = vshrl.u32 %v12578_v15, 16  ;;  %v5033_v27 = vrot.slane %v12578_v15, 3  ;;  %v12641_v59 = vld [vmem:[#allocation5 + $0xc] sm:$0xff]  }
 0x84b   :  { %v5031_v14 = vrot.slane %v12574_v58, 3  ;;  %v5461_v30 = vshll.u32 %v12574_v58, 16  ;;  %v5465_v7 = vshrl.u32 %v12574_v58, 16  ;;  %v5460_v29 = vor.u32 %v5459_v35, %v5455_v52  ;;  %v10502_v52 = vld [vmem:[%s13418_s2 + $0xa8] sm:$0xff]   ;;  %v8300_v20 = vld [vmem:[%s13419_s4 + $0x1] ss:$0 sm:$0xff] }
 0x84c   :  { %v12592_v12 = vld [vmem:[#allocation5 + $0x18] sm:$0xf]  ;;  %v5470_v41 = vrot.slane %v5468_v39, 1  ;;  %v5626_v53 = vrot.slane %v5624_v18, 3  ;;  %v5629_v26 = vrot.slane %v5627_v36, 4  ;;  %v12630_v57 = vcombine.low %v5266_v46, %v12601_v63  ;;  %6388 = vrot.lane.b32.xlu0 %v8300_v20, %s10650_s25 }
 0x84d   :  { %v5032_v1 = vsel %vm3920_vm8, %v5030_v23, %v5031_v14  ;;  %v5463_v32 = vrot.slane %v5461_v30, 1  ;;  %v5631_v11 = vrot.slane %v5465_v7, 3  ;;  %v5632_v25 = vrot.slane %v5461_v30, 4  ;;  %v12646_v30 = vld [vmem:[#allocation5 + $0x24] sm:$0xf]  ;;  %v10559_v20 = vld [vmem:[%s13418_s2 + $0x238] sm:$0xff]  }
 0x84e   :  { %9260 = vmatmul.mubr.msk.bf16.vlgmr.msra.gmra.mrb[92].mxu1 %vm5063_vm4, %v5032_v1  ;;  %v8278_v42 = vcombine.low %v12558_v47, %v12592_v12  ;;  %v5635_v9 = vrot.slane %v5472_v0, 3  ;;  %v5034_v40 = vsel %vm3920_vm8, %v5031_v14, %v5033_v27  ;;  %v5474_v48 = vor.u32 %v5472_v0, %v5470_v41  ;;  %v10540_v47 = vld [vmem:[%s13417_s3 + $0x30] ss:$8 sps:$4 sm:$0xff]  }
 0x84f   :  { %9263 = vmatprep.mubr.msk.bf16.mxu1 %vm10649_vm12, %v13455_v10  ;;  %9280 = vmatpush3.bf16.msra.mxu1 %v10497_v54  ;;  %v5467_v38 = vor.u32 %v5465_v7, %v5463_v32  ;;  %v12603_v5 = vld [vmem:[#allocation5 + $0x1c] sm:$0xf]  ;;  %v12607_v60 = vsel %vm77_vm1, %v5460_v29, %v5463_v32  ;;  %v5633_v16 = vor.u32 %v5632_v25, %v5631_v11  ;;  %v5636_v31 = vrot.slane %v5468_v39, 4  ;;  %v12661_v32 = vld [vmem:[#allocation5 + $0x14] sm:$0xff]  }
 0x850   :  { %9281 = vmatprep.subr.bf16.mxu1 %v13455_v10  ;;  %v12615_v17 = vcombine.low %v12592_v12, %v12603_v5  ;;  %v12621_v61 = vld [vmem:[#allocation5 + $0x20] sm:$0xf]  ;;  %v5630_v54 = vor.u32 %v5629_v26, %v5626_v53  ;;  %v8266_v7 = vcombine.low %v5948_v28, %v12556_v43  ;;  %v5793_v11 = vshrl.u32 %v12641_v59, 16 }
 0x851   :  { %v12618_v24 = vsel %vm77_vm1, %v5467_v38, %v5470_v41  ;;  %v12637_v34 = vcombine.low %v12621_v61, %v5439_v33  ;;  %v8200_v44 = vcombine.low %v12621_v61, %v4996_v19  ;;  %v5637_v18 = vor.u32 %v5636_v31, %v5635_v9  ;;  %v12673_v0 = vld [vmem:[#allocation5 + $0x1c] sm:$0xff]  }
 0x852   :  { %v5035_v55 = vrot.slane %v12615_v17, 3  ;;  %v5475_v37 = vshll.u32 %v12615_v17, 16  ;;  %v5479_v62 = vshrl.u32 %v12615_v17, 16  ;;  %v12666_v29 = vsel %vm5622_vm5, %v5630_v54, %v5633_v16 }
 0x853   :  { %9282 = vmatpush3.bf16.msra.mxu1 %v10500_v50  ;;  %v5483_v23 = vshll.u32 %v12637_v34, 16  ;;  %v8246_v50 = vcombine.low %v12621_v61, %v12646_v30  ;;  %v5785_v38 = vshrl.u32 %v12630_v57, 16  ;;  %v5788_v41 = vshll.u32 %v12630_v57, 16 }
 0x854   :  { %9283 = vmatprep.subr.bf16.mxu1 %v13455_v10  ;;  %v5477_v6 = vrot.slane %v5475_v37, 1  ;;  %v5036_v14 = vsel %vm3920_vm8, %v5033_v27, %v5035_v55  ;;  %v5639_v1 = vrot.slane %v5479_v62, 3  ;;  %v5640_v45 = vrot.slane %v5475_v37, 4 }
 0x855   :  { %v12663_v51 = vrot.slane %v5483_v23, 1  ;;  %v5037_v36 = vrot.slane %v8200_v44, 3  ;;  %v12680_v27 = vsel %vm5622_vm5, %v5633_v16, %v5637_v18  ;;  %v5644_v46 = vshrl.u32 %v8246_v50, 16 }
 0x856   :  { %9264 = vmatmul.mubr.msk.bf16.gmra.mrb[96].mxu1 %vm5063_vm4, %v5034_v40  ;;  %v12658_v35 = vsel %vm77_vm1, %v5474_v48, %v5477_v6  ;;  %v5481_v39 = vor.u32 %v5479_v62, %v5477_v6  ;;  %v5641_v19 = vor.u32 %v5640_v45, %v5639_v1  ;;  %v5647_v33 = vshll.u32 %v8246_v50, 16 }
 0x857   :  { %9267 = vmatprep.mubr.msk.bf16.mxu1 %vm10649_vm12, %v13455_v10  ;;  %9284 = vmatpush3.bf16.msra.mxu1 %v10501_v56  ;;  %v5787_v53 = vrot.slane %v5785_v38, 2  ;;  %v5790_v26 = vrot.slane %v5788_v41, 3  ;;  %v5795_v37 = vrot.slane %v5793_v11, 2  ;;  %v5796_v28 = vshll.u32 %v12641_v59, 16 }
 0x858   :  { %9285 = vmatprep.subr.bf16.mxu1 %v13455_v10  ;;  %v12677_v25 = vsel %vm77_vm1, %v5481_v39, %v12663_v51  ;;  %v12684_v56 = vsel %vm5622_vm5, %v5637_v18, %v5641_v19  ;;  %v5802_v62 = vshrl.u32 %v12661_v32, 16  ;;  %v5646_v9 = vrot.slane %v5644_v46, 3 }
 0x859   :  { %v5649_v40 = vrot.slane %v5647_v33, 4  ;;  %v5791_v16 = vor.u32 %v5790_v26, %v5787_v53  ;;  %v5805_v48 = vshll.u32 %v12661_v32, 16  ;;  %v5798_v6 = vrot.slane %v5796_v28, 3 }
 0x85a   :  { %v5804_v31 = vrot.slane %v5802_v62, 2  ;;  %v5811_v44 = vshrl.u32 %v12673_v0, 16  ;;  %v5814_v23 = vshll.u32 %v12673_v0, 16  ;;  %v5960_v39 = vrot.slane %v8266_v7, 1 }
 0x85b   :  { %9286 = vmatpush3.bf16.msra.mxu1 %v10502_v52  ;;  %v12694_v54 = vor.u32 %v5649_v40, %v5646_v9  ;;  %v5807_v52 = vrot.slane %v5805_v48, 3  ;;  %v5961_v1 = vrot.slane %v12574_v58, 1  ;;  %v5799_v18 = vor.u32 %v5798_v6, %v5795_v37  ;;  %v6222_v37 = vld [vmem:[#allocation5 + $0x4] sm:$0x8] }
 0x85c   :  { %9307 = vmatprep.subr.bf16.mxu1 %v13455_v10  ;;  %v5813_v45 = vrot.slane %v5811_v44, 2  ;;  %v5816_v50 = vrot.slane %v5814_v23, 3  ;;  %v5965_v46 = vrot.slane %v12615_v17, 1  ;;  %v5967_v26 = vrot.slane %v12637_v34, 1 }
 0x85d   :  { %v12700_v38 = vsel %vm5622_vm5, %v5641_v19, %v12694_v54  ;;  %v5808_v41 = vor.u32 %v5807_v52, %v5804_v31  ;;  %v12703_v11 = vsel %vm593_vm3, %v5960_v39, %v5961_v1  ;;  %v12707_v33 = vsel %vm3093_vm11, %v5791_v16, %v5799_v18 }
 0x85e   :  { %9268 = vmatmul.mubr.msk.bf16.gmra.mrb[100].mxu1 %vm5063_vm4, %v5036_v14  ;;  %v5963_v14 = vrot.slane %v12578_v15, 1  ;;  %v5817_v7 = vor.u32 %v5816_v50, %v5813_v45  ;;  %v8279_v62 = vcombine.low %v12603_v5, %v12621_v61  ;;  %v8290_v9 = vcombine.low %v6222_v37, %v12601_v63  ;;  %v10504_v45 = vld [vmem:[%s13418_s2 + $0xd0] sm:$0xff]   ;;  %v10516_v37 = vld [vmem:[%s13418_s2 + $0xf8] sm:$0xff]  }
 0x85f   :  { %9271 = vmatprep.mubr.msk.bf16.mxu1 %vm10649_vm12, %v13455_v10  ;;  %v12714_v28 = vsel %vm3093_vm11, %v5799_v18, %v5808_v41  ;;  %v12732_v48 = vsel %vm593_vm3, %v5965_v46, %v5967_v26  ;;  %v6235_v6 = vrot.slane %v12641_v59, 3  ;;  %v5038_v31 = vsel %vm3920_vm8, %v5035_v55, %v5037_v36  ;;  %v4978_v18 = vld [vmem:[#allocation5] sm:$0xf] }
 0x860   :  { %v12710_v53 = vsel %vm593_vm3, %v5961_v1, %v5963_v14  ;;  %v12717_v19 = vsel %vm593_vm3, %v5963_v14, %v5965_v46  ;;  %v12723_v40 = vsel %vm3093_vm11, %v5808_v41, %v5817_v7  ;;  %v12727_v16 = vsel %vm3093_vm11, %v5817_v7, %v12633_v4  ;;  %v10507_v14 = vld [vmem:[%s13418_s2 + $0xe0] sm:$0xff]   ;;  %v10508_v41 = vld [vmem:[%s13418_s2 + $0xe8] sm:$0xff]   ;;  %v10512_v7 = vld [vmem:[%s13418_s2 + $0xf0] sm:$0xff]  }
 0x861   :  { %v6234_v44 = vrot.slane %v8290_v9, 3  ;;  %v6237_v63 = vrot.slane %v12661_v32, 3  ;;  %v6239_v23 = vrot.slane %v12673_v0, 3  ;;  %v8210_v50 = vcombine.low %v4978_v18, %v12556_v43  ;;  %v10539_v43 = vld [vmem:[%s13418_s2 + $0x1a8] sm:$0xff]  }
 0x862   :  { %v5309_v46 = vrot.slane %v12630_v57, 2  ;;  %v5312_v57 = vrot.slane %v12661_v32, 2  ;;  %v5314_v32 = vrot.slane %v12673_v0, 2  ;;  %v10520_v0 = vld [vmem:[%s13418_s2 + $0x118] sm:$0xff]   ;;  %v8280_v3 = vcombine.low %v12646_v30, %v12646_v30 }
 0x863   :  { %v12744_v52 = vsel %vm3920_vm8, %v6234_v44, %v6235_v6  ;;  %v12747_v39 = vsel %vm3920_vm8, %v6235_v6, %v6237_v63  ;;  %v12750_v1 = vsel %vm3920_vm8, %v6237_v63, %v6239_v23  ;;  %v12755_v55 = vsel %vm3920_vm8, %v6239_v23, %v6241_v2  ;;  %v10518_v6 = vld [vmem:[%s13418_s2 + $0x108] sm:$0xff]  }
 0x864   :  { %v5315_v44 = vsel %vm2100_vm10, %v5312_v57, %v5314_v32 }
 0x866   :  { %9272 = vmatmul.mubr.msk.bf16.gmra.mrb[104].mxu1 %vm5063_vm4, %v5038_v31  ;;  %v5275_v31 = vld [vmem:[#allocation5 + $0x28] sm:$0x3] }
 0x867   :  { %9275 = vmatprep.mubr.msk.bf16.mxu1 %vm10649_vm12, %v13455_v10  ;;  %v8225_v63 = vcombine.low %v12551_v49, %v5275_v31  ;;  %v10519_v49 = vld [vmem:[%s13418_s2 + $0x110] sm:$0xff]  }
 0x869   :  { %v5316_v23 = vrot.slane %v8225_v63, 2 }
 0x86b   :  { %v5317_v18 = vsel %vm2100_vm10, %v5314_v32, %v5316_v23 }
 0x86e   :  { %9276 = vmatmul.mubr.msk.bf16.gmra.mrb[108].mxu1 %vm5063_vm4, %v5037_v36  ;;  %v10505_v36 = vld [vmem:[%s13418_s2 + $0xd8] sm:$0xff]  }
 0x86f   :  { %9287 = vmatprep.mubr.msk.bf16.mxu1 %vm10649_vm12, %v13455_v10 }
 0x876   :  { %9288 = vmatmul.mubr.msk.bf16.vlgmr.msra.gmra.mrb[92].mxu1 %vm5063_vm4, %v8210_v50 }
 0x877   :  { %9291 = vmatprep.mubr.msk.bf16.mxu1 %vm10649_vm12, %v13455_v10  ;;  %9308 = vmatpush3.bf16.msra.mxu1 %v10504_v45  ;;  %v10521_v45 = vld [vmem:[%s13418_s2 + $0x120] sm:$0xff]  }
 0x878   :  { %9309 = vmatprep.subr.bf16.mxu1 %v13455_v10 }
 0x87b   :  { %9310 = vmatpush3.bf16.msra.mxu1 %v10505_v36 }
 0x87c   :  { %9311 = vmatprep.subr.bf16.mxu1 %v13455_v10 }
 0x87e   :  { %9292 = vmatmul.mubr.msk.bf16.gmra.mrb[96].mxu1 %vm5063_vm4, %v12574_v58  ;;  %v8211_v58 = vcombine.low %v12621_v61, %v12621_v61 }
 0x87f   :  { %9295 = vmatprep.mubr.msk.bf16.mxu1 %vm10649_vm12, %v13455_v10  ;;  %9312 = vmatpush3.bf16.msra.mxu1 %v10507_v14 }
 0x880   :  { %9313 = vmatprep.subr.bf16.mxu1 %v13455_v10 }
 0x883   :  { %9314 = vmatpush3.bf16.msra.mxu1 %v10508_v41 }
 0x884   :  { %9335 = vmatprep.subr.bf16.mxu1 %v13455_v10 }
 0x886   :  { %9296 = vmatmul.mubr.msk.bf16.gmra.mrb[100].mxu1 %vm5063_vm4, %v12578_v15  ;;  %v5310_v15 = vrot.slane %v12641_v59, 2  ;;  %v10517_v59 = vld [vmem:[%s13418_s2 + $0x100] sm:$0xff]  }
 0x887   :  { %9299 = vmatprep.mubr.msk.bf16.mxu1 %vm10649_vm12, %v13455_v10 }
 0x888   :  { %v5313_v9 = vsel %vm2100_vm10, %v5310_v15, %v5312_v57  ;;  %v10543_v57 = vld [vmem:[%s13418_s2 + $0x1d8] sm:$0xff]  }
 0x88e   :  { %9300 = vmatmul.mubr.msk.bf16.gmra.mrb[104].mxu1 %vm5063_vm4, %v12615_v17  ;;  %v5311_v17 = vsel %vm2100_vm10, %v5309_v46, %v5310_v15 }
 0x88f   :  { %9303 = vmatprep.mubr.msk.bf16.mxu1 %vm10649_vm12, %v13455_v10 }
 0x896   :  { %9304 = vmatmul.mubr.msk.bf16.gmra.mrb[108].mxu1 %vm5063_vm4, %v8211_v58 }
 0x897   :  { %9315 = vmatprep.mubr.msk.bf16.mxu1 %vm10649_vm12, %v13455_v10 }
 0x89e   :  { %9316 = vmatmul.mubr.msk.bf16.vlgmr.msra.gmra.mrb[92].mxu1 %vm5063_vm4, %v5311_v17  ;;  %v10541_v17 = vld [vmem:[%s13417_s3 + $0x40] ss:$8 sps:$4 sm:$0xff]  }
 0x89f   :  { %9319 = vmatprep.mubr.msk.bf16.mxu1 %vm10649_vm12, %v13455_v10  ;;  %9336 = vmatpush3.bf16.msra.mxu1 %v10512_v7 }
 0x8a0   :  { %9337 = vmatprep.subr.bf16.mxu1 %v13455_v10 }
 0x8a3   :  { %9338 = vmatpush3.bf16.msra.mxu1 %v10516_v37  ;;  %v10542_v37 = vld [vmem:[%s13418_s2 + $0x1d0] sm:$0xff]  }
 0x8a4   :  { %9339 = vmatprep.subr.bf16.mxu1 %v13455_v10 }
 0x8a6   :  { %9320 = vmatmul.mubr.msk.bf16.gmra.mrb[96].mxu1 %vm5063_vm4, %v5313_v9  ;;  %v10545_v9 = vld [vmem:[%s13418_s2 + $0x1e8] sm:$0xff]  }
 0x8a7   :  { %9323 = vmatprep.mubr.msk.bf16.mxu1 %vm10649_vm12, %v13455_v10  ;;  %9340 = vmatpush3.bf16.msra.mxu1 %v10517_v59  ;;  %v10544_v59 = vld [vmem:[%s13418_s2 + $0x1e0] sm:$0xff]  }
 0x8a8   :  { %9341 = vmatprep.subr.bf16.mxu1 %v13455_v10 }
 0x8ab   :  { %9342 = vmatpush3.bf16.msra.mxu1 %v10518_v6 }
 0x8ac   :  { %9363 = vmatprep.subr.bf16.mxu1 %v13455_v10 }
 0x8ae   :  { %9324 = vmatmul.mubr.msk.bf16.gmra.mrb[100].mxu1 %vm5063_vm4, %v5315_v44 }
 0x8af   :  { %9327 = vmatprep.mubr.msk.bf16.mxu1 %vm10649_vm12, %v13455_v10 }
 0x8b6   :  { %9328 = vmatmul.mubr.msk.bf16.gmra.mrb[104].mxu1 %vm5063_vm4, %v5317_v18 }
 0x8b7   :  { %9331 = vmatprep.mubr.msk.bf16.mxu1 %vm10649_vm12, %v13455_v10 }
 0x8be   :  { %9332 = vmatmul.mubr.msk.bf16.gmra.mrb[108].mxu1 %vm5063_vm4, %v5316_v23  ;;  %v6389_v6 = vpop.permute.xlu0 %6388 }
 0x8bf   :  { %9343 = vmatprep.mubr.msk.bf16.mxu1 %vm10649_vm12, %v13455_v10 }
 0x8c6   :  { %9344 = vmatmul.mubr.msk.bf16.vlgmr.msra.gmra.mrb[92].mxu1 %vm5063_vm4, %v12607_v60  ;;  %v10522_v60 = vld [vmem:[%s13418_s2 + $0x128] sm:$0xff]  }
 0x8c7   :  { %9347 = vmatprep.mubr.msk.bf16.mxu1 %vm10649_vm12, %v13455_v10  ;;  %9364 = vmatpush3.bf16.msra.mxu1 %v10519_v49 }
 0x8c8   :  { %9365 = vmatprep.subr.bf16.mxu1 %v13455_v10 }
 0x8cb   :  { %9366 = vmatpush3.bf16.msra.mxu1 %v10520_v0 }
 0x8cc   :  { %9367 = vmatprep.subr.bf16.mxu1 %v13455_v10 }
 0x8ce   :  { %9348 = vmatmul.mubr.msk.bf16.gmra.mrb[96].mxu1 %vm5063_vm4, %v12618_v24  ;;  %v5487_v24 = vshrl.u32 %v12637_v34, 16  ;;  %v10536_v34 = vld [vmem:[%s13418_s2 + $0x198] sm:$0xff]  }
 0x8cf   :  { %9351 = vmatprep.mubr.msk.bf16.mxu1 %vm10649_vm12, %v13455_v10  ;;  %9368 = vmatpush3.bf16.msra.mxu1 %v10521_v45 }
 0x8d0   :  { %9369 = vmatprep.subr.bf16.mxu1 %v13455_v10  ;;  %v5489_v50 = vor.u32 %v5487_v24, %v12663_v51  ;;  %v10524_v51 = vld [vmem:[%s13418_s2 + $0x138] sm:$0xff]  }
 0x8d3   :  { %9370 = vmatpush3.bf16.msra.mxu1 %v10522_v60 }
 0x8d4   :  { %9391 = vmatprep.subr.bf16.mxu1 %v13455_v10 }
 0x8d6   :  { %9352 = vmatmul.mubr.msk.bf16.gmra.mrb[100].mxu1 %vm5063_vm4, %v12658_v35  ;;  %v10523_v35 = vld [vmem:[%s13418_s2 + $0x130] sm:$0xff]  }
 0x8d7   :  { %9355 = vmatprep.mubr.msk.bf16.mxu1 %vm10649_vm12, %v13455_v10 }
 0x8de   :  { %9356 = vmatmul.mubr.msk.bf16.gmra.mrb[104].mxu1 %vm5063_vm4, %v12677_v25  ;;  %v10525_v25 = vld [vmem:[%s13418_s2 + $0x140] sm:$0xff]  }
 0x8df   :  { %9359 = vmatprep.mubr.msk.bf16.mxu1 %vm10649_vm12, %v13455_v10 }
 0x8e6   :  { %9360 = vmatmul.mubr.msk.bf16.gmra.mrb[108].mxu1 %vm5063_vm4, %v5489_v50 }
 0x8e7   :  { %9371 = vmatprep.mubr.msk.bf16.mxu1 %vm10649_vm12, %v13455_v10 }
 0x8ee   :  { %9372 = vmatmul.mubr.msk.bf16.vlgmr.msra.gmra.mrb[92].mxu1 %vm5063_vm4, %v12666_v29  ;;  %v10526_v29 = vld [vmem:[%s13418_s2 + $0x148] sm:$0xff]  }
 0x8ef   :  { %9375 = vmatprep.mubr.msk.bf16.mxu1 %vm10649_vm12, %v13455_v10  ;;  %9392 = vmatpush3.bf16.msra.mxu1 %v10523_v35 }
 0x8f0   :  { %9393 = vmatprep.subr.bf16.mxu1 %v13455_v10 }
 0x8f3   :  { %9394 = vmatpush3.bf16.msra.mxu1 %v10524_v51 }
 0x8f4   :  { %9395 = vmatprep.subr.bf16.mxu1 %v13455_v10 }
 0x8f6   :  { %9376 = vmatmul.mubr.msk.bf16.gmra.mrb[96].mxu1 %vm5063_vm4, %v12680_v27  ;;  %v10527_v27 = vld [vmem:[%s13418_s2 + $0x150] sm:$0xff]  }
 0x8f7   :  { %9379 = vmatprep.mubr.msk.bf16.mxu1 %vm10649_vm12, %v13455_v10  ;;  %9396 = vmatpush3.bf16.msra.mxu1 %v10525_v25  ;;  %v10546_v25 = vld [vmem:[%s13418_s2 + $0x1b0] sm:$0xff]  }
 0x8f8   :  { %9397 = vmatprep.subr.bf16.mxu1 %v13455_v10 }
 0x8fb   :  { %9398 = vmatpush3.bf16.msra.mxu1 %v10526_v29 }
 0x8fc   :  { %9419 = vmatprep.subr.bf16.mxu1 %v13455_v10 }
 0x8fe   :  { %9380 = vmatmul.mubr.msk.bf16.gmra.mrb[100].mxu1 %vm5063_vm4, %v12684_v56  ;;  %v10528_v56 = vld [vmem:[%s13418_s2 + $0x158] sm:$0xff]  }
 0x8ff   :  { %9383 = vmatprep.mubr.msk.bf16.mxu1 %vm10649_vm12, %v13455_v10 }
 0x906   :  { %9384 = vmatmul.mubr.msk.bf16.gmra.mrb[104].mxu1 %vm5063_vm4, %v12700_v38  ;;  %v10530_v38 = vld [vmem:[%s13418_s2 + $0x168] sm:$0xff]  }
 0x907   :  { %9387 = vmatprep.mubr.msk.bf16.mxu1 %vm10649_vm12, %v13455_v10 }
 0x90e   :  { %9388 = vmatmul.mubr.msk.bf16.gmra.mrb[108].mxu1 %vm5063_vm4, %v12694_v54  ;;  %v10529_v54 = vld [vmem:[%s13418_s2 + $0x160] sm:$0xff]  }
 0x90f   :  { %9399 = vmatprep.mubr.msk.bf16.mxu1 %vm10649_vm12, %v13455_v10 }
 0x916   :  { %9400 = vmatmul.mubr.msk.bf16.vlgmr.msra.gmra.mrb[92].mxu1 %vm5063_vm4, %v12707_v33  ;;  %v10531_v33 = vld [vmem:[%s13418_s2 + $0x170] sm:$0xff]  }
 0x917   :  { %9403 = vmatprep.mubr.msk.bf16.mxu1 %vm10649_vm12, %v13455_v10  ;;  %9420 = vmatpush3.bf16.msra.mxu1 %v10527_v27  ;;  %v10547_v27 = vld [vmem:[%s13418_s2 + $0x1b8] sm:$0xff]  }
 0x918   :  { %9421 = vmatprep.subr.bf16.mxu1 %v13455_v10 }
 0x91b   :  { %9422 = vmatpush3.bf16.msra.mxu1 %v10528_v56  ;;  %v10548_v56 = vld [vmem:[%s13418_s2 + $0x1c0] sm:$0xff]  }
 0x91c   :  { %9423 = vmatprep.subr.bf16.mxu1 %v13455_v10 }
 0x91e   :  { %9404 = vmatmul.mubr.msk.bf16.gmra.mrb[96].mxu1 %vm5063_vm4, %v12714_v28  ;;  %v10532_v28 = vld [vmem:[%s13418_s2 + $0x178] sm:$0xff]  }
 0x91f   :  { %9407 = vmatprep.mubr.msk.bf16.mxu1 %vm10649_vm12, %v13455_v10  ;;  %9424 = vmatpush3.bf16.msra.mxu1 %v10529_v54  ;;  %v10549_v54 = vld [vmem:[%s13418_s2 + $0x1c8] sm:$0xff]  }
 0x920   :  { %9425 = vmatprep.subr.bf16.mxu1 %v13455_v10 }
 0x923   :  { %9426 = vmatpush3.bf16.msra.mxu1 %v10530_v38  ;;  %v10550_v38 = vld [vmem:[%s13418_s2 + $0x1f0] sm:$0xff]  }
 0x924   :  { %9447 = vmatprep.subr.bf16.mxu1 %v13455_v10 }
 0x926   :  { %9408 = vmatmul.mubr.msk.bf16.gmra.mrb[100].mxu1 %vm5063_vm4, %v12723_v40 }
 0x927   :  { %9411 = vmatprep.mubr.msk.bf16.mxu1 %vm10649_vm12, %v13455_v10 }
 0x92e   :  { %9412 = vmatmul.mubr.msk.bf16.gmra.mrb[104].mxu1 %vm5063_vm4, %v12727_v16 }
 0x92f   :  { %9415 = vmatprep.mubr.msk.bf16.mxu1 %vm10649_vm12, %v13455_v10 }
 0x936   :  { %9416 = vmatmul.mubr.msk.bf16.gmra.mrb[108].mxu1 %vm5063_vm4, %v12633_v4  ;;  %v10533_v4 = vld [vmem:[%s13418_s2 + $0x180] sm:$0xff]  }
 0x937   :  { %9427 = vmatprep.mubr.msk.bf16.mxu1 %vm10649_vm12, %v13455_v10 }
 0x93e   :  { %9428 = vmatmul.mubr.msk.bf16.vlgmr.msra.gmra.mrb[92].mxu1 %vm5063_vm4, %v12703_v11  ;;  %v10534_v11 = vld [vmem:[%s13418_s2 + $0x188] sm:$0xff]  }
 0x93f   :  { %9431 = vmatprep.mubr.msk.bf16.mxu1 %vm10649_vm12, %v13455_v10  ;;  %9448 = vmatpush3.bf16.msra.mxu1 %v10531_v33  ;;  %v10551_v33 = vld [vmem:[%s13418_s2 + $0x1f8] sm:$0xff]  }
 0x940   :  { %9449 = vmatprep.subr.bf16.mxu1 %v13455_v10 }
 0x943   :  { %9450 = vmatpush3.bf16.msra.mxu1 %v10532_v28  ;;  %v10552_v28 = vld [vmem:[%s13418_s2 + $0x200] sm:$0xff]  }
 0x944   :  { %9451 = vmatprep.subr.bf16.mxu1 %v13455_v10 }
 0x946   :  { %9432 = vmatmul.mubr.msk.bf16.gmra.mrb[96].mxu1 %vm5063_vm4, %v12710_v53  ;;  %v10535_v53 = vld [vmem:[%s13418_s2 + $0x190] sm:$0xff]  }
 0x947   :  { %9435 = vmatprep.mubr.msk.bf16.mxu1 %vm10649_vm12, %v13455_v10  ;;  %9452 = vmatpush3.bf16.msra.mxu1 %v10533_v4  ;;  %v10553_v4 = vld [vmem:[%s13418_s2 + $0x208] sm:$0xff]  }
 0x948   :  { %9453 = vmatprep.subr.bf16.mxu1 %v13455_v10 }
 0x94b   :  { %9454 = vmatpush3.bf16.msra.mxu1 %v10534_v11  ;;  %v10554_v11 = vld [vmem:[%s13418_s2 + $0x210] sm:$0xff]  }
 0x94c   :  { %9475 = vmatprep.subr.bf16.mxu1 %v13455_v10 }
 0x94e   :  { %9436 = vmatmul.mubr.msk.bf16.gmra.mrb[100].mxu1 %vm5063_vm4, %v12717_v19 }
 0x94f   :  { %9439 = vmatprep.mubr.msk.bf16.mxu1 %vm10649_vm12, %v13455_v10 }
 0x956   :  { %9440 = vmatmul.mubr.msk.bf16.gmra.mrb[104].mxu1 %vm5063_vm4, %v12732_v48 }
 0x957   :  { %9443 = vmatprep.mubr.msk.bf16.mxu1 %vm10649_vm12, %v13455_v10 }
 0x95e   :  { %9444 = vmatmul.mubr.msk.bf16.gmra.mrb[108].mxu1 %vm5063_vm4, %v5967_v26  ;;  %v10538_v26 = vld [vmem:[%s13418_s2 + $0x1a0] sm:$0xff]  }
 0x95f   :  { %9455 = vmatprep.mubr.msk.bf16.mxu1 %vm10649_vm12, %v13455_v10 }
 0x966   :  { %9456 = vmatmul.mubr.msk.bf16.vlgmr.msra.gmra.mrb[92].mxu1 %vm5063_vm4, %v8276_v21 }
 0x967   :  { %9459 = vmatprep.mubr.msk.bf16.mxu1 %vm10649_vm12, %v13455_v10  ;;  %9476 = vmatpush3.bf16.msra.mxu1 %v10535_v53 }
 0x968   :  { %9477 = vmatprep.subr.bf16.mxu1 %v13455_v10 }
 0x96b   :  { %9478 = vmatpush3.bf16.msra.mxu1 %v10536_v34  ;;  %v10555_v34 = vld [vmem:[%s13418_s2 + $0x218] sm:$0xff]  }
 0x96c   :  { %9479 = vmatprep.subr.bf16.mxu1 %v13455_v10 }
 0x96e   :  { %9460 = vmatmul.mubr.msk.bf16.gmra.mrb[96].mxu1 %vm5063_vm4, %v8277_v8 }
 0x96f   :  { %9463 = vmatprep.mubr.msk.bf16.mxu1 %vm10649_vm12, %v13455_v10  ;;  %9480 = vmatpush3.bf16.msra.mxu1 %v10538_v26  ;;  %v10556_v26 = vld [vmem:[%s13418_s2 + $0x220] sm:$0xff]  }
 0x970   :  { %9481 = vmatprep.subr.bf16.mxu1 %v13455_v10 }
 0x973   :  { %9482 = vmatpush3.bf16.msra.mxu1 %v10539_v43  ;;  %v10557_v43 = vld [vmem:[%s13418_s2 + $0x228] sm:$0xff]  }
 0x976   :  { %9464 = vmatmul.mubr.msk.bf16.gmra.mrb[100].mxu1 %vm5063_vm4, %v8278_v42 }
 0x977   :  { %9467 = vmatprep.mubr.msk.bf16.mxu1 %vm10649_vm12, %v13455_v10 }
 0x97e   :  { %9468 = vmatmul.mubr.msk.bf16.gmra.mrb[104].mxu1 %vm5063_vm4, %v8279_v62 }
 0x97f   :  { %9471 = vmatprep.mubr.msk.bf16.mxu1 %vm10649_vm12, %v13455_v10 }
 0x986   :  { %9472 = vmatmul.mubr.msk.bf16.gmra.mrb[108].mxu1 %vm5063_vm4, %v8280_v3  ;;  %v10558_v3 = vld [vmem:[%s13418_s2 + $0x230] sm:$0xff]  }
 0x987   :  { %9483 = vmatprep.mubr.msk.bf16.mxu1 %vm10649_vm12, %v13455_v10 }
 0x98e   :  { %9484 = vmatmul.mubr.msk.bf16.vlgmr.msra.gmra.mrb[92].mxu1 %vm5063_vm4, %v12744_v52 }
 0x98f   :  { %9487 = vmatprep.mubr.msk.bf16.mxu1 %vm10649_vm12, %v13455_v10 }
 0x996   :  { %9488 = vmatmul.mubr.msk.bf16.gmra.mrb[96].mxu1 %vm5063_vm4, %v12747_v39 }
 0x997   :  { %9491 = vmatprep.mubr.msk.bf16.mxu1 %vm10649_vm12, %v13455_v10 }
 0x99e   :  { %9492 = vmatmul.mubr.msk.bf16.gmra.mrb[100].mxu1 %vm5063_vm4, %v12750_v1 }
 0x99f   :  { %9495 = vmatprep.mubr.msk.bf16.mxu1 %vm10649_vm12, %v13455_v10 }
 0x9a6   :  { %9496 = vmatmul.mubr.msk.bf16.gmra.mrb[104].mxu1 %vm5063_vm4, %v12755_v55 }
 0x9a7   :  { %9499 = vmatprep.mubr.msk.bf16.mxu1 %vm10649_vm12, %v13455_v10 }
 0x9ae   :  { %9500 = vmatmul.mubr.msk.bf16.gmra.mrb[108].mxu1 %vm5063_vm4, %v6241_v2 }
 0x9af   :  { %9513 = vmatprep.mubr.msk.bf16.mxu1 %vm191_vm2, %v10540_v47 }
 0xa61   :  { %v6316_v13 = vpop.f32.mrb[92].mxu1 }
 0xa62   :  { %v9485_v12 = vpop.f32.mrb[93].mxu1 }
 0xa63   :  { %v6319_v21 = vpop.f32.mrb[94].mxu1  ;;  %v10561_v12 = vld [vmem:[%s13418_s2 + $0x248] sm:$0xff]  }
 0xa64   :  { %v6367_v5 = vpack.c.bf16 %v6319_v21, %v6316_v13  ;;  %v9486_v8 = vpop.f32.mrb[95].mxu1  ;;  %v10560_v13 = vld [vmem:[%s13418_s2 + $0x240] sm:$0xff]   ;;  %v10562_v21 = vld [vmem:[%s13418_s2 + $0x250] sm:$0xff]  }
 0xa65   :  { %v10563_v8 = vld [vmem:[%s13418_s2 + $0x258] sm:$0xff]  }
 0xa66   :  { %9503 = vmatprep.subr.bf16.mxu1 %v6367_v5 }
 0xa67   :  { %9504 = vmatpush3.bf16.msra.mxu1 %v6367_v5 }
 0xa69   :  { %v6324_v22 = vpop.f32.mrb[96].mxu1 }
 0xa6a   :  { %v9489_v2 = vpop.f32.mrb[97].mxu1 }
 0xa6b   :  { %v6327_v61 = vpop.f32.mrb[98].mxu1  ;;  %v10565_v2 = vld [vmem:[%s13418_s2 + $0x268] sm:$0xff]  }
 0xa6c   :  { %v6368_v42 = vpack.c.bf16 %v6327_v61, %v6324_v22  ;;  %v9490_v30 = vpop.f32.mrb[99].mxu1  ;;  %v10564_v22 = vld [vmem:[%s13418_s2 + $0x260] sm:$0xff]   ;;  %v10566_v61 = vld [vmem:[%s13418_s2 + $0x270] sm:$0xff]  }
 0xa6d   :  { %v10567_v30 = vld [vmem:[%s13418_s2 + $0x278] sm:$0xff]  }
 0xa6e   :  { %9505 = vmatprep.subr.bf16.mxu1 %v6368_v42 }
 0xa6f   :  { %9506 = vmatpush3.bf16.msra.mxu1 %v6368_v42 }
 0xa71   :  { %v6332_v19 = vpop.f32.mrb[100].mxu1 }
 0xa72   :  { %v9493_v62 = vpop.f32.mrb[101].mxu1 }
 0xa73   :  { %v6335_v40 = vpop.f32.mrb[102].mxu1  ;;  %v10569_v62 = vld [vmem:[%s13418_s2 + $0x288] sm:$0xff]  }
 0xa74   :  { %v6369_v16 = vpack.c.bf16 %v6335_v40, %v6332_v19  ;;  %v9494_v48 = vpop.f32.mrb[103].mxu1  ;;  %v10568_v19 = vld [vmem:[%s13418_s2 + $0x280] sm:$0xff]   ;;  %v10570_v40 = vld [vmem:[%s13418_s2 + $0x290] sm:$0xff]  }
 0xa75   :  { %v10571_v48 = vld [vmem:[%s13418_s2 + $0x298] sm:$0xff]  }
 0xa76   :  { %9507 = vmatprep.subr.bf16.mxu1 %v6369_v16 }
 0xa77   :  { %9508 = vmatpush3.bf16.msra.mxu1 %v6369_v16 }
 0xa79   :  { %v6340_v52 = vpop.f32.mrb[104].mxu1 }
 0xa7a   :  { %v9497_v39 = vpop.f32.mrb[105].mxu1 }
 0xa7b   :  { %v6343_v1 = vpop.f32.mrb[106].mxu1  ;;  %v10573_v39 = vld [vmem:[%s13418_s2 + $0x2a8] sm:$0xff]  }
 0xa7c   :  { %v6370_v55 = vpack.c.bf16 %v6343_v1, %v6340_v52  ;;  %v9498_v36 = vpop.f32.mrb[107].mxu1  ;;  %v10572_v52 = vld [vmem:[%s13418_s2 + $0x2a0] sm:$0xff]   ;;  %v10574_v1 = vld [vmem:[%s13418_s2 + $0x2b0] sm:$0xff]  }
 0xa7d   :  { %v10575_v36 = vld [vmem:[%s13418_s2 + $0x2b8] sm:$0xff]  }
 0xa7e   :  { %9509 = vmatprep.subr.bf16.mxu1 %v6370_v55 }
 0xa7f   :  { %9510 = vmatpush3.bf16.msra.mxu1 %v6370_v55 }
 0xa81   :  { %v6348_v14 = vpop.f32.mrb[108].mxu1 }
 0xa82   :  { %v6371_v41 = vpack.c.bf16 %v6348_v14, %v6348_v14  ;;  %v9501_v58 = vpop.f32.mrb[109].mxu1  ;;  %v10576_v14 = vld [vmem:[%s13418_s2 + $0x2c0] sm:$0xff]  }
 0xa83   :  { %v6351_v46 = vpop.f32.mrb[110].mxu1  ;;  %v10578_v58 = vld [vmem:[%s13418_s2 + $0x2d0] sm:$0xff]  }
 0xa84   :  { %v6398_v15 = vsel %vm201_vm0, %v6371_v41, 0  ;;  %v9502_v7 = vpop.f32.mrb[111].mxu1  ;;  %10316 = vmatprep.subr.msk.bf16.mxu1 %vm201_vm0, %v6371_v41  ;;  %v10577_v41 = vld [vmem:[%s13418_s2 + $0x2c8] sm:$0xff]   ;;  %v10579_v46 = vld [vmem:[%s13418_s2 + $0x2d8] sm:$0xff]   ;;  %vm7787_vm0 = vcmask 1024  }
 0xa85   :  { %9512 = vmatpush3.bf16.msra.mxu1 %v6398_v15  ;;  %v10580_v15 = vld [vmem:[%s13418_s2 + $0x2e0] sm:$0xff]   ;;  %v10581_v7 = vld [vmem:[%s13418_s2 + $0x2e8] sm:$0xff]  }
 0xa86   :  { %9517 = vmatprep.subr.bf16.mxu1 %v13455_v10 }
 0xa88   :  { %9514 = vmatmul.mubr.msk.bf16.vlgmr.msra.gmra.mrb[112].mxu1 %vm191_vm2, %v10541_v17  ;;  %v10582_v17 = vld [vmem:[%s13418_s2 + $0x2f0] sm:$0xff]  }
 0xa89   :  { %9525 = vmatprep.mubr.msk.bf16.mxu1 %vm10649_vm12, %v13455_v10  ;;  %9518 = vmatpush3.bf16.msra.mxu1 %v10542_v37 }
 0xa8a   :  { %9519 = vmatprep.subr.bf16.mxu1 %v13455_v10 }
 0xa8d   :  { %9520 = vmatpush3.bf16.msra.mxu1 %v10543_v57  ;;  %v10583_v57 = vld [vmem:[%s13418_s2 + $0x2f8] sm:$0xff]  }
 0xa8e   :  { %9521 = vmatprep.subr.bf16.mxu1 %v13455_v10 }
 0xa91   :  { %9522 = vmatpush3.bf16.msra.mxu1 %v10544_v59  ;;  %v10584_v59 = vld [vmem:[%s13418_s2 + $0x300] sm:$0xff]  }
 0xa92   :  { %9523 = vmatprep.subr.bf16.mxu1 %v13455_v10 }
 0xa95   :  { %9524 = vmatpush3.bf16.msra.mxu1 %v10545_v9  ;;  %v10585_v9 = vld [vmem:[%s13418_s2 + $0x308] sm:$0xff]  }
 0xa96   :  { %9529 = vmatprep.subr.bf16.mxu1 %v13455_v10 }
 0xb5b   :  { %v9515_v32 = vpop.f32.mrb[112].mxu1 }
 0xb5c   :  { %v6434_v31 = vpop.f32.mrb[113].mxu1  ;;  %v6443_v44 = vadd.f32 %v9515_v32, %v6389_v6 }
 0xb5d   :  { %v9516_v63 = vpop.f32.mrb[114].mxu1  ;;  %v6435_v23 = vadd.f32 %v6434_v31, %v6389_v6  ;;  %v10587_v31 = vld [vmem:[%s13418_s2 + $0x318] sm:$0xff]  }
 0xb5e   :  { %v6446_v18 = vadd.f32 %v9516_v63, %v6389_v6  ;;  %10634 = vtanh.f32 %v6443_v44  ;;  %v6437_v49 = vpop.f32.mrb[115].mxu1  ;;  %v10588_v44 = vld [vmem:[%s13418_s2 + $0x320] sm:$0xff]   ;;  %v10589_v63 = vld [vmem:[%s13418_s2 + $0x328] sm:$0xff]  }
 0xb5f   :  { %10636 = vtanh.f32 %v6435_v23  ;;  %v6438_v0 = vadd.f32 %v6437_v49, %v6389_v6  ;;  %v10586_v6 = vld [vmem:[%s13418_s2 + $0x310] sm:$0xff]   ;;  %v10591_v49 = vld [vmem:[%s13418_s2 + $0x338] sm:$0xff]  }
 0xb60   :  { %10638 = vtanh.f32 %v6446_v18  ;;  %v10590_v23 = vld [vmem:[%s13418_s2 + $0x330] sm:$0xff]  }
 0xb61   :  { %10640 = vtanh.f32 %v6438_v0  ;;  %v10592_v0 = vld [vmem:[%s13418_s2 + $0x340] sm:$0xff]  }
 0xb68   :  { %v10635_v45 = vpop.eup %10634 }
 0xb69   :  { %v10637_v60 = vpop.eup %10636 }
 0xb6a   :  { %v10639_v24 = vpop.eup %10638 }
 0xb6b   :  { %v10641_v50 = vpop.eup %10640  ;;  %v13079_v35 = vpack.c.bf16 %v10639_v24, %v10635_v45  ;;  %v10593_v45 = vld [vmem:[%s13418_s2 + $0x348] sm:$0xff]  }
 0xb6c   :  { %v13081_v51 = vpack.c.bf16 %v10641_v50, %v10637_v60  ;;  %v10594_v60 = vld [vmem:[%s13418_s2 + $0x350] sm:$0xff]   ;;  %v10595_v50 = vld [vmem:[%s13418_s2 + $0x358] sm:$0xff]  }
 0xb6d   :  { %v7154_v37 = vrot.slane %v13079_v35, 1  ;;  %v7231_v32 = vrot.slane %v13079_v35, 2  ;;  %v7308_v18 = vrot.slane %v13079_v35, 3  ;;  %v7385_v24 = vrot.slane %v13079_v35, 4 }
 0xb6e   :  { %v6472_v29 = vrot.slane %v13081_v51, 1  ;;  %v6615_v53 = vrot.slane %v13081_v51, 2  ;;  %v6692_v47 = vrot.slane %v13081_v51, 3  ;;  %v6769_v5 = vrot.slane %v13081_v51, 4 }
 0xb6f   :  { %v6846_v42 = vrot.slane %v13081_v51, 5  ;;  %v6923_v16 = vrot.slane %v13081_v51, 6  ;;  %v7000_v55 = vrot.slane %v13081_v51, 7 }
 0xb70   :  { %9526 = vmatmul.mubr.msk.bf16.vlgmr.msra.gmra.mrb[116].mxu1 %vm5063_vm4, %v6472_v29  ;;  %v10598_v29 = vld [vmem:[%s13418_s2 + $0x370] sm:$0xff]  }
 0xb71   :  { %9530 = vmatpush3.bf16.msra.mxu1 %v10546_v25  ;;  %9537 = vmatprep.mubr.msk.bf16.mxu1 %vm10649_vm12, %v13455_v10  ;;  %v10597_v25 = vld [vmem:[%s13418_s2 + $0x368] sm:$0xff]  }
 0xb72   :  { %9531 = vmatprep.subr.bf16.mxu1 %v13455_v10 }
 0xb75   :  { %9532 = vmatpush3.bf16.msra.mxu1 %v10547_v27  ;;  %v7462_v27 = vrot.slane %v13079_v35, 5 }
 0xb76   :  { %9533 = vmatprep.subr.bf16.mxu1 %v13455_v10 }
 0xb79   :  { %9534 = vmatpush3.bf16.msra.mxu1 %v10548_v56  ;;  %v10599_v56 = vld [vmem:[%s13418_s2 + $0x378] sm:$0xff]  }
 0xb7a   :  { %9535 = vmatprep.subr.bf16.mxu1 %v13455_v10 }
 0xb7d   :  { %9536 = vmatpush3.bf16.msra.mxu1 %v10549_v54 }
 0xb7e   :  { %9541 = vmatprep.subr.bf16.mxu1 %v13455_v10 }
 0xb80   :  { %9538 = vmatmul.mubr.msk.bf16.vlgmr.msra.gmra.mrb[120].mxu1 %vm5063_vm4, %v13081_v51  ;;  %v10596_v51 = vld [vmem:[%s13418_s2 + $0x360] sm:$0xff]  }
 0xb81   :  { %9542 = vmatpush3.bf16.msra.mxu1 %v10550_v38  ;;  %9549 = vmatprep.mubr.msk.bf16.mxu1 %vm10649_vm12, %v13455_v10 }
 0xb82   :  { %9543 = vmatprep.subr.bf16.mxu1 %v13455_v10 }
 0xb85   :  { %9544 = vmatpush3.bf16.msra.mxu1 %v10551_v33  ;;  %v10600_v33 = vld [vmem:[%s13418_s2 + $0x380] sm:$0xff]  }
 0xb86   :  { %9545 = vmatprep.subr.bf16.mxu1 %v13455_v10 }
 0xb89   :  { %9546 = vmatpush3.bf16.msra.mxu1 %v10552_v28 }
 0xb8a   :  { %9547 = vmatprep.subr.bf16.mxu1 %v13455_v10 }
 0xb8d   :  { %9548 = vmatpush3.bf16.msra.mxu1 %v10553_v4 }
 0xb8e   :  { %9553 = vmatprep.subr.bf16.mxu1 %v13455_v10 }
 0xb90   :  { %9550 = vmatmul.mubr.msk.bf16.vlgmr.msra.gmra.mrb[124].mxu1 %vm5063_vm4, %v6615_v53  ;;  %v10602_v53 = vld [vmem:[%s13418_s2 + $0x390] sm:$0xff]  }
 0xb91   :  { %9554 = vmatpush3.bf16.msra.mxu1 %v10554_v11  ;;  %9561 = vmatprep.mubr.msk.bf16.mxu1 %vm10649_vm12, %v13455_v10  ;;  %v10601_v11 = vld [vmem:[%s13418_s2 + $0x388] sm:$0xff]  }
 0xb92   :  { %9555 = vmatprep.subr.bf16.mxu1 %v13455_v10 }
 0xb95   :  { %9556 = vmatpush3.bf16.msra.mxu1 %v10555_v34  ;;  %v7539_v34 = vrot.slane %v13079_v35, 6 }
 0xb96   :  { %9557 = vmatprep.subr.bf16.mxu1 %v13455_v10 }
 0xb99   :  { %9558 = vmatpush3.bf16.msra.mxu1 %v10556_v26  ;;  %v10603_v26 = vld [vmem:[%s13418_s2 + $0x398] sm:$0xff]  }
 0xb9a   :  { %9559 = vmatprep.subr.bf16.mxu1 %v13455_v10 }
 0xb9d   :  { %9560 = vmatpush3.bf16.msra.mxu1 %v10557_v43 }
 0xb9e   :  { %9565 = vmatprep.subr.bf16.mxu1 %v13455_v10 }
 0xba0   :  { %9562 = vmatmul.mubr.msk.bf16.vlgmr.msra.gmra.mrb[128].mxu1 %vm5063_vm4, %v6692_v47 }
 0xba1   :  { %9566 = vmatpush3.bf16.msra.mxu1 %v10558_v3  ;;  %9573 = vmatprep.mubr.msk.bf16.mxu1 %vm10649_vm12, %v13455_v10 }
 0xba2   :  { %9567 = vmatprep.subr.bf16.mxu1 %v13455_v10 }
 0xba5   :  { %9568 = vmatpush3.bf16.msra.mxu1 %v10559_v20 }
 0xba6   :  { %9569 = vmatprep.subr.bf16.mxu1 %v13455_v10 }
 0xba9   :  { %9570 = vmatpush3.bf16.msra.mxu1 %v10560_v13  ;;  %v10604_v13 = vld [vmem:[%s13418_s2 + $0x3a0] sm:$0xff]  }
 0xbaa   :  { %9571 = vmatprep.subr.bf16.mxu1 %v13455_v10 }
 0xbad   :  { %9572 = vmatpush3.bf16.msra.mxu1 %v10561_v12 }
 0xbae   :  { %9577 = vmatprep.subr.bf16.mxu1 %v13455_v10 }
 0xbb0   :  { %9574 = vmatmul.mubr.msk.bf16.vlgmr.msra.gmra.mrb[132].mxu1 %vm5063_vm4, %v6769_v5  ;;  %v7616_v5 = vrot.slane %v13079_v35, 7 }
 0xbb1   :  { %9578 = vmatpush3.bf16.msra.mxu1 %v10562_v21  ;;  %9585 = vmatprep.mubr.msk.bf16.mxu1 %vm10649_vm12, %v13455_v10  ;;  %v10605_v21 = vld [vmem:[%s13418_s2 + $0x3a8] sm:$0xff]  }
 0xbb2   :  { %9579 = vmatprep.subr.bf16.mxu1 %v13455_v10 }
 0xbb5   :  { %9580 = vmatpush3.bf16.msra.mxu1 %v10563_v8 }
 0xbb6   :  { %9581 = vmatprep.subr.bf16.mxu1 %v13455_v10 }
 0xbb9   :  { %9582 = vmatpush3.bf16.msra.mxu1 %v10564_v22 }
 0xbba   :  { %9583 = vmatprep.subr.bf16.mxu1 %v13455_v10 }
 0xbbd   :  { %9584 = vmatpush3.bf16.msra.mxu1 %v10565_v2 }
 0xbbe   :  { %9589 = vmatprep.subr.bf16.mxu1 %v13455_v10 }
 0xbc0   :  { %9586 = vmatmul.mubr.msk.bf16.vlgmr.msra.gmra.mrb[136].mxu1 %vm5063_vm4, %v6846_v42 }
 0xbc1   :  { %9590 = vmatpush3.bf16.msra.mxu1 %v10566_v61  ;;  %9597 = vmatprep.mubr.msk.bf16.mxu1 %vm10649_vm12, %v13455_v10 }
 0xbc2   :  { %9591 = vmatprep.subr.bf16.mxu1 %v13455_v10 }
 0xbc5   :  { %9592 = vmatpush3.bf16.msra.mxu1 %v10567_v30 }
 0xbc6   :  { %9593 = vmatprep.subr.bf16.mxu1 %v13455_v10 }
 0xbc9   :  { %9594 = vmatpush3.bf16.msra.mxu1 %v10568_v19 }
 0xbca   :  { %9595 = vmatprep.subr.bf16.mxu1 %v13455_v10 }
 0xbcd   :  { %9596 = vmatpush3.bf16.msra.mxu1 %v10569_v62 }
 0xbce   :  { %9601 = vmatprep.subr.bf16.mxu1 %v13455_v10 }
 0xbd0   :  { %9598 = vmatmul.mubr.msk.bf16.vlgmr.msra.gmra.mrb[140].mxu1 %vm5063_vm4, %v6923_v16 }
 0xbd1   :  { %9602 = vmatpush3.bf16.msra.mxu1 %v10570_v40  ;;  %9609 = vmatprep.mubr.msk.bf16.mxu1 %vm10649_vm12, %v13455_v10 }
 0xbd2   :  { %9603 = vmatprep.subr.bf16.mxu1 %v13455_v10 }
 0xbd5   :  { %9604 = vmatpush3.bf16.msra.mxu1 %v10571_v48 }
 0xbd6   :  { %9605 = vmatprep.subr.bf16.mxu1 %v13455_v10 }
 0xbd9   :  { %9606 = vmatpush3.bf16.msra.mxu1 %v10572_v52 }
 0xbda   :  { %9607 = vmatprep.subr.bf16.mxu1 %v13455_v10 }
 0xbdd   :  { %9608 = vmatpush3.bf16.msra.mxu1 %v10573_v39 }
 0xbde   :  { %9613 = vmatprep.subr.bf16.mxu1 %v13455_v10 }
 0xbe0   :  { %9610 = vmatmul.mubr.msk.bf16.vlgmr.msra.gmra.mrb[144].mxu1 %vm5063_vm4, %v7000_v55 }
 0xbe1   :  { %9614 = vmatpush3.bf16.msra.mxu1 %v10574_v1  ;;  %9621 = vmatprep.mubr.msk.bf16.mxu1 %vm10649_vm12, %v13455_v10 }
 0xbe2   :  { %9615 = vmatprep.subr.bf16.mxu1 %v13455_v10 }
 0xbe5   :  { %9616 = vmatpush3.bf16.msra.mxu1 %v10575_v36 }
 0xbe6   :  { %9617 = vmatprep.subr.bf16.mxu1 %v13455_v10 }
 0xbe9   :  { %9618 = vmatpush3.bf16.msra.mxu1 %v10576_v14 }
 0xbea   :  { %9619 = vmatprep.subr.bf16.mxu1 %v13455_v10 }
 0xbed   :  { %9620 = vmatpush3.bf16.msra.mxu1 %v10577_v41 }
 0xbee   :  { %9625 = vmatprep.subr.bf16.mxu1 %v13455_v10 }
 0xbf0   :  { %9622 = vmatmul.mubr.msk.bf16.vlgmr.msra.gmra.mrb[148].mxu1 %vm5063_vm4, %v13079_v35 }
 0xbf1   :  { %9626 = vmatpush3.bf16.msra.mxu1 %v10578_v58  ;;  %9633 = vmatprep.mubr.msk.bf16.mxu1 %vm10649_vm12, %v13455_v10 }
 0xbf2   :  { %9627 = vmatprep.subr.bf16.mxu1 %v13455_v10 }
 0xbf5   :  { %9628 = vmatpush3.bf16.msra.mxu1 %v10579_v46 }
 0xbf6   :  { %9629 = vmatprep.subr.bf16.mxu1 %v13455_v10 }
 0xbf9   :  { %9630 = vmatpush3.bf16.msra.mxu1 %v10580_v15 }
 0xbfa   :  { %9631 = vmatprep.subr.bf16.mxu1 %v13455_v10 }
 0xbfd   :  { %9632 = vmatpush3.bf16.msra.mxu1 %v10581_v7 }
 0xbfe   :  { %9637 = vmatprep.subr.bf16.mxu1 %v13455_v10 }
 0xc00   :  { %9634 = vmatmul.mubr.msk.bf16.vlgmr.msra.gmra.mrb[152].mxu1 %vm5063_vm4, %v7154_v37 }
 0xc01   :  { %9638 = vmatpush3.bf16.msra.mxu1 %v10582_v17  ;;  %9645 = vmatprep.mubr.msk.bf16.mxu1 %vm10649_vm12, %v13455_v10 }
 0xc02   :  { %9639 = vmatprep.subr.bf16.mxu1 %v13455_v10 }
 0xc05   :  { %9640 = vmatpush3.bf16.msra.mxu1 %v10583_v57 }
 0xc06   :  { %9641 = vmatprep.subr.bf16.mxu1 %v13455_v10 }
 0xc09   :  { %9642 = vmatpush3.bf16.msra.mxu1 %v10584_v59 }
 0xc0a   :  { %9643 = vmatprep.subr.bf16.mxu1 %v13455_v10 }
 0xc0d   :  { %9644 = vmatpush3.bf16.msra.mxu1 %v10585_v9 }
 0xc0e   :  { %9649 = vmatprep.subr.bf16.mxu1 %v13455_v10 }
 0xc10   :  { %9646 = vmatmul.mubr.msk.bf16.vlgmr.msra.gmra.mrb[156].mxu1 %vm5063_vm4, %v7231_v32 }
 0xc11   :  { %9650 = vmatpush3.bf16.msra.mxu1 %v10586_v6  ;;  %9657 = vmatprep.mubr.msk.bf16.mxu1 %vm10649_vm12, %v13455_v10  ;;  %v8385_v6 = vld [vmem:[%s13419_s4 + $0x3] ss:$0 sm:$0xff] }
 0xc12   :  { %9651 = vmatprep.subr.bf16.mxu1 %v13455_v10  ;;  %7726 = vrot.lane.b32.xlu1 %v8385_v6, %s10650_s25 }
 0xc15   :  { %9652 = vmatpush3.bf16.msra.mxu1 %v10587_v31 }
 0xc16   :  { %9653 = vmatprep.subr.bf16.mxu1 %v13455_v10 }
 0xc19   :  { %9654 = vmatpush3.bf16.msra.mxu1 %v10588_v44 }
 0xc1a   :  { %9655 = vmatprep.subr.bf16.mxu1 %v13455_v10 }
 0xc1d   :  { %9656 = vmatpush3.bf16.msra.mxu1 %v10589_v63  ;;  %v10606_v63 = vld [vmem:[%s13418_s2 + $0x3b0] sm:$0xff]  }
 0xc1e   :  { %9661 = vmatprep.subr.bf16.mxu1 %v13455_v10 }
 0xc20   :  { %9658 = vmatmul.mubr.msk.bf16.vlgmr.msra.gmra.mrb[160].mxu1 %vm5063_vm4, %v7308_v18 }
 0xc21   :  { %9662 = vmatpush3.bf16.msra.mxu1 %v10590_v23  ;;  %9669 = vmatprep.mubr.msk.bf16.mxu1 %vm10649_vm12, %v13455_v10 }
 0xc22   :  { %9663 = vmatprep.subr.bf16.mxu1 %v13455_v10 }
 0xc25   :  { %9664 = vmatpush3.bf16.msra.mxu1 %v10591_v49 }
 0xc26   :  { %9665 = vmatprep.subr.bf16.mxu1 %v13455_v10 }
 0xc29   :  { %9666 = vmatpush3.bf16.msra.mxu1 %v10592_v0  ;;  %v10607_v0 = vld [vmem:[%s13418_s2 + $0x3b8] sm:$0xff]  }
 0xc2a   :  { %9667 = vmatprep.subr.bf16.mxu1 %v13455_v10 }
 0xc2d   :  { %9668 = vmatpush3.bf16.msra.mxu1 %v10593_v45 }
 0xc2e   :  { %9673 = vmatprep.subr.bf16.mxu1 %v13455_v10 }
 0xc30   :  { %9670 = vmatmul.mubr.msk.bf16.vlgmr.msra.gmra.mrb[164].mxu1 %vm5063_vm4, %v7385_v24  ;;  %v10609_v24 = vld [vmem:[%s13418_s2 + $0x3c8] sm:$0xff]  }
 0xc31   :  { %9674 = vmatpush3.bf16.msra.mxu1 %v10594_v60  ;;  %9681 = vmatprep.mubr.msk.bf16.mxu1 %vm10649_vm12, %v13455_v10  ;;  %v10608_v60 = vld [vmem:[%s13418_s2 + $0x3c0] sm:$0xff]  }
 0xc32   :  { %9675 = vmatprep.subr.bf16.mxu1 %v13455_v10 }
 0xc35   :  { %9676 = vmatpush3.bf16.msra.mxu1 %v10595_v50 }
 0xc36   :  { %9677 = vmatprep.subr.bf16.mxu1 %v13455_v10 }
 0xc39   :  { %9678 = vmatpush3.bf16.msra.mxu1 %v10596_v51 }
 0xc3a   :  { %9679 = vmatprep.subr.bf16.mxu1 %v13455_v10 }
 0xc3d   :  { %9680 = vmatpush3.bf16.msra.mxu1 %v10597_v25 }
 0xc3e   :  { %9685 = vmatprep.subr.bf16.mxu1 %v13455_v10 }
 0xc40   :  { %9682 = vmatmul.mubr.msk.bf16.vlgmr.msra.gmra.mrb[168].mxu1 %vm5063_vm4, %v7462_v27 }
 0xc41   :  { %9686 = vmatpush3.bf16.msra.mxu1 %v10598_v29  ;;  %9693 = vmatprep.mubr.msk.bf16.mxu1 %vm10649_vm12, %v13455_v10 }
 0xc42   :  { %9687 = vmatprep.subr.bf16.mxu1 %v13455_v10 }
 0xc43   :  { %v6534_v54 = vpop.f32.mrb[116].mxu1 }
 0xc44   :  { %v9527_v38 = vpop.f32.mrb[117].mxu1 }
 0xc45   :  { %9688 = vmatpush3.bf16.msra.mxu1 %v10599_v56  ;;  %v6537_v28 = vpop.f32.mrb[118].mxu1 }
 0xc46   :  { %9689 = vmatprep.subr.bf16.mxu1 %v13455_v10  ;;  %v9528_v4 = vpop.f32.mrb[119].mxu1 }
 0xc49   :  { %9690 = vmatpush3.bf16.msra.mxu1 %v10600_v33 }
 0xc4a   :  { %9691 = vmatprep.subr.bf16.mxu1 %v13455_v10 }
 0xc4d   :  { %9692 = vmatpush3.bf16.msra.mxu1 %v10601_v11 }
 0xc4e   :  { %9697 = vmatprep.subr.bf16.mxu1 %v13455_v10 }
 0xc50   :  { %9694 = vmatmul.mubr.msk.bf16.vlgmr.msra.gmra.mrb[172].mxu1 %vm5063_vm4, %v7539_v34 }
 0xc51   :  { %9698 = vmatpush3.bf16.msra.mxu1 %v10602_v53  ;;  %9705 = vmatprep.mubr.msk.bf16.mxu1 %vm10649_vm12, %v13455_v10 }
 0xc52   :  { %9699 = vmatprep.subr.bf16.mxu1 %v13455_v10 }
 0xc53   :  { %v6601_v43 = vpop.f32.mrb[120].mxu1 }
 0xc54   :  { %v6602_v3 = vadd.f32 %v6601_v43, %v6534_v54  ;;  %v9539_v47 = vpop.f32.mrb[121].mxu1 }
 0xc55   :  { %v6604_v20 = vpop.f32.mrb[122].mxu1  ;;  %9700 = vmatpush3.bf16.msra.mxu1 %v10603_v26 }
 0xc56   :  { %v9540_v12 = vpop.f32.mrb[123].mxu1  ;;  %9701 = vmatprep.subr.bf16.mxu1 %v13455_v10 }
 0xc59   :  { %9702 = vmatpush3.bf16.msra.mxu1 %v10604_v13 }
 0xc5a   :  { %9703 = vmatprep.subr.bf16.mxu1 %v13455_v10 }
 0xc5d   :  { %9704 = vmatpush3.bf16.msra.mxu1 %v10605_v21 }
 0xc5e   :  { %9709 = vmatprep.subr.bf16.mxu1 %v13455_v10 }
 0xc60   :  { %9706 = vmatmul.mubr.msk.bf16.vlgmr.msra.gmra.mrb[176].mxu1 %vm5063_vm4, %v7616_v5 }
 0xc61   :  { %9717 = vmatprep.mubr.msk.bf16.mxu1 %vm10649_vm12, %v13455_v10  ;;  %9710 = vmatpush3.bf16.msra.mxu1 %v10606_v63 }
 0xc62   :  { %9711 = vmatprep.subr.bf16.mxu1 %v13455_v10 }
 0xc63   :  { %v6677_v8 = vpop.f32.mrb[124].mxu1 }
 0xc64   :  { %v6683_v22 = vadd.f32 %v6677_v8, %v6602_v3  ;;  %v9551_v2 = vpop.f32.mrb[125].mxu1 }
 0xc65   :  { %v6680_v61 = vpop.f32.mrb[126].mxu1  ;;  %9712 = vmatpush3.bf16.msra.mxu1 %v10607_v0 }
 0xc66   :  { %v9552_v42 = vpop.f32.mrb[127].mxu1  ;;  %9713 = vmatprep.subr.bf16.mxu1 %v13455_v10 }
 0xc69   :  { %9714 = vmatpush3.bf16.msra.mxu1 %v10608_v60 }
 0xc6a   :  { %9715 = vmatprep.subr.bf16.mxu1 %v13455_v10 }
 0xc6d   :  { %9716 = vmatpush3.bf16.msra.mxu1 %v10609_v24 }
 0xc73   :  { %v6754_v30 = vpop.f32.mrb[128].mxu1 }
 0xc74   :  { %v6760_v19 = vadd.f32 %v6754_v30, %v6683_v22  ;;  %v9563_v62 = vpop.f32.mrb[129].mxu1 }
 0xc75   :  { %v6757_v40 = vpop.f32.mrb[130].mxu1 }
 0xc76   :  { %v9564_v16 = vpop.f32.mrb[131].mxu1 }
 0xc83   :  { %v6831_v48 = vpop.f32.mrb[132].mxu1 }
 0xc84   :  { %v6837_v52 = vadd.f32 %v6831_v48, %v6760_v19  ;;  %v9575_v35 = vpop.f32.mrb[133].mxu1 }
 0xc85   :  { %v6834_v39 = vpop.f32.mrb[134].mxu1 }
 0xc86   :  { %v9576_v1 = vpop.f32.mrb[135].mxu1 }
 0xc87   :  { %v7727_v1 = vpop.permute.xlu1 %7726 }
 0xc93   :  { %v6908_v55 = vpop.f32.mrb[136].mxu1 }
 0xc94   :  { %v6914_v36 = vadd.f32 %v6908_v55, %v6837_v52  ;;  %v9587_v14 = vpop.f32.mrb[137].mxu1 }
 0xc95   :  { %v6911_v41 = vpop.f32.mrb[138].mxu1 }
 0xc96   :  { %v9588_v58 = vpop.f32.mrb[139].mxu1 }
 0xca3   :  { %v6985_v46 = vpop.f32.mrb[140].mxu1 }
 0xca4   :  { %v6991_v15 = vadd.f32 %v6985_v46, %v6914_v36  ;;  %v9599_v7 = vpop.f32.mrb[141].mxu1  ;;  %v8391_v46 = vld [vmem:[%s13419_s4 + $0x5] ss:$0 sm:$0xff] }
 0xca5   :  { %v6988_v17 = vpop.f32.mrb[142].mxu1 }
 0xca6   :  { %v9600_v37 = vpop.f32.mrb[143].mxu1 }
 0xcb3   :  { %v7062_v57 = vpop.f32.mrb[144].mxu1 }
 0xcb4   :  { %v7068_v59 = vadd.f32 %v7062_v57, %v6991_v15  ;;  %v9611_v9 = vpop.f32.mrb[145].mxu1 }
 0xcb5   :  { %v7065_v32 = vpop.f32.mrb[146].mxu1 }
 0xcb6   :  { %v9612_v31 = vpop.f32.mrb[147].mxu1 }
 0xcc3   :  { %v7138_v44 = vpop.f32.mrb[148].mxu1 }
 0xcc4   :  { %v7144_v23 = vadd.f32 %v7138_v44, %v7068_v59  ;;  %v9623_v18 = vpop.f32.mrb[149].mxu1 }
 0xcc5   :  { %v7141_v49 = vpop.f32.mrb[150].mxu1 }
 0xcc6   :  { %v9624_v45 = vpop.f32.mrb[151].mxu1 }
 0xcd3   :  { %v7216_v50 = vpop.f32.mrb[152].mxu1 }
 0xcd4   :  { %v7222_v51 = vadd.f32 %v7216_v50, %v7144_v23  ;;  %v9635_v25 = vpop.f32.mrb[153].mxu1 }
 0xcd5   :  { %v7219_v29 = vpop.f32.mrb[154].mxu1 }
 0xcd6   :  { %v9636_v27 = vpop.f32.mrb[155].mxu1 }
 0xce3   :  { %v7293_v56 = vpop.f32.mrb[156].mxu1 }
 0xce4   :  { %v7299_v54 = vadd.f32 %v7293_v56, %v7222_v51  ;;  %v9647_v38 = vpop.f32.mrb[157].mxu1 }
 0xce5   :  { %v7296_v33 = vpop.f32.mrb[158].mxu1 }
 0xce6   :  { %v9648_v28 = vpop.f32.mrb[159].mxu1 }
 0xcf3   :  { %v7370_v4 = vpop.f32.mrb[160].mxu1 }
 0xcf4   :  { %v7376_v11 = vadd.f32 %v7370_v4, %v7299_v54  ;;  %v9659_v53 = vpop.f32.mrb[161].mxu1 }
 0xcf5   :  { %v7373_v34 = vpop.f32.mrb[162].mxu1 }
 0xcf6   :  { %v9660_v26 = vpop.f32.mrb[163].mxu1 }
 0xd03   :  { %v7447_v43 = vpop.f32.mrb[164].mxu1 }
 0xd04   :  { %v7453_v3 = vadd.f32 %v7447_v43, %v7376_v11  ;;  %v9671_v47 = vpop.f32.mrb[165].mxu1 }
 0xd05   :  { %v7450_v10 = vpop.f32.mrb[166].mxu1 }
 0xd06   :  { %v9672_v20 = vpop.f32.mrb[167].mxu1 }
 0xd13   :  { %v7524_v13 = vpop.f32.mrb[168].mxu1 }
 0xd14   :  { %v7530_v12 = vadd.f32 %v7524_v13, %v7453_v3  ;;  %v9683_v21 = vpop.f32.mrb[169].mxu1 }
 0xd15   :  { %v7527_v5 = vpop.f32.mrb[170].mxu1 }
 0xd16   :  { %v9684_v8 = vpop.f32.mrb[171].mxu1 }
 0xd23   :  { %v7601_v22 = vpop.f32.mrb[172].mxu1 }
 0xd24   :  { %v7607_v2 = vadd.f32 %v7601_v22, %v7530_v12  ;;  %v9695_v61 = vpop.f32.mrb[173].mxu1 }
 0xd25   :  { %v7604_v42 = vpop.f32.mrb[174].mxu1 }
 0xd26   :  { %v9696_v30 = vpop.f32.mrb[175].mxu1 }
 0xd33   :  { %v7678_v19 = vpop.f32.mrb[176].mxu1 }
 0xd34   :  { %v7684_v62 = vadd.f32 %v7678_v19, %v7607_v2  ;;  %v9707_v40 = vpop.f32.mrb[177].mxu1 }
 0xd35   :  { %v7681_v16 = vpop.f32.mrb[178].mxu1 }
 0xd36   :  { %v7690_v48 = vadd.f32 %v8385_v6, %v7684_v62  ;;  %v9708_v52 = vpop.f32.mrb[179].mxu1 }
 0xd38   :  { %10642 = vtanh.f32 %v7690_v48 }
 0xd42   :  { %v10643_v35 = vpop.eup %10642 }
 0xd43   :  { %v7692_v39 = vpack.c.bf16 %v10643_v35, %v10643_v35 }
 0xd45   :  { %9718 = vmatmul.mubr.msk.bf16.vlgmr.msra.gmra.mrb[180].mxu1 %vm5063_vm4, %v7692_v39 }
 0xe18   :  { %v7766_v55 = vpop.f32.mrb[180].mxu1 }
 0xe19   :  { %v7767_v36 = vadd.f32 %v7766_v55, %v7727_v1  ;;  %v9719_v14 = vpop.f32.mrb[181].mxu1 }
 0xe1a   :  { %v7769_v41 = vpop.f32.mrb[182].mxu1 }
 0xe1b   :  { %10644 = vtanh.f32 %v7767_v36  ;;  %v9720_v58 = vpop.f32.mrb[183].mxu1 }
 0xe25   :  { %v10645_v15 = vpop.eup %10644 }
 0xe26   :  { %v7778_v7 = vmul.f32 %v10645_v15, %v8391_v46 }
 0xe28   :  { %v7779_v17 = vsel %vm4956_vm15, %v7778_v7, 0.0 }
 0xe29   :  { %7780 = vadd.xlane.f32.xlu0 %v7779_v17 }
 0xeb6   :  { %v7781_v37 = vpop.xlane.xlu0 %7780 }
 0xeb7   :  { %v7782_v57 = vadd.f32 %v8391_v46, %v7781_v37 }
 0xeb9   :  { %7784 = vrot.lane.b32.xlu1 %v7782_v57, %s10650_s25 }
 0xf2b   :  { %v7785_v59 = vpop.permute.xlu1 %7784 }
 0xf2c   :  { %7788 = vst.msk [vmem:[%s13420_s5] sm:$0x3] %vm7787_vm0, %v7785_v59 }

</bundles_post_ra>
